<compile_context>
chip_gen: v6e
topology: v6e:2x2x1
jax: 0.10.0
libtpu: 0.0.40
codegen_flags: <defaults>
</compile_context>

<pallas_src>
import functools

import jax
import jax.numpy as jnp
from jax import lax
from jax.experimental import pallas as pl
from jax.experimental.pallas import tpu as pltpu


# ---------------------------------------------------------------------------
# Pallas kernels: one partial-conv tile
#   out = ((W @ (x*m)_patches) * ratio + b) * update_mask ; activation
# ---------------------------------------------------------------------------
def _pconv_row_kernel(xm_ref, msum_ref, w_ref, b_ref, out_ref, *, winsize, act):
    """(TM, K) x (K, Cout): rows of M on sublanes, Cout on lanes."""
    conv_nb = jnp.dot(xm_ref[...], w_ref[...], preferred_element_type=jnp.float32)

    msum = msum_ref[...]                                   # (TM, 1) f32: ones-kernel conv of mask
    umask = jnp.clip(msum, 0.0, 1.0)                       # update_mask
    # mask_ratio = slide_winsize / (msum + eps), masked by update_mask (EUP reciprocal).
    ratio = (winsize * pl.reciprocal(msum + 1e-8, approx=True)) * umask

    # PyTorch: out = ((raw_out - bias) * ratio + bias) * update_mask
    out = (conv_nb * ratio + b_ref[...]) * umask
    if act == "relu":
        out = jnp.maximum(out, 0.0)
    elif act == "sigmoid":
        out = jax.nn.sigmoid(out)
    out_ref[...] = out.astype(out_ref.dtype)


def _pconv_col_kernel(xm_ref, msum_ref, w_ref, b_ref, out_ref, *, winsize, act):
    """(Cout, K) x (K, TM): M on lanes -> lane-dense stores for tiny Cout (dec3)."""
    conv_nb = jnp.dot(w_ref[...], xm_ref[...], preferred_element_type=jnp.float32)  # (Cout, TM)

    msum = msum_ref[...]                                   # (1, TM) f32
    umask = jnp.clip(msum, 0.0, 1.0)
    ratio = (winsize * pl.reciprocal(msum + 1e-8, approx=True)) * umask

    out = (conv_nb * ratio + b_ref[...]) * umask           # b_ref: (Cout, 1)
    if act == "relu":
        out = jnp.maximum(out, 0.0)
    elif act == "sigmoid":
        out = jax.nn.sigmoid(out)
    out_ref[...] = out.astype(out_ref.dtype)


# ---------------------------------------------------------------------------
# Glue (zero-FLOP layout work in JAX): im2col, upsample, packing helpers
# ---------------------------------------------------------------------------
def _round_up(x, m):
    return (x + m - 1) // m * m


def _choose_tm(M, target, align):
    """Largest sensible row tile: <= target, aligned, and >=2 grid steps on
    medium layers so both v7x TensorCores get work under ("parallel",)."""
    if M > target:
        return target
    if M > 256 and M > 2 * align:
        return _round_up((M + 1) // 2, align)
    return _round_up(M, align)


def _im2col_nhwc(x, k, s, p, *, col_major=False):
    """x: (N, H, W, C).  Row-major: (N*Ho*Wo, k*k*C).  Col-major: (k*k*C, N*Ho*Wo).
    K ordered (kh, kw, C) in both cases."""
    N, H, W, C = x.shape
    xp = jnp.pad(x, ((0, 0), (p, p), (p, p), (0, 0)))
    Ho = (H + 2 * p - k) // s + 1
    Wo = (W + 2 * p - k) // s + 1
    cols = []
    for i in range(k):
        for j in range(k):
            cols.append(xp[:, i:i + s * Ho:s, j:j + s * Wo:s, :])   # (N, Ho, Wo, C)
    if col_major:
        pat = jnp.stack(cols, axis=0)                               # (k*k, N, Ho, Wo, C)
        pat = jnp.transpose(pat, (0, 4, 1, 2, 3))                   # (k*k, C, N, Ho, Wo)
        pat = pat.reshape(k * k * C, N * Ho * Wo)
    else:
        pat = jnp.stack(cols, axis=3)                               # (N, Ho, Wo, k*k, C)
        pat = pat.reshape(N * Ho * Wo, k * k * C)
    return pat, Ho, Wo


def _upsample2_nearest(x):
    # nn.Upsample(scale_factor=2, mode='nearest') on NHWC (runs on bf16 activations).
    return jnp.repeat(jnp.repeat(x, 2, axis=1), 2, axis=2)


def partial_conv2d(x, m, w2, b2, *, k, s, p, act, out_dtype, col_major=False,
                   tm_target=1024):
    """One PartialConv2d(multi_channel=True, return_mask=True) layer, fused with act.

    x: (N, H, W, Cin) f32/bf16; m: (N, H, W, Cm) f32 binary, Cm in {Cin, 1}.
    w2: packed bf16 weights, (K, Cout) row layout or (Cout, K) col layout.
    b2: f32 bias, (1, Cout) row layout or (Cout, 1) col layout.
    Returns (out, update_mask (N, Ho, Wo, 1) f32); out is (N, Ho, Wo, Cout) in row
    layout or (Cout, N, Ho, Wo) in col layout.
    """
    N, H, W, Cin = x.shape
    Cm = m.shape[-1]
    winsize = float(Cin * k * k)                             # slide_winsize

    # ---- mask-update conv (all-ones kernel) as a windowed sum — no (M, K) mask slab ----
    msum = lax.reduce_window(
        m, 0.0, lax.add,
        window_dimensions=(1, k, k, Cm),
        window_strides=(1, s, s, 1),
        padding=((0, 0), (p, p), (p, p), (0, 0)))            # (N, Ho, Wo, 1)
    if Cm == 1 and Cin > 1:
        # Valid because the all-ones mask kernel makes all output-mask channels identical;
        # do NOT reuse this path with true per-channel masks between layers.
        msum = msum * float(Cin)
    update_mask = jnp.clip(msum, 0.0, 1.0)                   # (N, Ho, Wo, 1) f32

    # ---- im2col of (x * mask), bf16 MXU operand (mask is exactly 0/1 -> bf16 exact) ----
    xm = x.astype(jnp.bfloat16) * m.astype(jnp.bfloat16)
    pat, Ho, Wo = _im2col_nhwc(xm, k, s, p, col_major=col_major)
    M = N * Ho * Wo
    K = Cin * k * k                                          # NOT padded to 128

    cparams = pltpu.CompilerParams(
        dimension_semantics=("parallel",),
        vmem_limit_bytes=64 * 1024 * 1024,
        # Let XLA fuse the x*m / im2col / cast / pad producer chain into the
        # pallas_call's patch-operand DMA instead of materializing it in HBM.
        allow_input_fusion=[True, False, False, False],
    )

    if not col_major:
        Cout = w2.shape[1]
        TM = _choose_tm(M, tm_target, 16)                    # bf16 sublane tile = 16
        Mp = _round_up(M, TM)
        pat = jnp.pad(pat, ((0, Mp - M), (0, 0)))
        msum_rows = jnp.pad(msum.reshape(M, 1), ((0, Mp - M), (0, 0)))

        out = pl.pallas_call(
            functools.partial(_pconv_row_kernel, winsize=winsize, act=act),
            grid=(Mp // TM,),
            out_shape=jax.ShapeDtypeStruct((Mp, Cout), out_dtype),
            in_specs=[
                pl.BlockSpec((TM, K), lambda i: (i, 0)),     # im2col patches (bf16)
                pl.BlockSpec((TM, 1), lambda i: (i, 0)),     # windowed mask sum (f32)
                pl.BlockSpec((K, Cout), lambda i: (0, 0)),   # weights, resident
                pl.BlockSpec((1, Cout), lambda i: (0, 0)),   # bias, resident
            ],
            out_specs=pl.BlockSpec((TM, Cout), lambda i: (i, 0)),
            compiler_params=cparams,
        )(pat, msum_rows, w2, b2)
        out = out[:M].reshape(N, Ho, Wo, Cout)               # stays channels-last
        return out, update_mask

    # ---- column-major path (dec3): output (Cout, M) with M on lanes ----
    Cout = w2.shape[0]
    TM = _choose_tm(M, tm_target, 128)                       # lane-aligned tiles
    Mp = _round_up(M, TM)
    pat = jnp.pad(pat, ((0, 0), (0, Mp - M)))                # (K, Mp)
    msum_cols = jnp.pad(msum.reshape(1, M), ((0, 0), (0, Mp - M)))

    out = pl.pallas_call(
        functools.partial(_pconv_col_kernel, winsize=winsize, act=act),
        grid=(Mp // TM,),
        out_shape=jax.ShapeDtypeStruct((Cout, Mp), out_dtype),
        in_specs=[
            pl.BlockSpec((K, TM), lambda i: (0, i)),         # im2col patches (bf16)
            pl.BlockSpec((1, TM), lambda i: (0, i)),         # windowed mask sum (f32)
            pl.BlockSpec((Cout, K), lambda i: (0, 0)),       # weights, resident
            pl.BlockSpec((Cout, 1), lambda i: (0, 0)),       # bias, resident
        ],
        out_specs=pl.BlockSpec((Cout, TM), lambda i: (0, i)),
        compiler_params=cparams,
    )(pat, msum_cols, w2, b2)
    out = out[:, :M].reshape(Cout, N, Ho, Wo)
    return out, update_mask


# ---------------------------------------------------------------------------
# Model: parameters + forward
# ---------------------------------------------------------------------------
_LAYER_SPECS = {
    # name: (Cin, Cout, kernel, stride, padding, out_dtype, col_major, activation)
    "enc1": (3, 32, 4, 2, 1, jnp.bfloat16, False, "relu"),
    "enc2": (32, 64, 4, 2, 1, jnp.bfloat16, False, "relu"),
    "enc3": (64, 128, 4, 2, 1, jnp.bfloat16, False, "relu"),
    "dec1": (128, 64, 3, 1, 1, jnp.bfloat16, False, "relu"),
    "dec2": (64, 32, 3, 1, 1, jnp.bfloat16, False, "relu"),
    "dec3": (32, 3, 3, 1, 1, jnp.float32, True, "sigmoid"),
}


def _pack_weight(w, col_major):
    """w: (Cout, Cin, kh, kw) torch layout -> packed bf16 matmul operand."""
    cout, cin, k, _ = w.shape
    if col_major:
        w2 = jnp.transpose(w, (0, 2, 3, 1)).reshape(cout, k * k * cin)   # (Cout, K)
    else:
        w2 = jnp.transpose(w, (2, 3, 1, 0)).reshape(k * k * cin, cout)   # (K, Cout)
    return w2.astype(jnp.bfloat16)


def init_params(key):
    """Generate Conv2d-default-init weights and pre-pack them once (not per forward)."""
    params = {}
    for name, (cin, cout, k, _, _, _, col_major, _) in _LAYER_SPECS.items():
        key, kw, kb = jax.random.split(key, 3)
        fan_in = cin * k * k
        bound = 1.0 / (fan_in ** 0.5)
        w = jax.random.uniform(kw, (cout, cin, k, k), jnp.float32, -bound, bound)
        b = jax.random.uniform(kb, (cout,), jnp.float32, -bound, bound)
        w2 = _pack_weight(w, col_major)
        b2 = (b.reshape(cout, 1) if col_major else b.reshape(1, cout)).astype(jnp.float32)
        params[name] = (w2, b2)
    return params


def _layer(params, name, x, m):
    w2, b2 = params[name]
    _, _, k, s, p, out_dtype, col_major, act = _LAYER_SPECS[name]
    return partial_conv2d(x, m, w2, b2, k=k, s=s, p=p, act=act,
                          out_dtype=out_dtype, col_major=col_major)


def partial_conv_autoencoder(params, x, m):
    """x, m: NCHW f32 (PyTorch interface). Internally channels-last, bf16 between layers."""
    x = jnp.transpose(x, (0, 2, 3, 1))                       # NHWC
    m = jnp.transpose(m, (0, 2, 3, 1))

    # --- encoder (relu fused into each pconv, mask propagated single-channel) ---
    x1, m1 = _layer(params, "enc1", x, m)
    x2, m2 = _layer(params, "enc2", x1, m1)
    x3, m3 = _layer(params, "enc3", x2, m2)

    # --- decoder (upsample x & mask, pconv, relu / final sigmoid) ---
    xd, md = _upsample2_nearest(x3), _upsample2_nearest(m3)
    xd, md = _layer(params, "dec1", xd, md)
    xd, md = _upsample2_nearest(xd), _upsample2_nearest(md)
    xd, md = _layer(params, "dec2", xd, md)
    xd, md = _upsample2_nearest(xd), _upsample2_nearest(md)
    xd, _ = _layer(params, "dec3", xd, md)                   # (3, N, H, W) f32

    return jnp.transpose(xd, (1, 0, 2, 3))                   # -> NCHW, minor dims untouched


# ---------------------------------------------------------------------------
if __name__ == "__main__":
    key = jax.random.PRNGKey(0)
    kp, kx, km = jax.random.split(key, 3)

    params = init_params(kp)

    N, C, H, W = 2, 3, 16, 16
    x = jax.random.uniform(kx, (N, C, H, W), jnp.float32)
    # binary hole mask (1 = valid pixel), per-channel as allowed by multi_channel=True
    m = (jax.random.uniform(km, (N, C, H, W)) > 0.25).astype(jnp.float32)

    fwd = jax.jit(partial_conv_autoencoder)
    out = jax.block_until_ready(fwd(params, x, m))

    assert out.shape == (N, 3, H, W), out.shape
    assert out.dtype == jnp.float32, out.dtype
    assert bool(jnp.all(jnp.isfinite(out)))
    assert bool(jnp.all((out >= 0.0) & (out <= 1.0)))        # sigmoid output range
    print("KERNEL_OK")
</pallas_src>

<mosaic_0001>
module attributes {stable_mosaic.version = 11 : i64} {
  func.func @_pconv_row_kernel(%arg0: i32, %arg1: memref<128x48xbf16, #tpu.memory_space<vmem>>, %arg2: memref<128x1xf32, #tpu.memory_space<vmem>>, %arg3: memref<48x32xbf16, #tpu.memory_space<vmem>>, %arg4: memref<1x32xf32, #tpu.memory_space<vmem>>, %arg5: memref<128x32xbf16, #tpu.memory_space<vmem>>) attributes {dimension_semantics = [#tpu.dimension_semantics<parallel>], iteration_bounds = array<i64: 1>, scalar_prefetch = 0 : i64, scratch_operands = 0 : i64, tpu.core_type = #tpu.core_type<tc>, window_params = [{transform_indices = @transform_0, window_bounds = array<i64: 128, 48>}, {transform_indices = @transform_1, window_bounds = array<i64: 128, 1>}, {pipeline_mode = #tpu.pipeline_mode<synchronous>, transform_indices = @transform_2, window_bounds = array<i64: 48, 32>}, {pipeline_mode = #tpu.pipeline_mode<synchronous>, transform_indices = @transform_3, window_bounds = array<i64: 1, 32>}, {transform_indices = @transform_4, window_bounds = array<i64: 128, 32>}]} {
    %c0 = arith.constant 0 : index
    %c0_0 = arith.constant 0 : index
    %0 = vector.load %arg1[%c0, %c0_0] : memref<128x48xbf16, #tpu.memory_space<vmem>>, vector<128x48xbf16>
    %c0_1 = arith.constant 0 : index
    %c0_2 = arith.constant 0 : index
    %1 = vector.load %arg3[%c0_1, %c0_2] : memref<48x32xbf16, #tpu.memory_space<vmem>>, vector<48x32xbf16>
    %cst = arith.constant dense<0.000000e+00> : vector<128x32xf32>
    %2 = tpu.matmul %0, %1, %cst {dimension_numbers = #tpu.dot_dimension_numbers<[1], [0], [0], [1], [0, 0, 1, 1], [], []>} : vector<128x48xbf16>, vector<48x32xbf16>, vector<128x32xf32> -> vector<128x32xf32>
    %c0_3 = arith.constant 0 : index
    %c0_4 = arith.constant 0 : index
    %3 = vector.load %arg2[%c0_3, %c0_4] : memref<128x1xf32, #tpu.memory_space<vmem>>, vector<128x1xf32>
    %cst_5 = arith.constant 0.000000e+00 : f32
    %cst_6 = arith.constant 1.000000e+00 : f32
    %4 = vector.broadcast %cst_5 : f32 to vector<128x1xf32>
    %5 = arith.maximumf %4, %3 : vector<128x1xf32>
    %6 = vector.broadcast %cst_6 : f32 to vector<128x1xf32>
    %7 = arith.minimumf %6, %5 : vector<128x1xf32>
    %cst_7 = arith.constant 9.99999993E-9 : f32
    %8 = vector.broadcast %cst_7 : f32 to vector<128x1xf32>
    %9 = arith.addf %3, %8 : vector<128x1xf32>
    %10 = tpu.reciprocal %9 {approx = true} : vector<128x1xf32> -> vector<128x1xf32>
    %cst_8 = arith.constant 4.800000e+01 : f32
    %11 = vector.broadcast %cst_8 : f32 to vector<128x1xf32>
    %12 = arith.mulf %11, %10 : vector<128x1xf32>
    %13 = arith.mulf %12, %7 : vector<128x1xf32>
    %14 = vector.broadcast %13 : vector<128x1xf32> to vector<128x32xf32>
    %15 = arith.mulf %2, %14 : vector<128x32xf32>
    %c0_9 = arith.constant 0 : index
    %c0_10 = arith.constant 0 : index
    %16 = vector.load %arg4[%c0_9, %c0_10] : memref<1x32xf32, #tpu.memory_space<vmem>>, vector<1x32xf32>
    %17 = vector.broadcast %16 : vector<1x32xf32> to vector<128x32xf32>
    %18 = arith.addf %15, %17 : vector<128x32xf32>
    %19 = vector.broadcast %7 : vector<128x1xf32> to vector<128x32xf32>
    %20 = arith.mulf %18, %19 : vector<128x32xf32>
    %cst_11 = arith.constant 0.000000e+00 : f32
    %21 = vector.broadcast %cst_11 : f32 to vector<128x32xf32>
    %22 = arith.maximumf %20, %21 : vector<128x32xf32>
    %23 = arith.truncf %22 : vector<128x32xf32> to vector<128x32xbf16>
    %c0_12 = arith.constant 0 : index
    %c0_13 = arith.constant 0 : index
    %24 = vector.load %arg5[%c0_12, %c0_13] : memref<128x32xbf16, #tpu.memory_space<vmem>>, vector<128x32xbf16>
    tpu.vector_store %arg5[%c0_12, %c0_13], %23 {strides = array<i32>} : memref<128x32xbf16, #tpu.memory_space<vmem>>, vector<128x32xbf16>,
    return
  }
  func.func @transform_0(%arg0: i32) -> (i32, i32) {
    %c0_i32 = arith.constant 0 : i32
    %c0_i32_0 = arith.constant 0 : i32
    return %arg0, %c0_i32 : i32, i32
  }
  func.func @transform_1(%arg0: i32) -> (i32, i32) {
    %c0_i32 = arith.constant 0 : i32
    %c0_i32_0 = arith.constant 0 : i32
    return %arg0, %c0_i32 : i32, i32
  }
  func.func @transform_2(%arg0: i32) -> (i32, i32) {
    %c0_i32 = arith.constant 0 : i32
    %c0_i32_0 = arith.constant 0 : i32
    %c0_i32_1 = arith.constant 0 : i32
    return %c0_i32, %c0_i32_0 : i32, i32
  }
  func.func @transform_3(%arg0: i32) -> (i32, i32) {
    %c0_i32 = arith.constant 0 : i32
    %c0_i32_0 = arith.constant 0 : i32
    %c0_i32_1 = arith.constant 0 : i32
    return %c0_i32, %c0_i32_0 : i32, i32
  }
  func.func @transform_4(%arg0: i32) -> (i32, i32) {
    %c0_i32 = arith.constant 0 : i32
    %c0_i32_0 = arith.constant 0 : i32
    return %arg0, %c0_i32 : i32, i32
  }
}

module attributes {stable_mosaic.version = 11 : i64} {
  func.func @_pconv_row_kernel(%arg0: i32, %arg1: memref<32x512xbf16, #tpu.memory_space<vmem>>, %arg2: memref<32x1xf32, #tpu.memory_space<vmem>>, %arg3: memref<512x64xbf16, #tpu.memory_space<vmem>>, %arg4: memref<1x64xf32, #tpu.memory_space<vmem>>, %arg5: memref<32x64xbf16, #tpu.memory_space<vmem>>) attributes {dimension_semantics = [#tpu.dimension_semantics<parallel>], iteration_bounds = array<i64: 1>, scalar_prefetch = 0 : i64, scratch_operands = 0 : i64, tpu.core_type = #tpu.core_type<tc>, window_params = [{transform_indices = @transform_0, window_bounds = array<i64: 32, 512>}, {transform_indices = @transform_1, window_bounds = array<i64: 32, 1>}, {pipeline_mode = #tpu.pipeline_mode<synchronous>, transform_indices = @transform_2, window_bounds = array<i64: 512, 64>}, {pipeline_mode = #tpu.pipeline_mode<synchronous>, transform_indices = @transform_3, window_bounds = array<i64: 1, 64>}, {transform_indices = @transform_4, window_bounds = array<i64: 32, 64>}]} {
    %c0 = arith.constant 0 : index
    %c0_0 = arith.constant 0 : index
    %0 = vector.load %arg1[%c0, %c0_0] : memref<32x512xbf16, #tpu.memory_space<vmem>>, vector<32x512xbf16>
    %c0_1 = arith.constant 0 : index
    %c0_2 = arith.constant 0 : index
    %1 = vector.load %arg3[%c0_1, %c0_2] : memref<512x64xbf16, #tpu.memory_space<vmem>>, vector<512x64xbf16>
    %cst = arith.constant dense<0.000000e+00> : vector<32x64xf32>
    %2 = tpu.matmul %0, %1, %cst {dimension_numbers = #tpu.dot_dimension_numbers<[1], [0], [0], [1], [0, 0, 1, 1], [], []>} : vector<32x512xbf16>, vector<512x64xbf16>, vector<32x64xf32> -> vector<32x64xf32>
    %c0_3 = arith.constant 0 : index
    %c0_4 = arith.constant 0 : index
    %3 = vector.load %arg2[%c0_3, %c0_4] : memref<32x1xf32, #tpu.memory_space<vmem>>, vector<32x1xf32>
    %cst_5 = arith.constant 0.000000e+00 : f32
    %cst_6 = arith.constant 1.000000e+00 : f32
    %4 = vector.broadcast %cst_5 : f32 to vector<32x1xf32>
    %5 = arith.maximumf %4, %3 : vector<32x1xf32>
    %6 = vector.broadcast %cst_6 : f32 to vector<32x1xf32>
    %7 = arith.minimumf %6, %5 : vector<32x1xf32>
    %cst_7 = arith.constant 9.99999993E-9 : f32
    %8 = vector.broadcast %cst_7 : f32 to vector<32x1xf32>
    %9 = arith.addf %3, %8 : vector<32x1xf32>
    %10 = tpu.reciprocal %9 {approx = true} : vector<32x1xf32> -> vector<32x1xf32>
    %cst_8 = arith.constant 5.120000e+02 : f32
    %11 = vector.broadcast %cst_8 : f32 to vector<32x1xf32>
    %12 = arith.mulf %11, %10 : vector<32x1xf32>
    %13 = arith.mulf %12, %7 : vector<32x1xf32>
    %14 = vector.broadcast %13 : vector<32x1xf32> to vector<32x64xf32>
    %15 = arith.mulf %2, %14 : vector<32x64xf32>
    %c0_9 = arith.constant 0 : index
    %c0_10 = arith.constant 0 : index
    %16 = vector.load %arg4[%c0_9, %c0_10] : memref<1x64xf32, #tpu.memory_space<vmem>>, vector<1x64xf32>
    %17 = vector.broadcast %16 : vector<1x64xf32> to vector<32x64xf32>
    %18 = arith.addf %15, %17 : vector<32x64xf32>
    %19 = vector.broadcast %7 : vector<32x1xf32> to vector<32x64xf32>
    %20 = arith.mulf %18, %19 : vector<32x64xf32>
    %cst_11 = arith.constant 0.000000e+00 : f32
    %21 = vector.broadcast %cst_11 : f32 to vector<32x64xf32>
    %22 = arith.maximumf %20, %21 : vector<32x64xf32>
    %23 = arith.truncf %22 : vector<32x64xf32> to vector<32x64xbf16>
    %c0_12 = arith.constant 0 : index
    %c0_13 = arith.constant 0 : index
    %24 = vector.load %arg5[%c0_12, %c0_13] : memref<32x64xbf16, #tpu.memory_space<vmem>>, vector<32x64xbf16>
    tpu.vector_store %arg5[%c0_12, %c0_13], %23 {strides = array<i32>} : memref<32x64xbf16, #tpu.memory_space<vmem>>, vector<32x64xbf16>,
    return
  }
  func.func @transform_0(%arg0: i32) -> (i32, i32) {
    %c0_i32 = arith.constant 0 : i32
    %c0_i32_0 = arith.constant 0 : i32
    return %arg0, %c0_i32 : i32, i32
  }
  func.func @transform_1(%arg0: i32) -> (i32, i32) {
    %c0_i32 = arith.constant 0 : i32
    %c0_i32_0 = arith.constant 0 : i32
    return %arg0, %c0_i32 : i32, i32
  }
  func.func @transform_2(%arg0: i32) -> (i32, i32) {
    %c0_i32 = arith.constant 0 : i32
    %c0_i32_0 = arith.constant 0 : i32
    %c0_i32_1 = arith.constant 0 : i32
    return %c0_i32, %c0_i32_0 : i32, i32
  }
  func.func @transform_3(%arg0: i32) -> (i32, i32) {
    %c0_i32 = arith.constant 0 : i32
    %c0_i32_0 = arith.constant 0 : i32
    %c0_i32_1 = arith.constant 0 : i32
    return %c0_i32, %c0_i32_0 : i32, i32
  }
  func.func @transform_4(%arg0: i32) -> (i32, i32) {
    %c0_i32 = arith.constant 0 : i32
    %c0_i32_0 = arith.constant 0 : i32
    return %arg0, %c0_i32 : i32, i32
  }
}

module attributes {stable_mosaic.version = 11 : i64} {
  func.func @_pconv_row_kernel(%arg0: i32, %arg1: memref<16x1024xbf16, #tpu.memory_space<vmem>>, %arg2: memref<16x1xf32, #tpu.memory_space<vmem>>, %arg3: memref<1024x128xbf16, #tpu.memory_space<vmem>>, %arg4: memref<1x128xf32, #tpu.memory_space<vmem>>, %arg5: memref<16x128xbf16, #tpu.memory_space<vmem>>) attributes {dimension_semantics = [#tpu.dimension_semantics<parallel>], iteration_bounds = array<i64: 1>, scalar_prefetch = 0 : i64, scratch_operands = 0 : i64, tpu.core_type = #tpu.core_type<tc>, window_params = [{transform_indices = @transform_0, window_bounds = array<i64: 16, 1024>}, {transform_indices = @transform_1, window_bounds = array<i64: 16, 1>}, {pipeline_mode = #tpu.pipeline_mode<synchronous>, transform_indices = @transform_2, window_bounds = array<i64: 1024, 128>}, {pipeline_mode = #tpu.pipeline_mode<synchronous>, transform_indices = @transform_3, window_bounds = array<i64: 1, 128>}, {transform_indices = @transform_4, window_bounds = array<i64: 16, 128>}]} {
    %c0 = arith.constant 0 : index
    %c0_0 = arith.constant 0 : index
    %0 = vector.load %arg1[%c0, %c0_0] : memref<16x1024xbf16, #tpu.memory_space<vmem>>, vector<16x1024xbf16>
    %c0_1 = arith.constant 0 : index
    %c0_2 = arith.constant 0 : index
    %1 = vector.load %arg3[%c0_1, %c0_2] : memref<1024x128xbf16, #tpu.memory_space<vmem>>, vector<1024x128xbf16>
    %cst = arith.constant dense<0.000000e+00> : vector<16x128xf32>
    %2 = tpu.matmul %0, %1, %cst {dimension_numbers = #tpu.dot_dimension_numbers<[1], [0], [0], [1], [0, 0, 1, 1], [], []>} : vector<16x1024xbf16>, vector<1024x128xbf16>, vector<16x128xf32> -> vector<16x128xf32>
    %c0_3 = arith.constant 0 : index
    %c0_4 = arith.constant 0 : index
    %3 = vector.load %arg2[%c0_3, %c0_4] : memref<16x1xf32, #tpu.memory_space<vmem>>, vector<16x1xf32>
    %cst_5 = arith.constant 0.000000e+00 : f32
    %cst_6 = arith.constant 1.000000e+00 : f32
    %4 = vector.broadcast %cst_5 : f32 to vector<16x1xf32>
    %5 = arith.maximumf %4, %3 : vector<16x1xf32>
    %6 = vector.broadcast %cst_6 : f32 to vector<16x1xf32>
    %7 = arith.minimumf %6, %5 : vector<16x1xf32>
    %cst_7 = arith.constant 9.99999993E-9 : f32
    %8 = vector.broadcast %cst_7 : f32 to vector<16x1xf32>
    %9 = arith.addf %3, %8 : vector<16x1xf32>
    %10 = tpu.reciprocal %9 {approx = true} : vector<16x1xf32> -> vector<16x1xf32>
    %cst_8 = arith.constant 1.024000e+03 : f32
    %11 = vector.broadcast %cst_8 : f32 to vector<16x1xf32>
    %12 = arith.mulf %11, %10 : vector<16x1xf32>
    %13 = arith.mulf %12, %7 : vector<16x1xf32>
    %14 = vector.broadcast %13 : vector<16x1xf32> to vector<16x128xf32>
    %15 = arith.mulf %2, %14 : vector<16x128xf32>
    %c0_9 = arith.constant 0 : index
    %c0_10 = arith.constant 0 : index
    %16 = vector.load %arg4[%c0_9, %c0_10] : memref<1x128xf32, #tpu.memory_space<vmem>>, vector<1x128xf32>
    %17 = vector.broadcast %16 : vector<1x128xf32> to vector<16x128xf32>
    %18 = arith.addf %15, %17 : vector<16x128xf32>
    %19 = vector.broadcast %7 : vector<16x1xf32> to vector<16x128xf32>
    %20 = arith.mulf %18, %19 : vector<16x128xf32>
    %cst_11 = arith.constant 0.000000e+00 : f32
    %21 = vector.broadcast %cst_11 : f32 to vector<16x128xf32>
    %22 = arith.maximumf %20, %21 : vector<16x128xf32>
    %23 = arith.truncf %22 : vector<16x128xf32> to vector<16x128xbf16>
    %c0_12 = arith.constant 0 : index
    %c0_13 = arith.constant 0 : index
    %24 = vector.load %arg5[%c0_12, %c0_13] : memref<16x128xbf16, #tpu.memory_space<vmem>>, vector<16x128xbf16>
    tpu.vector_store %arg5[%c0_12, %c0_13], %23 {strides = array<i32>} : memref<16x128xbf16, #tpu.memory_space<vmem>>, vector<16x128xbf16>,
    return
  }
  func.func @transform_0(%arg0: i32) -> (i32, i32) {
    %c0_i32 = arith.constant 0 : i32
    %c0_i32_0 = arith.constant 0 : i32
    return %arg0, %c0_i32 : i32, i32
  }
  func.func @transform_1(%arg0: i32) -> (i32, i32) {
    %c0_i32 = arith.constant 0 : i32
    %c0_i32_0 = arith.constant 0 : i32
    return %arg0, %c0_i32 : i32, i32
  }
  func.func @transform_2(%arg0: i32) -> (i32, i32) {
    %c0_i32 = arith.constant 0 : i32
    %c0_i32_0 = arith.constant 0 : i32
    %c0_i32_1 = arith.constant 0 : i32
    return %c0_i32, %c0_i32_0 : i32, i32
  }
  func.func @transform_3(%arg0: i32) -> (i32, i32) {
    %c0_i32 = arith.constant 0 : i32
    %c0_i32_0 = arith.constant 0 : i32
    %c0_i32_1 = arith.constant 0 : i32
    return %c0_i32, %c0_i32_0 : i32, i32
  }
  func.func @transform_4(%arg0: i32) -> (i32, i32) {
    %c0_i32 = arith.constant 0 : i32
    %c0_i32_0 = arith.constant 0 : i32
    return %arg0, %c0_i32 : i32, i32
  }
}

module attributes {stable_mosaic.version = 11 : i64} {
  func.func @_pconv_row_kernel(%arg0: i32, %arg1: memref<32x1152xbf16, #tpu.memory_space<vmem>>, %arg2: memref<32x1xf32, #tpu.memory_space<vmem>>, %arg3: memref<1152x64xbf16, #tpu.memory_space<vmem>>, %arg4: memref<1x64xf32, #tpu.memory_space<vmem>>, %arg5: memref<32x64xbf16, #tpu.memory_space<vmem>>) attributes {dimension_semantics = [#tpu.dimension_semantics<parallel>], iteration_bounds = array<i64: 1>, scalar_prefetch = 0 : i64, scratch_operands = 0 : i64, tpu.core_type = #tpu.core_type<tc>, window_params = [{transform_indices = @transform_0, window_bounds = array<i64: 32, 1152>}, {transform_indices = @transform_1, window_bounds = array<i64: 32, 1>}, {pipeline_mode = #tpu.pipeline_mode<synchronous>, transform_indices = @transform_2, window_bounds = array<i64: 1152, 64>}, {pipeline_mode = #tpu.pipeline_mode<synchronous>, transform_indices = @transform_3, window_bounds = array<i64: 1, 64>}, {transform_indices = @transform_4, window_bounds = array<i64: 32, 64>}]} {
    %c0 = arith.constant 0 : index
    %c0_0 = arith.constant 0 : index
    %0 = vector.load %arg1[%c0, %c0_0] : memref<32x1152xbf16, #tpu.memory_space<vmem>>, vector<32x1152xbf16>
    %c0_1 = arith.constant 0 : index
    %c0_2 = arith.constant 0 : index
    %1 = vector.load %arg3[%c0_1, %c0_2] : memref<1152x64xbf16, #tpu.memory_space<vmem>>, vector<1152x64xbf16>
    %cst = arith.constant dense<0.000000e+00> : vector<32x64xf32>
    %2 = tpu.matmul %0, %1, %cst {dimension_numbers = #tpu.dot_dimension_numbers<[1], [0], [0], [1], [0, 0, 1, 1], [], []>} : vector<32x1152xbf16>, vector<1152x64xbf16>, vector<32x64xf32> -> vector<32x64xf32>
    %c0_3 = arith.constant 0 : index
    %c0_4 = arith.constant 0 : index
    %3 = vector.load %arg2[%c0_3, %c0_4] : memref<32x1xf32, #tpu.memory_space<vmem>>, vector<32x1xf32>
    %cst_5 = arith.constant 0.000000e+00 : f32
    %cst_6 = arith.constant 1.000000e+00 : f32
    %4 = vector.broadcast %cst_5 : f32 to vector<32x1xf32>
    %5 = arith.maximumf %4, %3 : vector<32x1xf32>
    %6 = vector.broadcast %cst_6 : f32 to vector<32x1xf32>
    %7 = arith.minimumf %6, %5 : vector<32x1xf32>
    %cst_7 = arith.constant 9.99999993E-9 : f32
    %8 = vector.broadcast %cst_7 : f32 to vector<32x1xf32>
    %9 = arith.addf %3, %8 : vector<32x1xf32>
    %10 = tpu.reciprocal %9 {approx = true} : vector<32x1xf32> -> vector<32x1xf32>
    %cst_8 = arith.constant 1.152000e+03 : f32
    %11 = vector.broadcast %cst_8 : f32 to vector<32x1xf32>
    %12 = arith.mulf %11, %10 : vector<32x1xf32>
    %13 = arith.mulf %12, %7 : vector<32x1xf32>
    %14 = vector.broadcast %13 : vector<32x1xf32> to vector<32x64xf32>
    %15 = arith.mulf %2, %14 : vector<32x64xf32>
    %c0_9 = arith.constant 0 : index
    %c0_10 = arith.constant 0 : index
    %16 = vector.load %arg4[%c0_9, %c0_10] : memref<1x64xf32, #tpu.memory_space<vmem>>, vector<1x64xf32>
    %17 = vector.broadcast %16 : vector<1x64xf32> to vector<32x64xf32>
    %18 = arith.addf %15, %17 : vector<32x64xf32>
    %19 = vector.broadcast %7 : vector<32x1xf32> to vector<32x64xf32>
    %20 = arith.mulf %18, %19 : vector<32x64xf32>
    %cst_11 = arith.constant 0.000000e+00 : f32
    %21 = vector.broadcast %cst_11 : f32 to vector<32x64xf32>
    %22 = arith.maximumf %20, %21 : vector<32x64xf32>
    %23 = arith.truncf %22 : vector<32x64xf32> to vector<32x64xbf16>
    %c0_12 = arith.constant 0 : index
    %c0_13 = arith.constant 0 : index
    %24 = vector.load %arg5[%c0_12, %c0_13] : memref<32x64xbf16, #tpu.memory_space<vmem>>, vector<32x64xbf16>
    tpu.vector_store %arg5[%c0_12, %c0_13], %23 {strides = array<i32>} : memref<32x64xbf16, #tpu.memory_space<vmem>>, vector<32x64xbf16>,
    return
  }
  func.func @transform_0(%arg0: i32) -> (i32, i32) {
    %c0_i32 = arith.constant 0 : i32
    %c0_i32_0 = arith.constant 0 : i32
    return %arg0, %c0_i32 : i32, i32
  }
  func.func @transform_1(%arg0: i32) -> (i32, i32) {
    %c0_i32 = arith.constant 0 : i32
    %c0_i32_0 = arith.constant 0 : i32
    return %arg0, %c0_i32 : i32, i32
  }
  func.func @transform_2(%arg0: i32) -> (i32, i32) {
    %c0_i32 = arith.constant 0 : i32
    %c0_i32_0 = arith.constant 0 : i32
    %c0_i32_1 = arith.constant 0 : i32
    return %c0_i32, %c0_i32_0 : i32, i32
  }
  func.func @transform_3(%arg0: i32) -> (i32, i32) {
    %c0_i32 = arith.constant 0 : i32
    %c0_i32_0 = arith.constant 0 : i32
    %c0_i32_1 = arith.constant 0 : i32
    return %c0_i32, %c0_i32_0 : i32, i32
  }
  func.func @transform_4(%arg0: i32) -> (i32, i32) {
    %c0_i32 = arith.constant 0 : i32
    %c0_i32_0 = arith.constant 0 : i32
    return %arg0, %c0_i32 : i32, i32
  }
}

module attributes {stable_mosaic.version = 11 : i64} {
  func.func @_pconv_row_kernel(%arg0: i32, %arg1: memref<128x576xbf16, #tpu.memory_space<vmem>>, %arg2: memref<128x1xf32, #tpu.memory_space<vmem>>, %arg3: memref<576x32xbf16, #tpu.memory_space<vmem>>, %arg4: memref<1x32xf32, #tpu.memory_space<vmem>>, %arg5: memref<128x32xbf16, #tpu.memory_space<vmem>>) attributes {dimension_semantics = [#tpu.dimension_semantics<parallel>], iteration_bounds = array<i64: 1>, scalar_prefetch = 0 : i64, scratch_operands = 0 : i64, tpu.core_type = #tpu.core_type<tc>, window_params = [{transform_indices = @transform_0, window_bounds = array<i64: 128, 576>}, {transform_indices = @transform_1, window_bounds = array<i64: 128, 1>}, {pipeline_mode = #tpu.pipeline_mode<synchronous>, transform_indices = @transform_2, window_bounds = array<i64: 576, 32>}, {pipeline_mode = #tpu.pipeline_mode<synchronous>, transform_indices = @transform_3, window_bounds = array<i64: 1, 32>}, {transform_indices = @transform_4, window_bounds = array<i64: 128, 32>}]} {
    %c0 = arith.constant 0 : index
    %c0_0 = arith.constant 0 : index
    %0 = vector.load %arg1[%c0, %c0_0] : memref<128x576xbf16, #tpu.memory_space<vmem>>, vector<128x576xbf16>
    %c0_1 = arith.constant 0 : index
    %c0_2 = arith.constant 0 : index
    %1 = vector.load %arg3[%c0_1, %c0_2] : memref<576x32xbf16, #tpu.memory_space<vmem>>, vector<576x32xbf16>
    %cst = arith.constant dense<0.000000e+00> : vector<128x32xf32>
    %2 = tpu.matmul %0, %1, %cst {dimension_numbers = #tpu.dot_dimension_numbers<[1], [0], [0], [1], [0, 0, 1, 1], [], []>} : vector<128x576xbf16>, vector<576x32xbf16>, vector<128x32xf32> -> vector<128x32xf32>
    %c0_3 = arith.constant 0 : index
    %c0_4 = arith.constant 0 : index
    %3 = vector.load %arg2[%c0_3, %c0_4] : memref<128x1xf32, #tpu.memory_space<vmem>>, vector<128x1xf32>
    %cst_5 = arith.constant 0.000000e+00 : f32
    %cst_6 = arith.constant 1.000000e+00 : f32
    %4 = vector.broadcast %cst_5 : f32 to vector<128x1xf32>
    %5 = arith.maximumf %4, %3 : vector<128x1xf32>
    %6 = vector.broadcast %cst_6 : f32 to vector<128x1xf32>
    %7 = arith.minimumf %6, %5 : vector<128x1xf32>
    %cst_7 = arith.constant 9.99999993E-9 : f32
    %8 = vector.broadcast %cst_7 : f32 to vector<128x1xf32>
    %9 = arith.addf %3, %8 : vector<128x1xf32>
    %10 = tpu.reciprocal %9 {approx = true} : vector<128x1xf32> -> vector<128x1xf32>
    %cst_8 = arith.constant 5.760000e+02 : f32
    %11 = vector.broadcast %cst_8 : f32 to vector<128x1xf32>
    %12 = arith.mulf %11, %10 : vector<128x1xf32>
    %13 = arith.mulf %12, %7 : vector<128x1xf32>
    %14 = vector.broadcast %13 : vector<128x1xf32> to vector<128x32xf32>
    %15 = arith.mulf %2, %14 : vector<128x32xf32>
    %c0_9 = arith.constant 0 : index
    %c0_10 = arith.constant 0 : index
    %16 = vector.load %arg4[%c0_9, %c0_10] : memref<1x32xf32, #tpu.memory_space<vmem>>, vector<1x32xf32>
    %17 = vector.broadcast %16 : vector<1x32xf32> to vector<128x32xf32>
    %18 = arith.addf %15, %17 : vector<128x32xf32>
    %19 = vector.broadcast %7 : vector<128x1xf32> to vector<128x32xf32>
    %20 = arith.mulf %18, %19 : vector<128x32xf32>
    %cst_11 = arith.constant 0.000000e+00 : f32
    %21 = vector.broadcast %cst_11 : f32 to vector<128x32xf32>
    %22 = arith.maximumf %20, %21 : vector<128x32xf32>
    %23 = arith.truncf %22 : vector<128x32xf32> to vector<128x32xbf16>
    %c0_12 = arith.constant 0 : index
    %c0_13 = arith.constant 0 : index
    %24 = vector.load %arg5[%c0_12, %c0_13] : memref<128x32xbf16, #tpu.memory_space<vmem>>, vector<128x32xbf16>
    tpu.vector_store %arg5[%c0_12, %c0_13], %23 {strides = array<i32>} : memref<128x32xbf16, #tpu.memory_space<vmem>>, vector<128x32xbf16>,
    return
  }
  func.func @transform_0(%arg0: i32) -> (i32, i32) {
    %c0_i32 = arith.constant 0 : i32
    %c0_i32_0 = arith.constant 0 : i32
    return %arg0, %c0_i32 : i32, i32
  }
  func.func @transform_1(%arg0: i32) -> (i32, i32) {
    %c0_i32 = arith.constant 0 : i32
    %c0_i32_0 = arith.constant 0 : i32
    return %arg0, %c0_i32 : i32, i32
  }
  func.func @transform_2(%arg0: i32) -> (i32, i32) {
    %c0_i32 = arith.constant 0 : i32
    %c0_i32_0 = arith.constant 0 : i32
    %c0_i32_1 = arith.constant 0 : i32
    return %c0_i32, %c0_i32_0 : i32, i32
  }
  func.func @transform_3(%arg0: i32) -> (i32, i32) {
    %c0_i32 = arith.constant 0 : i32
    %c0_i32_0 = arith.constant 0 : i32
    %c0_i32_1 = arith.constant 0 : i32
    return %c0_i32, %c0_i32_0 : i32, i32
  }
  func.func @transform_4(%arg0: i32) -> (i32, i32) {
    %c0_i32 = arith.constant 0 : i32
    %c0_i32_0 = arith.constant 0 : i32
    return %arg0, %c0_i32 : i32, i32
  }
}

module attributes {stable_mosaic.version = 11 : i64} {
  func.func @_pconv_col_kernel(%arg0: i32, %arg1: memref<288x256xbf16, #tpu.memory_space<vmem>>, %arg2: memref<1x256xf32, #tpu.memory_space<vmem>>, %arg3: memref<3x288xbf16, #tpu.memory_space<vmem>>, %arg4: memref<3x1xf32, #tpu.memory_space<vmem>>, %arg5: memref<3x256xf32, #tpu.memory_space<vmem>>) attributes {dimension_semantics = [#tpu.dimension_semantics<parallel>], iteration_bounds = array<i64: 2>, scalar_prefetch = 0 : i64, scratch_operands = 0 : i64, tpu.core_type = #tpu.core_type<tc>, window_params = [{transform_indices = @transform_0, window_bounds = array<i64: 288, 256>}, {transform_indices = @transform_1, window_bounds = array<i64: 1, 256>}, {pipeline_mode = #tpu.pipeline_mode<synchronous>, transform_indices = @transform_2, window_bounds = array<i64: 3, 288>}, {pipeline_mode = #tpu.pipeline_mode<synchronous>, transform_indices = @transform_3, window_bounds = array<i64: 3, 1>}, {transform_indices = @transform_4, window_bounds = array<i64: 3, 256>}]} {
    %c0 = arith.constant 0 : index
    %c0_0 = arith.constant 0 : index
    %0 = vector.load %arg3[%c0, %c0_0] : memref<3x288xbf16, #tpu.memory_space<vmem>>, vector<3x288xbf16>
    %c0_1 = arith.constant 0 : index
    %c0_2 = arith.constant 0 : index
    %1 = vector.load %arg1[%c0_1, %c0_2] : memref<288x256xbf16, #tpu.memory_space<vmem>>, vector<288x256xbf16>
    %cst = arith.constant dense<0.000000e+00> : vector<3x256xf32>
    %2 = tpu.matmul %0, %1, %cst {dimension_numbers = #tpu.dot_dimension_numbers<[1], [0], [0], [1], [0, 0, 1, 1], [], []>} : vector<3x288xbf16>, vector<288x256xbf16>, vector<3x256xf32> -> vector<3x256xf32>
    %c0_3 = arith.constant 0 : index
    %c0_4 = arith.constant 0 : index
    %3 = vector.load %arg2[%c0_3, %c0_4] : memref<1x256xf32, #tpu.memory_space<vmem>>, vector<1x256xf32>
    %cst_5 = arith.constant 0.000000e+00 : f32
    %cst_6 = arith.constant 1.000000e+00 : f32
    %4 = vector.broadcast %cst_5 : f32 to vector<1x256xf32>
    %5 = arith.maximumf %4, %3 : vector<1x256xf32>
    %6 = vector.broadcast %cst_6 : f32 to vector<1x256xf32>
    %7 = arith.minimumf %6, %5 : vector<1x256xf32>
    %cst_7 = arith.constant 9.99999993E-9 : f32
    %8 = vector.broadcast %cst_7 : f32 to vector<1x256xf32>
    %9 = arith.addf %3, %8 : vector<1x256xf32>
    %10 = tpu.reciprocal %9 {approx = true} : vector<1x256xf32> -> vector<1x256xf32>
    %cst_8 = arith.constant 2.880000e+02 : f32
    %11 = vector.broadcast %cst_8 : f32 to vector<1x256xf32>
    %12 = arith.mulf %11, %10 : vector<1x256xf32>
    %13 = arith.mulf %12, %7 : vector<1x256xf32>
    %14 = vector.broadcast %13 : vector<1x256xf32> to vector<3x256xf32>
    %15 = arith.mulf %2, %14 : vector<3x256xf32>
    %c0_9 = arith.constant 0 : index
    %c0_10 = arith.constant 0 : index
    %16 = vector.load %arg4[%c0_9, %c0_10] : memref<3x1xf32, #tpu.memory_space<vmem>>, vector<3x1xf32>
    %17 = vector.broadcast %16 : vector<3x1xf32> to vector<3x256xf32>
    %18 = arith.addf %15, %17 : vector<3x256xf32>
    %19 = vector.broadcast %7 : vector<1x256xf32> to vector<3x256xf32>
    %20 = arith.mulf %18, %19 : vector<3x256xf32>
    %21 = arith.negf %20 : vector<3x256xf32>
    %22 = math.exp %21 : vector<3x256xf32>
    %cst_11 = arith.constant 1.000000e+00 : f32
    %23 = vector.broadcast %cst_11 : f32 to vector<3x256xf32>
    %24 = arith.addf %23, %22 : vector<3x256xf32>
    %25 = arith.divf %23, %24 : vector<3x256xf32>
    %c0_12 = arith.constant 0 : index
    %c0_13 = arith.constant 0 : index
    %26 = vector.load %arg5[%c0_12, %c0_13] : memref<3x256xf32, #tpu.memory_space<vmem>>, vector<3x256xf32>
    tpu.vector_store %arg5[%c0_12, %c0_13], %25 {strides = array<i32>} : memref<3x256xf32, #tpu.memory_space<vmem>>, vector<3x256xf32>,
    return
  }
  func.func @transform_0(%arg0: i32) -> (i32, i32) {
    %c0_i32 = arith.constant 0 : i32
    %c0_i32_0 = arith.constant 0 : i32
    return %c0_i32, %arg0 : i32, i32
  }
  func.func @transform_1(%arg0: i32) -> (i32, i32) {
    %c0_i32 = arith.constant 0 : i32
    %c0_i32_0 = arith.constant 0 : i32
    return %c0_i32, %arg0 : i32, i32
  }
  func.func @transform_2(%arg0: i32) -> (i32, i32) {
    %c0_i32 = arith.constant 0 : i32
    %c0_i32_0 = arith.constant 0 : i32
    %c0_i32_1 = arith.constant 0 : i32
    return %c0_i32, %c0_i32_0 : i32, i32
  }
  func.func @transform_3(%arg0: i32) -> (i32, i32) {
    %c0_i32 = arith.constant 0 : i32
    %c0_i32_0 = arith.constant 0 : i32
    %c0_i32_1 = arith.constant 0 : i32
    return %c0_i32, %c0_i32_0 : i32, i32
  }
  func.func @transform_4(%arg0: i32) -> (i32, i32) {
    %c0_i32 = arith.constant 0 : i32
    %c0_i32_0 = arith.constant 0 : i32
    return %c0_i32, %arg0 : i32, i32
  }
}

</mosaic_0001>

<bundles_post_ra>
// kernel: partial_conv_autoencoder.8
= control target key start
LH: loop header
LB: loop body
LE: loop exit
PB: predicated region body
PF: predicated region fallthrough
CT: control target
= control target key end

     0   :  { %v785_v1 = vmov 0   ;;  %vm98_vm0 = vcmask 392192   ;;  %vm627_vm1 = vcmask 257024   ;;  %s1097_s2 = inlined_call_operand.vmem [shape: bf16[48,32], index: 2, kind: input, shape index: {}]   ;;  %s1098_s0 = inlined_call_operand.vmem [shape: bf16[128,48], index: 0, kind: input, shape index: {}]   ;;  %s1099_s1 = inlined_call_operand.vmem [shape: f32[128,1], index: 1, kind: input, shape index: {}]   ;;  %s1100_s3 = inlined_call_operand.vmem [shape: f32[1,32], index: 3, kind: input, shape index: {}]   ;;  %s1101_s4 = inlined_call_operand.vmem [shape: bf16[128,32], index: 4, kind: output, shape index: {}]  }
   0x1   :  { %v742_v0 = vld [vmem:[%s1097_s2 + $0x10] sm:$0xff]   ;;  %741 = vset.pattern.permute.xlu1 %v785_v1  ;;  %740 = vset.pattern.permute.xlu0 %v785_v1  ;;  %v743_v2 = vld [vmem:[%s1097_s2 + $0x8] sm:$0xff]   ;;  %v744_v3 = vld [vmem:[%s1097_s2] sm:$0xff]  }
   0x2   :  { %711 = vmatprep.subr.bf16.mxu0 %v742_v0  ;;  %733 = vmatprep.subr.bf16.mxu1 %v742_v0  ;;  %v745_v4 = vld [vmem:[%s1098_s0] sm:$0xff]   ;;  %v222_v6 = vld [vmem:[%s1099_s1 + $0x10] sm:$0xff]  ;;  %v747_v8 = vld [vmem:[%s1098_s0 + $0x8] sm:$0xff]  }
   0x3   :  { %712 = vmatpush3.bf16.msra.mxu0 %v742_v0  ;;  %736 = vmatpush3.bf16.msra.mxu1 %v742_v0  ;;  %v746_v5 = vld [vmem:[%s1098_s0 + $0x20] sm:$0xff]   ;;  %v270_v9 = vadd.f32 1e-08, %v222_v6  ;;  %v748_v11 = vld [vmem:[%s1098_s0 + $0x28] sm:$0xff]   ;;  %v749_v12 = vld [vmem:[%s1098_s0 + $0x10] sm:$0xff]   ;;  %v238_v27 = vmax.f32 %v222_v6, 0.0 }
   0x4   :  { %713 = vmatprep.subr.bf16.mxu0 %v743_v2  ;;  %734 = vmatprep.subr.bf16.mxu1 %v743_v2  ;;  %v220_v7 = vld [vmem:[%s1099_s1] sm:$0xff]  ;;  %v750_v13 = vld [vmem:[%s1098_s0 + $0x30] sm:$0xff]   ;;  %v223_v14 = vld [vmem:[%s1099_s1 + $0x18] sm:$0xff] }
   0x5   :  { %717 = vmatprep.mubr.msk.bf16.mxu0 %vm98_vm0, %v745_v4  ;;  %725 = vmatprep.mubr.msk.bf16.mxu1 %vm98_vm0, %v746_v5  ;;  %v268_v10 = vadd.f32 1e-08, %v220_v7  ;;  %753 = vrcp.f32 %v270_v9  ;;  %v271_v15 = vadd.f32 1e-08, %v223_v14  ;;  %v221_v16 = vld [vmem:[%s1099_s1 + $0x8] sm:$0xff]  ;;  %v858_v18 = vld [vmem:[%s1099_s1 + $0x20] sm:$0xff] }
   0x6   :  { %v225_v17 = vld [vmem:[%s1099_s1 + $0x28] sm:$0xff]  ;;  %v269_v19 = vadd.f32 1e-08, %v221_v16  ;;  %v272_v21 = vadd.f32 1e-08, %v858_v18  ;;  %v868_v22 = vld [vmem:[%s1099_s1 + $0x38] sm:$0xff] }
   0x7   :  { %714 = vmatpush3.bf16.msra.mxu0 %v743_v2  ;;  %737 = vmatpush3.bf16.msra.mxu1 %v743_v2  ;;  %755 = vrcp.f32 %v268_v10  ;;  %v273_v20 = vadd.f32 1e-08, %v225_v17  ;;  %v873_v23 = vld [vmem:[%s1099_s1 + $0x30] sm:$0xff]  ;;  %v878_v24 = vld [vmem:[%s1099_s1 + $0x48] sm:$0xff]  ;;  %v275_v25 = vadd.f32 1e-08, %v868_v22 }
   0x8   :  { %715 = vmatprep.subr.bf16.mxu0 %v744_v3  ;;  %735 = vmatprep.subr.bf16.mxu1 %v744_v3  ;;  %757 = vrcp.f32 %v271_v15  ;;  %v884_v26 = vld [vmem:[%s1099_s1 + $0x40] sm:$0xff]  ;;  %v751_v28 = vld [vmem:[%s1098_s0 + $0x18] sm:$0xff]   ;;  %v274_v30 = vadd.f32 1e-08, %v873_v23  ;;  %v236_v32 = vmax.f32 %v220_v7, 0.0  ;;  %v902_v34 = vld [vmem:[%s1099_s1 + $0x50] sm:$0xff] }
   0x9   :  { %759 = vrcp.f32 %v269_v19  ;;  %v752_v29 = vld [vmem:[%s1098_s0 + $0x38] sm:$0xff]   ;;  %v277_v33 = vadd.f32 1e-08, %v878_v24  ;;  %v276_v35 = vadd.f32 1e-08, %v884_v26  ;;  %v906_v37 = vmin.f32 %v238_v27, 1.0 }
   0xa   :  { %761 = vrcp.f32 %v273_v20  ;;  %v896_v31 = vld [vmem:[%s1099_s1 + $0x58] sm:$0xff]  ;;  %v278_v38 = vadd.f32 1e-08, %v902_v34  ;;  %v914_v39 = vld [vmem:[%s1099_s1 + $0x68] sm:$0xff]  ;;  %v916_v41 = vmin.f32 %v236_v32, 1.0  ;;  %v239_v42 = vmax.f32 %v223_v14, 0.0 }
   0xb   :  { %716 = vmatpush3.bf16.msra.mxu0 %v744_v3  ;;  %738 = vmatpush3.bf16.msra.mxu1 %v744_v3  ;;  %763 = vrcp.f32 %v272_v21  ;;  %v279_v36 = vadd.f32 1e-08, %v896_v31  ;;  %v921_v43 = vld [vmem:[%s1099_s1 + $0x60] sm:$0xff]  ;;  %v237_v46 = vmax.f32 %v221_v16, 0.0  ;;  %v241_v47 = vmax.f32 %v225_v17, 0.0  ;;  %v930_v53 = vld [vmem:[%s1099_s1 + $0x78] sm:$0xff] }
   0xc   :  { %765 = vrcp.f32 %v275_v25  ;;  %v281_v49 = vadd.f32 1e-08, %v914_v39  ;;  %v240_v51 = vmax.f32 %v858_v18, 0.0  ;;  %v280_v52 = vadd.f32 1e-08, %v921_v43  ;;  %v938_v56 = vld [vmem:[%s1099_s1 + $0x70] sm:$0xff] }
   0xd   :  { %767 = vrcp.f32 %v274_v30  ;;  %v933_v55 = vmin.f32 %v239_v42, 1.0  ;;  %v940_v58 = vmin.f32 %v237_v46, 1.0  ;;  %v942_v59 = vmin.f32 %v241_v47, 1.0 }
   0xe   :  { %718 = vmatmul.mubr.msk.bf16.vlgmr.msra.gmra.mxu0 %vm98_vm0, %v747_v8  ;;  %726 = vmatmul.mubr.msk.bf16.vlgmr.msra.gmra.mxu1 %vm98_vm0, %v748_v11  ;;  %769 = vrcp.f32 %v277_v33  ;;  %v243_v60 = vmax.f32 %v868_v22, 0.0  ;;  %v242_v63 = vmax.f32 %v873_v23, 0.0  ;;  %v283_v0 = vadd.f32 1e-08, %v930_v53 }
   0xf   :  { %721 = vmatprep.mubr.msk.bf16.mxu0 %vm98_vm0, %v749_v12  ;;  %729 = vmatprep.mubr.msk.bf16.mxu1 %vm98_vm0, %v750_v13  ;;  %771 = vrcp.f32 %v276_v35  ;;  %v947_v3 = vmin.f32 %v240_v51, 1.0  ;;  %v282_v4 = vadd.f32 1e-08, %v938_v56  ;;  %v245_v12 = vmax.f32 %v878_v24, 0.0 }
  0x10   :  { %773 = vrcp.f32 %v279_v36  ;;  %v952_v11 = vmin.f32 %v243_v60, 1.0  ;;  %v956_v16 = vmin.f32 %v242_v63, 1.0  ;;  %v244_v20 = vmax.f32 %v884_v26, 0.0 }
  0x11   :  { %775 = vrcp.f32 %v278_v38  ;;  %v261_v23 = vmin.f32 %v245_v12, 1.0  ;;  %v247_v25 = vmax.f32 %v896_v31, 0.0  ;;  %v246_v32 = vmax.f32 %v902_v34, 0.0 }
  0x12   :  { %v754_v40 = vpop.eup %753  ;;  %777 = vrcp.f32 %v281_v49  ;;  %v249_v38 = vmax.f32 %v914_v39, 0.0  ;;  %v251_v34 = vmax.f32 %v930_v53, 0.0  ;;  %v250_v39 = vmax.f32 %v938_v56, 0.0 }
  0x13   :  { %v302_v45 = vmul.f32 48.0, %v754_v40  ;;  %779 = vrcp.f32 %v280_v52  ;;  %v263_v35 = vmin.f32 %v247_v25, 1.0 }
  0x14   :  { %v756_v44 = vpop.eup %755  ;;  %781 = vrcp.f32 %v283_v0  ;;  %v266_v63 = vmin.f32 %v250_v39, 1.0 }
  0x15   :  { %v300_v48 = vmul.f32 48.0, %v756_v44  ;;  %v318_v50 = vmul.f32 %v302_v45, %v906_v37  ;;  %v758_v57 = vpop.eup %757  ;;  %783 = vrcp.f32 %v282_v4  ;;  %v262_v44 = vmin.f32 %v246_v32, 1.0 }
  0x16   :  { %722 = vmatmul.mubr.msk.bf16.gmra.mxu0 %vm98_vm0, %v751_v28  ;;  %730 = vmatmul.mubr.msk.bf16.gmra.mxu1 %vm98_vm0, %v752_v29  ;;  %v760_v61 = vpop.eup %759  ;;  %v303_v62 = vmul.f32 48.0, %v758_v57  ;;  %v260_v29 = vmin.f32 %v244_v20, 1.0  ;;  %v248_v45 = vmax.f32 %v921_v43, 0.0 }
  0x17   :  { %v316_v54 = vmul.f32 %v300_v48, %v916_v41  ;;  %344 = vperm.xlu1 %741, %v318_v50   ;;  %v762_v1 = vpop.eup %761  ;;  %v301_v2 = vmul.f32 48.0, %v760_v61  ;;  %v265_v48 = vmin.f32 %v249_v38, 1.0  ;;  %v267_v61 = vmin.f32 %v251_v34, 1.0 }
  0x18   :  { %v764_v5 = vpop.eup %763  ;;  %v319_v6 = vmul.f32 %v303_v62, %v933_v55  ;;  %v305_v7 = vmul.f32 48.0, %v762_v1  ;;  %v264_v52 = vmin.f32 %v248_v45, 1.0 }
  0x19   :  { %334 = vperm.xlu0 %740, %v316_v54   ;;  %v766_v8 = vpop.eup %765  ;;  %v317_v9 = vmul.f32 %v301_v2, %v940_v58  ;;  %v304_v10 = vmul.f32 48.0, %v764_v5 }
  0x1a   :  { %v768_v13 = vpop.eup %767  ;;  %v321_v14 = vmul.f32 %v305_v7, %v942_v59  ;;  %v307_v15 = vmul.f32 48.0, %v766_v8 }
  0x1b   :  { %349 = vperm.xlu1 %741, %v319_v6   ;;  %v770_v17 = vpop.eup %769  ;;  %v320_v18 = vmul.f32 %v304_v10, %v947_v3  ;;  %v306_v19 = vmul.f32 48.0, %v768_v13 }
  0x1c   :  { %v772_v21 = vpop.eup %771  ;;  %v323_v22 = vmul.f32 %v307_v15, %v952_v11  ;;  %v309_v24 = vmul.f32 48.0, %v770_v17 }
  0x1d   :  { %339 = vperm.xlu0 %740, %v317_v9   ;;  %v774_v27 = vpop.eup %773  ;;  %v322_v28 = vmul.f32 %v306_v19, %v956_v16  ;;  %v308_v30 = vmul.f32 48.0, %v772_v21 }
  0x1e   :  { %v776_v33 = vpop.eup %775  ;;  %v325_v26 = vmul.f32 %v309_v24, %v261_v23  ;;  %v311_v36 = vmul.f32 48.0, %v774_v27 }
  0x1f   :  { %359 = vperm.xlu1 %741, %v321_v14   ;;  %v778_v40 = vpop.eup %777  ;;  %v324_v42 = vmul.f32 %v308_v30, %v260_v29  ;;  %v310_v31 = vmul.f32 48.0, %v776_v33 }
  0x20   :  { %v780_v46 = vpop.eup %779  ;;  %v327_v47 = vmul.f32 %v311_v36, %v263_v35  ;;  %v313_v49 = vmul.f32 48.0, %v778_v40 }
  0x21   :  { %354 = vperm.xlu0 %740, %v320_v18   ;;  %v782_v50 = vpop.eup %781  ;;  %v326_v51 = vmul.f32 %v310_v31, %v262_v44  ;;  %v312_v54 = vmul.f32 48.0, %v780_v46 }
  0x22   :  { %v784_v57 = vpop.eup %783  ;;  %v329_v60 = vmul.f32 %v313_v49, %v265_v48  ;;  %v315_v62 = vmul.f32 48.0, %v782_v50 }
  0x23   :  { %369 = vperm.xlu1 %741, %v323_v22   ;;  %v328_v43 = vmul.f32 %v312_v54, %v264_v52  ;;  %v314_v0 = vmul.f32 48.0, %v784_v57  ;;  %v1003_v22 = vld [vmem:[%s1100_s3] ss:$0 sm:$0xff] }
  0x24   :  { %v331_v1 = vmul.f32 %v315_v62, %v267_v61 }
  0x25   :  { %364 = vperm.xlu0 %740, %v322_v28   ;;  %v330_v53 = vmul.f32 %v314_v0, %v266_v63 }
  0x27   :  { %379 = vperm.xlu1 %741, %v325_v26  }
  0x29   :  { %374 = vperm.xlu0 %740, %v324_v42  }
  0x2b   :  { %389 = vperm.xlu1 %741, %v327_v47  }
  0x2d   :  { %384 = vperm.xlu0 %740, %v326_v51  }
  0x2f   :  { %399 = vperm.xlu1 %741, %v329_v60  }
  0x31   :  { %394 = vperm.xlu0 %740, %v328_v43  }
  0x33   :  { %409 = vperm.xlu1 %741, %v331_v1  }
  0x35   :  { %404 = vperm.xlu0 %740, %v330_v53  }
  0x37   :  { %458 = vperm.xlu1 %741, %v940_v58  }
  0x39   :  { %453 = vperm.xlu0 %740, %v916_v41  }
  0x3b   :  { %468 = vperm.xlu1 %741, %v933_v55  }
  0x3d   :  { %463 = vperm.xlu0 %740, %v906_v37  }
  0x3f   :  { %478 = vperm.xlu1 %741, %v942_v59  }
  0x41   :  { %473 = vperm.xlu0 %740, %v947_v3  }
  0x43   :  { %488 = vperm.xlu1 %741, %v952_v11  }
  0x45   :  { %483 = vperm.xlu0 %740, %v956_v16  }
  0x47   :  { %498 = vperm.xlu1 %741, %v261_v23  }
  0x49   :  { %493 = vperm.xlu0 %740, %v260_v29  }
  0x4b   :  { %508 = vperm.xlu1 %741, %v263_v35  }
  0x4d   :  { %503 = vperm.xlu0 %740, %v262_v44  }
  0x4f   :  { %518 = vperm.xlu1 %741, %v265_v48  }
  0x51   :  { %513 = vperm.xlu0 %740, %v264_v52  }
  0x53   :  { %528 = vperm.xlu1 %741, %v267_v61  }
  0x55   :  { %523 = vperm.xlu0 %740, %v266_v63  }
  0x92   :  { %v345_v41 = vpop.permute.xlu1 %344 }
  0x94   :  { %v335_v55 = vpop.permute.xlu0 %334 }
  0x96   :  { %v350_v56 = vpop.permute.xlu1 %349 }
  0x98   :  { %v340_v37 = vpop.permute.xlu0 %339 }
  0x9a   :  { %v976_v58 = vpop.permute.xlu1 %359 }
  0x9c   :  { %v978_v59 = vpop.permute.xlu0 %354 }
  0x9e   :  { %v980_v2 = vpop.permute.xlu1 %369 }
  0xa0   :  { %v982_v3 = vpop.permute.xlu0 %364 }
  0xa2   :  { %v380_v4 = vpop.permute.xlu1 %379 }
  0xa4   :  { %v375_v5 = vpop.permute.xlu0 %374 }
  0xa6   :  { %v390_v6 = vpop.permute.xlu1 %389 }
  0xa8   :  { %v385_v7 = vpop.permute.xlu0 %384 }
  0xaa   :  { %v984_v8 = vpop.permute.xlu1 %399 }
  0xac   :  { %v986_v9 = vpop.permute.xlu0 %394 }
  0xae   :  { %v988_v10 = vpop.permute.xlu1 %409 }
  0xb0   :  { %v405_v11 = vpop.permute.xlu0 %404 }
  0xb2   :  { %v990_v12 = vpop.permute.xlu1 %458 }
  0xb4   :  { %v454_v13 = vpop.permute.xlu0 %453 }
  0xb6   :  { %v469_v14 = vpop.permute.xlu1 %468 }
  0xb8   :  { %v464_v15 = vpop.permute.xlu0 %463 }
  0xba   :  { %v994_v17 = vpop.permute.xlu1 %478 }
  0xbc   :  { %v992_v16 = vpop.permute.xlu0 %473 }
  0xbe   :  { %v998_v19 = vpop.permute.xlu1 %488 }
  0xc0   :  { %v996_v18 = vpop.permute.xlu0 %483 }
  0xc2   :  { %v499_v24 = vpop.permute.xlu1 %498 }
  0xc4   :  { %v494_v20 = vpop.permute.xlu0 %493 }
  0xc6   :  { %v509_v48 = vpop.permute.xlu1 %508 }
  0xc8   :  { %v504_v28 = vpop.permute.xlu0 %503 }
  0xcc   :  { %v514_v54 = vpop.permute.xlu0 %513 }
  0xce   :  { %v719_v21 = vpop.f32.mrf.mxu0  ;;  %v727_v23 = vpop.f32.mrf.mxu1 }
  0xcf   :  { %v414_v25 = vmul.f32 %v719_v21, %v345_v41  ;;  %v422_v27 = vmul.f32 %v727_v23, %v385_v7 }
  0xd0   :  { %v157_v29 = vpop.f32.mrf.mxu0  ;;  %v189_v26 = vpop.f32.mrf.mxu1 }
  0xd1   :  { %v437_v30 = vadd.f32 %v1003_v22, %v414_v25  ;;  %v445_v32 = vadd.f32 %v1003_v22, %v422_v27  ;;  %v412_v33 = vmul.f32 %v335_v55, %v157_v29  ;;  %v420_v35 = vmul.f32 %v375_v5, %v189_v26  ;;  %v519_v27 = vpop.permute.xlu1 %518 }
  0xd2   :  { %v720_v36 = vpop.f32.mrf.mxu0  ;;  %v728_v31 = vpop.f32.mrf.mxu1 }
  0xd3   :  { %v533_v38 = vmul.f32 %v464_v15, %v437_v30  ;;  %v541_v40 = vmul.f32 %v504_v28, %v445_v32  ;;  %v435_v42 = vadd.f32 %v1003_v22, %v412_v33  ;;  %v415_v44 = vmul.f32 %v720_v36, %v350_v56  ;;  %v524_v32 = vpop.permute.xlu0 %523 }
  0xd4   :  { %v443_v45 = vadd.f32 %v1003_v22, %v420_v35  ;;  %v423_v46 = vmul.f32 %v728_v31, %v390_v6  ;;  %v160_v47 = vpop.f32.mrf.mxu0  ;;  %v192_v52 = vpop.f32.mrf.mxu1 }
  0xd5   :  { %v549_v49 = vmax.f32 %v533_v38, 0.0  ;;  %v557_v34 = vmax.f32 %v541_v40, 0.0  ;;  %v531_v50 = vmul.f32 %v454_v13, %v435_v42  ;;  %v438_v51 = vadd.f32 %v1003_v22, %v415_v44 }
  0xd6   :  { %v539_v39 = vmul.f32 %v494_v20, %v443_v45  ;;  %v446_v57 = vadd.f32 %v1003_v22, %v423_v46  ;;  %v413_v60 = vmul.f32 %v340_v37, %v160_v47  ;;  %v421_v61 = vmul.f32 %v380_v4, %v192_v52  ;;  %v723_v62 = vpop.f32.mrf.mxu0  ;;  %v731_v53 = vpop.f32.mrf.mxu1 }
  0xd7   :  { %v686_v43 = vpack.c.bf16 %v549_v49, %v549_v49  ;;  %v694_v63 = vpack.c.bf16 %v557_v34, %v557_v34  ;;  %v547_v0 = vmax.f32 %v531_v50, 0.0  ;;  %v534_v1 = vmul.f32 %v469_v14, %v438_v51 }
  0xd8   :  { %v555_v41 = vmax.f32 %v539_v39, 0.0  ;;  %v542_v55 = vmul.f32 %v509_v48, %v446_v57  ;;  %v436_v56 = vadd.f32 %v1003_v22, %v413_v60  ;;  %v444_v5 = vadd.f32 %v1003_v22, %v421_v61  ;;  %v173_v6 = vpop.f32.mrf.mxu0  ;;  %v205_v14 = vpop.f32.mrf.mxu1 }
  0xd9   :  { %630 = vst.msk [vmem:[%s1101_s4 + $0x8] sm:$0xf] %vm627_vm1, %v686_v43  ;;  %638 = vst.msk [vmem:[%s1101_s4 + $0x28] sm:$0xf] %vm627_vm1, %v694_v63  ;;  %v684_v37 = vpack.c.bf16 %v547_v0, %v547_v0  ;;  %v550_v4 = vmax.f32 %v534_v1, 0.0  ;;  %v418_v7 = vmul.f32 %v723_v62, %v982_v3  ;;  %v426_v13 = vmul.f32 %v731_v53, %v405_v11 }
  0xda   :  { %v692_v15 = vpack.c.bf16 %v555_v41, %v555_v41  ;;  %v558_v20 = vmax.f32 %v542_v55, 0.0  ;;  %v532_v21 = vmul.f32 %v990_v12, %v436_v56  ;;  %v540_v23 = vmul.f32 %v499_v24, %v444_v5  ;;  %v724_v25 = vpop.f32.mrf.mxu0  ;;  %v732_v11 = vpop.f32.mrf.mxu1 }
  0xdb   :  { %628 = vst.msk [vmem:[%s1101_s4] sm:$0xf] %vm627_vm1, %v684_v37  ;;  %v687_v28 = vpack.c.bf16 %v550_v4, %v550_v4  ;;  %v441_v29 = vadd.f32 %v1003_v22, %v418_v7  ;;  %v449_v30 = vadd.f32 %v1003_v22, %v426_v13  ;;  %v416_v3 = vmul.f32 %v978_v59, %v173_v6 }
  0xdc   :  { %636 = vst.msk [vmem:[%s1101_s4 + $0x20] sm:$0xf] %vm627_vm1, %v692_v15  ;;  %v695_v12 = vpack.c.bf16 %v558_v20, %v558_v20  ;;  %v548_v24 = vmax.f32 %v532_v21, 0.0  ;;  %v556_v33 = vmax.f32 %v540_v23, 0.0  ;;  %v424_v26 = vmul.f32 %v986_v9, %v205_v14  ;;  %v176_v40 = vpop.f32.mrf.mxu0  ;;  %v208_v42 = vpop.f32.mrf.mxu1 }
  0xdd   :  { %631 = vst.msk [vmem:[%s1101_s4 + $0xc] sm:$0xf] %vm627_vm1, %v687_v28  ;;  %v537_v35 = vmul.f32 %v996_v18, %v441_v29  ;;  %v545_v59 = vmul.f32 %v524_v32, %v449_v30  ;;  %v439_v36 = vadd.f32 %v1003_v22, %v416_v3  ;;  %v419_v38 = vmul.f32 %v724_v25, %v980_v2 }
  0xde   :  { %639 = vst.msk [vmem:[%s1101_s4 + $0x2c] sm:$0xf] %vm627_vm1, %v695_v12  ;;  %v685_v9 = vpack.c.bf16 %v548_v24, %v548_v24  ;;  %v693_v44 = vpack.c.bf16 %v556_v33, %v556_v33  ;;  %v447_v31 = vadd.f32 %v1003_v22, %v424_v26  ;;  %v427_v45 = vmul.f32 %v732_v11, %v988_v10 }
  0xdf   :  { %v553_v46 = vmax.f32 %v537_v35, 0.0  ;;  %v561_v18 = vmax.f32 %v545_v59, 0.0  ;;  %v535_v47 = vmul.f32 %v992_v16, %v439_v36  ;;  %v442_v48 = vadd.f32 %v1003_v22, %v419_v38  ;;  %v529_v16 = vpop.permute.xlu1 %528 }
  0xe0   :  { %629 = vst.msk [vmem:[%s1101_s4 + $0x4] sm:$0xf] %vm627_vm1, %v685_v9  ;;  %637 = vst.msk [vmem:[%s1101_s4 + $0x24] sm:$0xf] %vm627_vm1, %v693_v44  ;;  %v543_v2 = vmul.f32 %v514_v54, %v447_v31  ;;  %v450_v49 = vadd.f32 %v1003_v22, %v427_v45  ;;  %v417_v10 = vmul.f32 %v976_v58, %v176_v40 }
  0xe1   :  { %v425_v34 = vmul.f32 %v984_v8, %v208_v42  ;;  %v690_v50 = vpack.c.bf16 %v553_v46, %v553_v46  ;;  %v698_v51 = vpack.c.bf16 %v561_v18, %v561_v18  ;;  %v551_v52 = vmax.f32 %v535_v47, 0.0 }
  0xe2   :  { %v538_v39 = vmul.f32 %v998_v19, %v442_v48  ;;  %v559_v57 = vmax.f32 %v543_v2, 0.0  ;;  %v546_v60 = vmul.f32 %v529_v16, %v450_v49  ;;  %v440_v61 = vadd.f32 %v1003_v22, %v417_v10 }
  0xe3   :  { %v448_v62 = vadd.f32 %v1003_v22, %v425_v34  ;;  %634 = vst.msk [vmem:[%s1101_s4 + $0x18] sm:$0xf] %vm627_vm1, %v690_v50  ;;  %642 = vst.msk [vmem:[%s1101_s4 + $0x38] sm:$0xf] %vm627_vm1, %v698_v51  ;;  %v688_v58 = vpack.c.bf16 %v551_v52, %v551_v52 }
  0xe4   :  { %v554_v8 = vmax.f32 %v538_v39, 0.0  ;;  %v696_v54 = vpack.c.bf16 %v559_v57, %v559_v57  ;;  %v562_v19 = vmax.f32 %v546_v60, 0.0  ;;  %v536_v43 = vmul.f32 %v994_v17, %v440_v61 }
  0xe5   :  { %v544_v63 = vmul.f32 %v519_v27, %v448_v62  ;;  %632 = vst.msk [vmem:[%s1101_s4 + $0x10] sm:$0xf] %vm627_vm1, %v688_v58 }
  0xe6   :  { %v691_v22 = vpack.c.bf16 %v554_v8, %v554_v8  ;;  %640 = vst.msk [vmem:[%s1101_s4 + $0x30] sm:$0xf] %vm627_vm1, %v696_v54  ;;  %v699_v0 = vpack.c.bf16 %v562_v19, %v562_v19  ;;  %v552_v1 = vmax.f32 %v536_v43, 0.0 }
  0xe7   :  { %v560_v53 = vmax.f32 %v544_v63, 0.0 }
  0xe8   :  { %635 = vst.msk [vmem:[%s1101_s4 + $0x1c] sm:$0xf] %vm627_vm1, %v691_v22  ;;  %643 = vst.msk [vmem:[%s1101_s4 + $0x3c] sm:$0xf] %vm627_vm1, %v699_v0  ;;  %v689_v17 = vpack.c.bf16 %v552_v1, %v552_v1 }
  0xe9   :  { %v697_v41 = vpack.c.bf16 %v560_v53, %v560_v53 }
  0xea   :  { %633 = vst.msk [vmem:[%s1101_s4 + $0x14] sm:$0xf] %vm627_vm1, %v689_v17 }
  0xeb   :  { %641 = vst.msk [vmem:[%s1101_s4 + $0x34] sm:$0xf] %vm627_vm1, %v697_v41 }

// kernel: partial_conv_autoencoder.9
= control target key start
LH: loop header
LB: loop body
LE: loop exit
PB: predicated region body
PF: predicated region fallthrough
CT: control target
= control target key end

     0   :  { %v696_v1 = vmov 0   ;;  %vm527_vm0 = vcmask 519168   ;;  %s873_s2 = inlined_call_operand.vmem [shape: bf16[512,64], index: 2, kind: input, shape index: {}]   ;;  %s874_s0 = inlined_call_operand.vmem [shape: bf16[32,512], index: 0, kind: input, shape index: {}]   ;;  %s875_s1 = inlined_call_operand.vmem [shape: f32[32,1], index: 1, kind: input, shape index: {}]   ;;  %s876_s3 = inlined_call_operand.vmem [shape: f32[1,64], index: 3, kind: input, shape index: {}]   ;;  %s877_s4 = inlined_call_operand.vmem [shape: bf16[32,64], index: 4, kind: output, shape index: {}]  }
   0x1   :  { %v644_v0 = vld [vmem:[%s873_s2 + $0x78] sm:$0xff]   ;;  %643 = vset.pattern.permute.xlu1 %v696_v1  ;;  %642 = vset.pattern.permute.xlu0 %v696_v1  ;;  %v648_v5 = vld [vmem:[%s873_s2 + $0x70] sm:$0xff]   ;;  %v652_v9 = vld [vmem:[%s873_s2 + $0x68] sm:$0xff]  }
   0x2   :  { %v645_v2 = vld [vmem:[%s873_s2 + $0xf8] sm:$0xff]   ;;  %585 = vmatprep.subr.bf16.mxu0 %v644_v0  ;;  %v649_v6 = vld [vmem:[%s873_s2 + $0xf0] sm:$0xff]   ;;  %v653_v10 = vld [vmem:[%s873_s2 + $0xe8] sm:$0xff]  }
   0x3   :  { %v646_v3 = vld [vmem:[%s873_s2 + $0x38] sm:$0xff]   ;;  %613 = vmatprep.subr.bf16.mxu1 %v645_v2  ;;  %v650_v7 = vld [vmem:[%s873_s2 + $0x30] sm:$0xff]   ;;  %v654_v11 = vld [vmem:[%s873_s2 + $0x28] sm:$0xff]  }
   0x4   :  { %v647_v4 = vld [vmem:[%s873_s2 + $0xb8] sm:$0xff]   ;;  %586 = vmatpush3.bf16.msra.mxu0 %v646_v3  ;;  %v651_v8 = vld [vmem:[%s873_s2 + $0xb0] sm:$0xff]   ;;  %v655_v12 = vld [vmem:[%s873_s2 + $0xa8] sm:$0xff]  }
   0x5   :  { %614 = vmatpush3.bf16.msra.mxu1 %v647_v4  ;;  %587 = vmatprep.subr.bf16.mxu0 %v648_v5  ;;  %v656_v13 = vld [vmem:[%s873_s2 + $0x60] sm:$0xff]   ;;  %v660_v17 = vld [vmem:[%s873_s2 + $0x58] sm:$0xff]   ;;  %v664_v21 = vld [vmem:[%s873_s2 + $0x50] sm:$0xff]  }
   0x6   :  { %615 = vmatprep.subr.bf16.mxu1 %v649_v6  ;;  %v657_v14 = vld [vmem:[%s873_s2 + $0xe0] sm:$0xff]   ;;  %v661_v18 = vld [vmem:[%s873_s2 + $0xd8] sm:$0xff]   ;;  %v665_v22 = vld [vmem:[%s873_s2 + $0xd0] sm:$0xff]  }
   0x7   :  { %v658_v15 = vld [vmem:[%s873_s2 + $0x20] sm:$0xff]   ;;  %v662_v19 = vld [vmem:[%s873_s2 + $0x18] sm:$0xff]   ;;  %v666_v23 = vld [vmem:[%s873_s2 + $0x10] sm:$0xff]  }
   0x8   :  { %588 = vmatpush3.bf16.msra.mxu0 %v650_v7  ;;  %v659_v16 = vld [vmem:[%s873_s2 + $0xa0] sm:$0xff]   ;;  %v663_v20 = vld [vmem:[%s873_s2 + $0x98] sm:$0xff]   ;;  %v667_v24 = vld [vmem:[%s873_s2 + $0x90] sm:$0xff]  }
   0x9   :  { %616 = vmatpush3.bf16.msra.mxu1 %v651_v8  ;;  %589 = vmatprep.subr.bf16.mxu0 %v652_v9  ;;  %v668_v25 = vld [vmem:[%s873_s2 + $0x48] sm:$0xff]   ;;  %v672_v29 = vld [vmem:[%s873_s2 + $0x40] sm:$0xff]   ;;  %v422_v45 = vld [vmem:[%s875_s1 + $0x10] sm:$0xff] }
   0xa   :  { %617 = vmatprep.subr.bf16.mxu1 %v653_v10  ;;  %v669_v26 = vld [vmem:[%s873_s2 + $0xc8] sm:$0xff]   ;;  %v673_v30 = vld [vmem:[%s873_s2 + $0xc0] sm:$0xff]   ;;  %v423_v46 = vld [vmem:[%s875_s1 + $0x18] sm:$0xff]  ;;  %v434_v51 = vadd.f32 1e-08, %v422_v45  ;;  %v426_v53 = vmax.f32 %v422_v45, 0.0 }
   0xb   :  { %v670_v27 = vld [vmem:[%s873_s2 + $0x8] sm:$0xff]   ;;  %v674_v31 = vld [vmem:[%s873_s2] sm:$0xff]   ;;  %v435_v52 = vadd.f32 1e-08, %v423_v46  ;;  %v427_v55 = vmax.f32 %v423_v46, 0.0 }
   0xc   :  { %590 = vmatpush3.bf16.msra.mxu0 %v654_v11  ;;  %v671_v28 = vld [vmem:[%s873_s2 + $0x88] sm:$0xff]   ;;  %v675_v32 = vld [vmem:[%s873_s2 + $0x80] sm:$0xff]   ;;  %v430_v59 = vmin.f32 %v426_v53, 1.0 }
   0xd   :  { %618 = vmatpush3.bf16.msra.mxu1 %v655_v12  ;;  %591 = vmatprep.subr.bf16.mxu0 %v656_v13  ;;  %v676_v33 = vld [vmem:[%s874_s0] ss:$16 sps:$4 sm:$0xff]   ;;  %v678_v34 = vld [vmem:[%s874_s0 + $0x4] ss:$16 sps:$4 sm:$0xff]   ;;  %v679_v35 = vld [vmem:[%s874_s0 + $0x8] ss:$16 sps:$4 sm:$0xff]  }
   0xe   :  { %619 = vmatprep.subr.bf16.mxu1 %v657_v14  ;;  %v681_v36 = vld [vmem:[%s874_s0 + $0xc] ss:$16 sps:$4 sm:$0xff]   ;;  %354 = vmatprep.mubr.bf16.mxu0 %v678_v34  ;;  %v682_v37 = vld [vmem:[%s874_s0 + $0x24] ss:$16 sps:$4 sm:$0xff]   ;;  %v686_v47 = vld [vmem:[%s874_s0 + $0x20] ss:$16 sps:$4 sm:$0xff]  }
   0xf   :  { %403 = vmatprep.mubr.bf16.mxu1 %v681_v36  ;;  %v684_v38 = vld [vmem:[%s874_s0 + $0x2c] ss:$16 sps:$4 sm:$0xff]   ;;  %v420_v40 = vld [vmem:[%s875_s1] sm:$0xff]  ;;  %v687_v50 = vld [vmem:[%s874_s0 + $0x28] ss:$16 sps:$4 sm:$0xff]   ;;  %v431_v0 = vmin.f32 %v427_v55, 1.0 }
  0x10   :  { %592 = vmatpush3.bf16.msra.mxu0 %v658_v15  ;;  %v421_v39 = vld [vmem:[%s875_s1 + $0x8] sm:$0xff]  ;;  %v424_v43 = vmax.f32 %v420_v40, 0.0  ;;  %v432_v44 = vadd.f32 1e-08, %v420_v40 }
  0x11   :  { %620 = vmatpush3.bf16.msra.mxu1 %v659_v16  ;;  %593 = vmatprep.subr.bf16.mxu0 %v660_v17  ;;  %v425_v41 = vmax.f32 %v421_v39, 0.0  ;;  %v433_v42 = vadd.f32 1e-08, %v421_v39 }
  0x12   :  { %621 = vmatprep.subr.bf16.mxu1 %v661_v18  ;;  %v428_v49 = vmin.f32 %v424_v43, 1.0  ;;  %v576_v18 = vld [vmem:[%s876_s3] ss:$0 sm:$0xff] }
  0x13   :  { %v429_v48 = vmin.f32 %v425_v41, 1.0  ;;  %688 = vrcp.f32 %v433_v42 }
  0x14   :  { %594 = vmatpush3.bf16.msra.mxu0 %v662_v19  ;;  %690 = vrcp.f32 %v432_v44  ;;  %485 = vperm.xlu0 %642, %v428_v49  }
  0x15   :  { %622 = vmatpush3.bf16.msra.mxu1 %v663_v20  ;;  %595 = vmatprep.subr.bf16.mxu0 %v664_v21  ;;  %692 = vrcp.f32 %v434_v51 }
  0x16   :  { %623 = vmatprep.subr.bf16.mxu1 %v665_v22  ;;  %490 = vperm.xlu1 %643, %v429_v48   ;;  %694 = vrcp.f32 %v435_v52 }
  0x18   :  { %596 = vmatpush3.bf16.msra.mxu0 %v666_v23 }
  0x19   :  { %624 = vmatpush3.bf16.msra.mxu1 %v667_v24  ;;  %597 = vmatprep.subr.bf16.mxu0 %v668_v25 }
  0x1a   :  { %625 = vmatprep.subr.bf16.mxu1 %v669_v26 }
  0x1c   :  { %598 = vmatpush3.bf16.msra.mxu0 %v670_v27 }
  0x1d   :  { %626 = vmatpush3.bf16.msra.mxu1 %v671_v28  ;;  %599 = vmatprep.subr.bf16.mxu0 %v672_v29 }
  0x1e   :  { %627 = vmatprep.subr.bf16.mxu1 %v673_v30 }
  0x20   :  { %600 = vmatpush3.bf16.msra.mxu0 %v674_v31  ;;  %v689_v54 = vpop.eup %688 }
  0x21   :  { %628 = vmatpush3.bf16.msra.mxu1 %v675_v32  ;;  %v691_v56 = vpop.eup %690  ;;  %v441_v57 = vmul.f32 512.0, %v689_v54 }
  0x22   :  { %v440_v58 = vmul.f32 512.0, %v691_v56  ;;  %v693_v60 = vpop.eup %692 }
  0x23   :  { %355 = vmatmul.mubr.bf16.vlgmr.msra.gmra.mxu0 %v676_v33  ;;  %v695_v61 = vpop.eup %694  ;;  %v442_v63 = vmul.f32 512.0, %v693_v60  ;;  %v445_v2 = vmul.f32 %v441_v57, %v429_v48 }
  0x24   :  { %404 = vmatmul.mubr.bf16.vlgmr.msra.gmra.mxu1 %v679_v35  ;;  %362 = vmatprep.mubr.bf16.mxu0 %v682_v37  ;;  %v444_v62 = vmul.f32 %v440_v58, %v428_v49  ;;  %v443_v1 = vmul.f32 512.0, %v695_v61 }
  0x25   :  { %411 = vmatprep.mubr.bf16.mxu1 %v684_v38  ;;  %v446_v3 = vmul.f32 %v442_v63, %v430_v59 }
  0x26   :  { %450 = vperm.xlu0 %642, %v444_v62   ;;  %v447_v4 = vmul.f32 %v443_v1, %v431_v0 }
  0x27   :  { %460 = vperm.xlu1 %643, %v446_v3  }
  0x2a   :  { %455 = vperm.xlu0 %642, %v445_v2  }
  0x2b   :  { %363 = vmatmul.mubr.bf16.gmra.mxu0 %v686_v47  ;;  %465 = vperm.xlu1 %643, %v447_v4  }
  0x2c   :  { %412 = vmatmul.mubr.bf16.gmra.mxu1 %v687_v50 }
  0x2e   :  { %495 = vperm.xlu0 %642, %v430_v59  }
  0x2f   :  { %500 = vperm.xlu1 %643, %v431_v0  }
  0x8f   :  { %v486_v5 = vpop.permute.xlu0 %485 }
  0x91   :  { %v491_v11 = vpop.permute.xlu1 %490 }
  0xa1   :  { %v451_v14 = vpop.permute.xlu0 %450 }
  0xa2   :  { %v461_v25 = vpop.permute.xlu1 %460 }
  0xa5   :  { %v456_v29 = vpop.permute.xlu0 %455 }
  0xa6   :  { %v466_v47 = vpop.permute.xlu1 %465 }
  0xa9   :  { %v496_v51 = vpop.permute.xlu0 %495 }
  0xaa   :  { %v501_v57 = vpop.permute.xlu1 %500 }
  0xe3   :  { %v601_v6 = vpop.f32.mrf.mxu0 }
  0xe4   :  { %v629_v7 = vpop.f32.mrf.mxu1 }
  0xe5   :  { %v602_v8 = vpop.f32.mrf.mxu0 }
  0xe6   :  { %v603_v9 = vadd.f32 %v602_v8, %v601_v6  ;;  %v630_v10 = vpop.f32.mrf.mxu1 }
  0xe7   :  { %v631_v12 = vadd.f32 %v630_v10, %v629_v7  ;;  %v604_v13 = vpop.f32.mrf.mxu0 }
  0xe8   :  { %v632_v15 = vpop.f32.mrf.mxu1 }
  0xe9   :  { %v406_v16 = vadd.f32 %v631_v12, %v603_v9  ;;  %v605_v17 = vpop.f32.mrf.mxu0 }
  0xea   :  { %v606_v19 = vadd.f32 %v605_v17, %v604_v13  ;;  %v633_v20 = vpop.f32.mrf.mxu1 }
  0xeb   :  { %v468_v21 = vmul.f32 %v451_v14, %v406_v16  ;;  %v634_v22 = vadd.f32 %v633_v20, %v632_v15  ;;  %v607_v23 = vpop.f32.mrf.mxu0 }
  0xec   :  { %v635_v24 = vpop.f32.mrf.mxu1 }
  0xed   :  { %v479_v26 = vadd.f32 %v576_v18, %v468_v21  ;;  %v409_v27 = vadd.f32 %v634_v22, %v606_v19  ;;  %v608_v28 = vpop.f32.mrf.mxu0 }
  0xee   :  { %v609_v30 = vadd.f32 %v608_v28, %v607_v23  ;;  %v636_v31 = vpop.f32.mrf.mxu1 }
  0xef   :  { %v503_v32 = vmul.f32 %v486_v5, %v479_v26  ;;  %v469_v33 = vmul.f32 %v456_v29, %v409_v27  ;;  %v637_v34 = vadd.f32 %v636_v31, %v635_v24  ;;  %v610_v35 = vpop.f32.mrf.mxu0 }
  0xf0   :  { %v638_v36 = vpop.f32.mrf.mxu1 }
  0xf1   :  { %v507_v37 = vmax.f32 %v503_v32, 0.0  ;;  %v480_v38 = vadd.f32 %v576_v18, %v469_v33  ;;  %v414_v39 = vadd.f32 %v637_v34, %v609_v30  ;;  %v611_v40 = vpop.f32.mrf.mxu0 }
  0xf2   :  { %v612_v41 = vadd.f32 %v611_v40, %v610_v35  ;;  %v639_v42 = vpop.f32.mrf.mxu1 }
  0xf3   :  { %v581_v43 = vpack.c.bf16 %v507_v37, %v507_v37  ;;  %v504_v44 = vmul.f32 %v491_v11, %v480_v38  ;;  %v470_v45 = vmul.f32 %v461_v25, %v414_v39  ;;  %v640_v46 = vadd.f32 %v639_v42, %v638_v36 }
  0xf5   :  { %528 = vst.msk [vmem:[%s877_s4] sm:$0xf] %vm527_vm0, %v581_v43  ;;  %v508_v48 = vmax.f32 %v504_v44, 0.0  ;;  %v481_v49 = vadd.f32 %v576_v18, %v470_v45  ;;  %v417_v50 = vadd.f32 %v640_v46, %v612_v41 }
  0xf7   :  { %v582_v52 = vpack.c.bf16 %v508_v48, %v508_v48  ;;  %v505_v53 = vmul.f32 %v496_v51, %v481_v49  ;;  %v471_v54 = vmul.f32 %v466_v47, %v417_v50 }
  0xf9   :  { %529 = vst.msk [vmem:[%s877_s4 + $0x4] sm:$0xf] %vm527_vm0, %v582_v52  ;;  %v509_v55 = vmax.f32 %v505_v53, 0.0  ;;  %v482_v56 = vadd.f32 %v576_v18, %v471_v54 }
  0xfb   :  { %v583_v58 = vpack.c.bf16 %v509_v55, %v509_v55  ;;  %v506_v59 = vmul.f32 %v501_v57, %v482_v56 }
  0xfd   :  { %530 = vst.msk [vmem:[%s877_s4 + $0x8] sm:$0xf] %vm527_vm0, %v583_v58  ;;  %v510_v60 = vmax.f32 %v506_v59, 0.0 }
  0xff   :  { %v584_v61 = vpack.c.bf16 %v510_v60, %v510_v60 }
 0x101   :  { %531 = vst.msk [vmem:[%s877_s4 + $0xc] sm:$0xf] %vm527_vm0, %v584_v61 }

// kernel: partial_conv_autoencoder.13
= control target key start
LH: loop header
LB: loop body
LE: loop exit
PB: predicated region body
PF: predicated region fallthrough
CT: control target
= control target key end

     0   :  { %s1542_s0 = inlined_call_operand.vmem [shape: f32[16,1], index: 0, kind: input, shape index: {}]   ;;  %s1543_s1 = inlined_call_operand.vmem [shape: bf16[1024,128], index: 1, kind: input, shape index: {}]   ;;  %s1544_s2 = inlined_call_operand.vmem [shape: f32[1,128], index: 2, kind: input, shape index: {}]   ;;  %s1545_s3 = inlined_call_operand.vmem [shape: bf16[8,1024], index: 3, kind: input, shape index: {}]   ;;  %s1546_s4 = inlined_call_operand.<no memory space> [shape: bf16[], index: 4, kind: input, shape index: {}]   ;;  %s1547_s5 = inlined_call_operand.vmem [shape: bf16[16,128], index: 5, kind: output, shape index: {}]  }
   0x1   :  { %v10_v0 = vstv %s1546_s4 }
   0x2   :  { %v11_v1 = vunpack.i.l.bf16 %v10_v0 }
   0x3   :  { %v1211_v2 = vld [vmem:[%s1543_s1 + $0x78] sm:$0xff]   ;;  %v1282_v5 = vmov 0   ;;  %v1215_v8 = vld [vmem:[%s1543_s1 + $0x70] sm:$0xff]   ;;  %v1219_v12 = vld [vmem:[%s1543_s1 + $0x68] sm:$0xff]  }
   0x4   :  { %v1319_v3 = vpack.c.bf16 %v11_v1, %v11_v1  ;;  %v1212_v4 = vld [vmem:[%s1543_s1 + $0xf8] sm:$0xff]   ;;  %1209 = vset.pattern.permute.xlu0 %v1282_v5  ;;  %1210 = vset.pattern.permute.xlu1 %v1282_v5  ;;  %v1216_v9 = vld [vmem:[%s1543_s1 + $0xf0] sm:$0xff]   ;;  %v1220_v13 = vld [vmem:[%s1543_s1 + $0xe8] sm:$0xff]  }
   0x5   :  { %1120 = vmatprep.subr.bf16.mxu0 %v1211_v2  ;;  %v1213_v6 = vld [vmem:[%s1543_s1 + $0x38] sm:$0xff]   ;;  %1142 = vmatprep.subr.bf16.mxu1 %v1212_v4  ;;  %v1217_v10 = vld [vmem:[%s1543_s1 + $0x30] sm:$0xff]   ;;  %v1221_v14 = vld [vmem:[%s1543_s1 + $0x28] sm:$0xff]  }
   0x6   :  { %v1214_v7 = vld [vmem:[%s1543_s1 + $0xb8] sm:$0xff]   ;;  %1121 = vmatpush3.bf16.msra.mxu0 %v1213_v6  ;;  %v1218_v11 = vld [vmem:[%s1543_s1 + $0xb0] sm:$0xff]   ;;  %v1222_v15 = vld [vmem:[%s1543_s1 + $0xa8] sm:$0xff]  }
   0x7   :  { %1143 = vmatpush3.bf16.msra.mxu1 %v1214_v7  ;;  %1122 = vmatprep.subr.bf16.mxu0 %v1215_v8  ;;  %v1223_v16 = vld [vmem:[%s1543_s1 + $0x60] sm:$0xff]   ;;  %v1227_v20 = vld [vmem:[%s1543_s1 + $0x58] sm:$0xff]   ;;  %v1231_v24 = vld [vmem:[%s1543_s1 + $0x50] sm:$0xff]  }
   0x8   :  { %1144 = vmatprep.subr.bf16.mxu1 %v1216_v9  ;;  %v1224_v17 = vld [vmem:[%s1543_s1 + $0xe0] sm:$0xff]   ;;  %v1228_v21 = vld [vmem:[%s1543_s1 + $0xd8] sm:$0xff]   ;;  %v1232_v25 = vld [vmem:[%s1543_s1 + $0xd0] sm:$0xff]  }
   0x9   :  { %v1225_v18 = vld [vmem:[%s1543_s1 + $0x20] sm:$0xff]   ;;  %v1229_v22 = vld [vmem:[%s1543_s1 + $0x18] sm:$0xff]   ;;  %v1233_v26 = vld [vmem:[%s1543_s1 + $0x10] sm:$0xff]  }
   0xa   :  { %1123 = vmatpush3.bf16.msra.mxu0 %v1217_v10  ;;  %v1226_v19 = vld [vmem:[%s1543_s1 + $0xa0] sm:$0xff]   ;;  %v1230_v23 = vld [vmem:[%s1543_s1 + $0x98] sm:$0xff]   ;;  %v1234_v27 = vld [vmem:[%s1543_s1 + $0x90] sm:$0xff]  }
   0xb   :  { %1145 = vmatpush3.bf16.msra.mxu1 %v1218_v11  ;;  %1124 = vmatprep.subr.bf16.mxu0 %v1219_v12  ;;  %v1235_v28 = vld [vmem:[%s1543_s1 + $0x48] sm:$0xff]   ;;  %v1239_v32 = vld [vmem:[%s1543_s1 + $0x40] sm:$0xff]   ;;  %v1244_v38 = vld [vmem:[%s1543_s1 + $0x178] sm:$0xff]  }
   0xc   :  { %1146 = vmatprep.subr.bf16.mxu1 %v1220_v13  ;;  %v1236_v29 = vld [vmem:[%s1543_s1 + $0xc8] sm:$0xff]   ;;  %v1240_v33 = vld [vmem:[%s1543_s1 + $0xc0] sm:$0xff]   ;;  %v1245_v41 = vld [vmem:[%s1543_s1 + $0x1f8] sm:$0xff]  }
   0xd   :  { %v1237_v30 = vld [vmem:[%s1543_s1 + $0x8] sm:$0xff]   ;;  %v1241_v34 = vld [vmem:[%s1543_s1] sm:$0xff]   ;;  %v1247_v42 = vld [vmem:[%s1543_s1 + $0x1b8] sm:$0xff]  }
   0xe   :  { %1125 = vmatpush3.bf16.msra.mxu0 %v1221_v14  ;;  %v1238_v31 = vld [vmem:[%s1543_s1 + $0x88] sm:$0xff]   ;;  %v1242_v35 = vld [vmem:[%s1543_s1 + $0x80] sm:$0xff]   ;;  %v1249_v43 = vld [vmem:[%s1543_s1 + $0x1f0] sm:$0xff]  }
   0xf   :  { %1147 = vmatpush3.bf16.msra.mxu1 %v1222_v15  ;;  %1126 = vmatprep.subr.bf16.mxu0 %v1223_v16  ;;  %v32_v36 = vld [vmem:[%s1545_s3] sm:$0xff]   ;;  %v1243_v37 = vld [vmem:[%s1545_s3 + $0x8] sm:$0xff]   ;;  %v1246_v45 = vld [vmem:[%s1543_s1 + $0x138] sm:$0xff]  }
  0x10   :  { %1148 = vmatprep.subr.bf16.mxu1 %v1224_v17  ;;  %38 = vst [vmem:[#allocation7] sm:$0xff] %v32_v36   ;;  %v1002_v39 = vcombine.low %v1243_v37, %v1319_v3  ;;  %v1003_v40 = vcombine.high %v1243_v37, %v1319_v3  ;;  %v1251_v48 = vld [vmem:[%s1543_s1 + $0x1b0] sm:$0xff]   ;;  %v1253_v50 = vld [vmem:[%s1543_s1 + $0x1e8] sm:$0xff]   ;;  %v1257_v54 = vld [vmem:[%s1543_s1 + $0x1e0] sm:$0xff]  }
  0x11   :  { %v1248_v49 = vld [vmem:[%s1543_s1 + $0x170] sm:$0xff]   ;;  %v1255_v52 = vld [vmem:[%s1543_s1 + $0x1a8] sm:$0xff]   ;;  %v1259_v56 = vld [vmem:[%s1543_s1 + $0x1a0] sm:$0xff]  }
  0x12   :  { %1127 = vmatpush3.bf16.msra.mxu0 %v1225_v18  ;;  %839 = vmatprep.mubr.bf16.mxu1 %v1003_v40  ;;  %v1250_v51 = vld [vmem:[%s1543_s1 + $0x130] sm:$0xff]   ;;  %v1252_v53 = vld [vmem:[%s1543_s1 + $0x168] sm:$0xff]   ;;  %v1256_v57 = vld [vmem:[%s1543_s1 + $0x160] sm:$0xff]  }
  0x13   :  { %1149 = vmatpush3.bf16.msra.mxu1 %v1226_v19  ;;  %1128 = vmatprep.subr.bf16.mxu0 %v1227_v20  ;;  %v1254_v55 = vld [vmem:[%s1543_s1 + $0x128] sm:$0xff]   ;;  %v1261_v58 = vld [vmem:[%s1543_s1 + $0x1d8] sm:$0xff]   ;;  %v1258_v59 = vld [vmem:[%s1543_s1 + $0x120] sm:$0xff]  }
  0x14   :  { %1150 = vmatprep.subr.bf16.mxu1 %v1228_v21  ;;  %v1263_v60 = vld [vmem:[%s1543_s1 + $0x198] sm:$0xff]   ;;  %v1265_v62 = vld [vmem:[%s1543_s1 + $0x1d0] sm:$0xff]   ;;  %v1269_v2 = vld [vmem:[%s1543_s1 + $0x1c8] sm:$0xff]  }
  0x15   :  { %v1260_v61 = vld [vmem:[%s1543_s1 + $0x158] sm:$0xff]   ;;  %v1267_v0 = vld [vmem:[%s1543_s1 + $0x190] sm:$0xff]   ;;  %v1271_v5 = vld [vmem:[%s1543_s1 + $0x188] sm:$0xff]  }
  0x16   :  { %1129 = vmatpush3.bf16.msra.mxu0 %v1229_v22  ;;  %v1262_v63 = vld [vmem:[%s1543_s1 + $0x118] sm:$0xff]   ;;  %v1264_v1 = vld [vmem:[%s1543_s1 + $0x150] sm:$0xff]   ;;  %v1268_v6 = vld [vmem:[%s1543_s1 + $0x148] sm:$0xff]  }
  0x17   :  { %1151 = vmatpush3.bf16.msra.mxu1 %v1230_v23  ;;  %1130 = vmatprep.subr.bf16.mxu0 %v1231_v24  ;;  %v206_v44 = vld [vmem:[#allocation7] sm:$0xff]  ;;  %v1266_v4 = vld [vmem:[%s1543_s1 + $0x110] sm:$0xff]   ;;  %v1270_v7 = vld [vmem:[%s1543_s1 + $0x108] sm:$0xff]  }
  0x18   :  { %1152 = vmatprep.subr.bf16.mxu1 %v1232_v25  ;;  %v1000_v46 = vcombine.low %v206_v44, %v1319_v3  ;;  %v1001_v47 = vcombine.high %v206_v44, %v1319_v3  ;;  %v1273_v8 = vld [vmem:[%s1543_s1 + $0x1c0] sm:$0xff]   ;;  %v1276_v11 = vld [vmem:[%s1545_s3 + $0x10] sm:$0xff]   ;;  %v1277_v12 = vld [vmem:[%s1545_s3 + $0x18] sm:$0xff]  }
  0x19   :  { %v1272_v9 = vld [vmem:[%s1543_s1 + $0x140] sm:$0xff]   ;;  %v1005_v14 = vcombine.high %v1276_v11, %v1319_v3  ;;  %v931_v17 = vld [vmem:[%s1542_s0 + $0x8] sm:$0xff]  ;;  %v1006_v19 = vcombine.low %v1277_v12, %v1319_v3  ;;  %v1007_v20 = vcombine.high %v1277_v12, %v1319_v3  ;;  %v1004_v24 = vcombine.low %v1276_v11, %v1319_v3 }
  0x1a   :  { %1131 = vmatpush3.bf16.msra.mxu0 %v1233_v26  ;;  %798 = vmatprep.mubr.bf16.mxu0 %v1001_v47  ;;  %v1275_v10 = vld [vmem:[%s1543_s1 + $0x180] sm:$0xff]   ;;  %v937_v21 = vadd.f32 1e-08, %v931_v17  ;;  %v933_v23 = vmax.f32 %v931_v17, 0.0 }
  0x1b   :  { %1153 = vmatpush3.bf16.msra.mxu1 %v1234_v27  ;;  %1132 = vmatprep.subr.bf16.mxu0 %v1235_v28  ;;  %v930_v13 = vld [vmem:[%s1542_s0] sm:$0xff] }
  0x1c   :  { %1154 = vmatprep.subr.bf16.mxu1 %v1236_v29  ;;  %v932_v15 = vmax.f32 %v930_v13, 0.0  ;;  %v936_v16 = vadd.f32 1e-08, %v930_v13  ;;  %v1274_v18 = vld [vmem:[%s1543_s1 + $0x100] sm:$0xff]   ;;  %v935_v25 = vmin.f32 %v933_v23, 1.0 }
  0x1e   :  { %1133 = vmatpush3.bf16.msra.mxu0 %v1237_v30  ;;  %v934_v22 = vmin.f32 %v932_v15, 1.0  ;;  %1278 = vrcp.f32 %v936_v16 }
  0x1f   :  { %1155 = vmatpush3.bf16.msra.mxu1 %v1238_v31  ;;  %1134 = vmatprep.subr.bf16.mxu0 %v1239_v32  ;;  %1280 = vrcp.f32 %v937_v21 }
  0x20   :  { %1156 = vmatprep.subr.bf16.mxu1 %v1240_v33  ;;  %967 = vperm.xlu1 %1210, %v934_v22  }
  0x22   :  { %1135 = vmatpush3.bf16.msra.mxu0 %v1241_v34 }
  0x23   :  { %1157 = vmatpush3.bf16.msra.mxu1 %v1242_v35  ;;  %1164 = vmatprep.subr.bf16.mxu0 %v1244_v38 }
  0x24   :  { %1186 = vmatprep.subr.bf16.mxu1 %v1245_v41  ;;  %972 = vperm.xlu1 %1210, %v935_v25  }
  0x25   :  { %799 = vmatmul.mubr.bf16.vlgmr.msra.gmra.mxu0 %v1000_v46 }
  0x26   :  { %840 = vmatmul.mubr.bf16.vlgmr.msra.gmra.mxu1 %v1002_v39  ;;  %1165 = vmatpush3.bf16.msra.mxu0 %v1246_v45 }
  0x27   :  { %1187 = vmatpush3.bf16.msra.mxu1 %v1247_v42  ;;  %1166 = vmatprep.subr.bf16.mxu0 %v1248_v49 }
  0x28   :  { %1188 = vmatprep.subr.bf16.mxu1 %v1249_v43  ;;  %880 = vmatprep.mubr.bf16.mxu0 %v1005_v14 }
  0x29   :  { %921 = vmatprep.mubr.bf16.mxu1 %v1007_v20 }
  0x2a   :  { %1167 = vmatpush3.bf16.msra.mxu0 %v1250_v51 }
  0x2b   :  { %1189 = vmatpush3.bf16.msra.mxu1 %v1251_v48  ;;  %1168 = vmatprep.subr.bf16.mxu0 %v1252_v53  ;;  %v1279_v26 = vpop.eup %1278 }
  0x2c   :  { %1190 = vmatprep.subr.bf16.mxu1 %v1253_v50  ;;  %v1281_v27 = vpop.eup %1280  ;;  %v940_v28 = vmul.f32 1024.0, %v1279_v26 }
  0x2d   :  { %v941_v29 = vmul.f32 1024.0, %v1281_v27 }
  0x2e   :  { %1169 = vmatpush3.bf16.msra.mxu0 %v1254_v55  ;;  %v942_v30 = vmul.f32 %v940_v28, %v934_v22 }
  0x2f   :  { %1191 = vmatpush3.bf16.msra.mxu1 %v1255_v52  ;;  %1170 = vmatprep.subr.bf16.mxu0 %v1256_v57  ;;  %v943_v31 = vmul.f32 %v941_v29, %v935_v25 }
  0x30   :  { %1192 = vmatprep.subr.bf16.mxu1 %v1257_v54  ;;  %946 = vperm.xlu0 %1209, %v942_v30  }
  0x32   :  { %1171 = vmatpush3.bf16.msra.mxu0 %v1258_v59  ;;  %v1072_v59 = vld [vmem:[%s1544_s2] ss:$0 sm:$0xff] }
  0x33   :  { %1193 = vmatpush3.bf16.msra.mxu1 %v1259_v56  ;;  %1172 = vmatprep.subr.bf16.mxu0 %v1260_v61 }
  0x34   :  { %1194 = vmatprep.subr.bf16.mxu1 %v1261_v58  ;;  %951 = vperm.xlu0 %1209, %v943_v31  }
  0x36   :  { %1173 = vmatpush3.bf16.msra.mxu0 %v1262_v63 }
  0x37   :  { %1195 = vmatpush3.bf16.msra.mxu1 %v1263_v60  ;;  %1174 = vmatprep.subr.bf16.mxu0 %v1264_v1 }
  0x38   :  { %1196 = vmatprep.subr.bf16.mxu1 %v1265_v62 }
  0x3a   :  { %1175 = vmatpush3.bf16.msra.mxu0 %v1266_v4 }
  0x3b   :  { %1197 = vmatpush3.bf16.msra.mxu1 %v1267_v0  ;;  %1176 = vmatprep.subr.bf16.mxu0 %v1268_v6 }
  0x3c   :  { %1198 = vmatprep.subr.bf16.mxu1 %v1269_v2 }
  0x3e   :  { %1177 = vmatpush3.bf16.msra.mxu0 %v1270_v7 }
  0x3f   :  { %1199 = vmatpush3.bf16.msra.mxu1 %v1271_v5  ;;  %1178 = vmatprep.subr.bf16.mxu0 %v1272_v9 }
  0x40   :  { %1200 = vmatprep.subr.bf16.mxu1 %v1273_v8 }
  0x42   :  { %1179 = vmatpush3.bf16.msra.mxu0 %v1274_v18 }
  0x43   :  { %1201 = vmatpush3.bf16.msra.mxu1 %v1275_v10 }
  0x45   :  { %881 = vmatmul.mubr.bf16.vlgmr.msra.gmra.mxu0 %v1004_v24 }
  0x46   :  { %922 = vmatmul.mubr.bf16.vlgmr.msra.gmra.mxu1 %v1006_v19 }
  0x9b   :  { %v968_v63 = vpop.permute.xlu1 %967 }
  0x9f   :  { %v973_v7 = vpop.permute.xlu1 %972 }
  0xab   :  { %v947_v53 = vpop.permute.xlu0 %946 }
  0xaf   :  { %v952_v2 = vpop.permute.xlu0 %951 }
  0xe5   :  { %v1136_v33 = vpop.f32.mrf.mxu0 }
  0xe6   :  { %v1158_v32 = vpop.f32.mrf.mxu1 }
  0xe7   :  { %v1137_v35 = vpop.f32.mrf.mxu0 }
  0xe8   :  { %v1159_v34 = vpop.f32.mrf.mxu1  ;;  %v1138_v41 = vadd.f32 %v1137_v35, %v1136_v33 }
  0xe9   :  { %v1139_v3 = vpop.f32.mrf.mxu0  ;;  %v1160_v42 = vadd.f32 %v1159_v34, %v1158_v32 }
  0xea   :  { %v1161_v36 = vpop.f32.mrf.mxu1 }
  0xeb   :  { %v1140_v39 = vpop.f32.mrf.mxu0  ;;  %v842_v46 = vadd.f32 %v1160_v42, %v1138_v41 }
  0xec   :  { %v1162_v37 = vpop.f32.mrf.mxu1  ;;  %v1141_v47 = vadd.f32 %v1140_v39, %v1139_v3 }
  0xed   :  { %v1163_v48 = vadd.f32 %v1162_v37, %v1161_v36 }
  0xef   :  { %v845_v56 = vadd.f32 %v1163_v48, %v1141_v47 }
 0x105   :  { %v1180_v43 = vpop.f32.mrf.mxu0 }
 0x106   :  { %v1202_v38 = vpop.f32.mrf.mxu1 }
 0x107   :  { %v1181_v44 = vpop.f32.mrf.mxu0 }
 0x108   :  { %v1203_v40 = vpop.f32.mrf.mxu1  ;;  %v1182_v49 = vadd.f32 %v1181_v44, %v1180_v43 }
 0x109   :  { %v1183_v50 = vpop.f32.mrf.mxu0  ;;  %v1204_v52 = vadd.f32 %v1203_v40, %v1202_v38 }
 0x10a   :  { %v1205_v45 = vpop.f32.mrf.mxu1  ;;  %v883_v51 = vadd.f32 %v1182_v49, %v842_v46 }
 0x10b   :  { %v1184_v54 = vpop.f32.mrf.mxu0 }
 0x10c   :  { %v1206_v55 = vpop.f32.mrf.mxu1  ;;  %v924_v57 = vadd.f32 %v1204_v52, %v883_v51  ;;  %v1185_v58 = vadd.f32 %v1184_v54, %v1183_v50 }
 0x10d   :  { %v1207_v62 = vadd.f32 %v1206_v55, %v1205_v45 }
 0x10e   :  { %v954_v60 = vmul.f32 %v947_v53, %v924_v57  ;;  %v886_v61 = vadd.f32 %v1185_v58, %v845_v56 }
 0x110   :  { %v963_v0 = vadd.f32 %v1072_v59, %v954_v60  ;;  %v927_v1 = vadd.f32 %v1207_v62, %v886_v61 }
 0x112   :  { %v955_v4 = vmul.f32 %v952_v2, %v927_v1  ;;  %v975_v5 = vmul.f32 %v968_v63, %v963_v0 }
 0x114   :  { %v964_v6 = vadd.f32 %v1072_v59, %v955_v4  ;;  %v977_v9 = vmax.f32 %v975_v5, 0.0 }
 0x116   :  { %v976_v8 = vmul.f32 %v973_v7, %v964_v6 }
 0x118   :  { %v978_v10 = vmax.f32 %v976_v8, 0.0 }
 0x11a   :  { %v1115_v11 = vpack.c.bf16 %v978_v10, %v977_v9 }
 0x11c   :  { %1116 = vst [vmem:[%s1547_s5] sm:$0xff] %v1115_v11  }

// kernel: partial_conv_autoencoder.12
= control target key start
LH: loop header
LB: loop body
LE: loop exit
PB: predicated region body
PF: predicated region fallthrough
CT: control target
= control target key end

     0   :  { %v1872_v2 = vmov 0   ;;  %vm1380_vm0 = vcmask 519168   ;;  %s2195_s0 = inlined_call_operand.vmem [shape: f32[32,1], index: 0, kind: input, shape index: {}]   ;;  %s2196_s1 = inlined_call_operand.vmem [shape: bf16[1152,64], index: 1, kind: input, shape index: {}]   ;;  %s2197_s2 = inlined_call_operand.vmem [shape: f32[1,64], index: 2, kind: input, shape index: {}]   ;;  %s2198_s3 = inlined_call_operand.vmem [shape: bf16[4,8,9,128], index: 3, kind: input, shape index: {}]   ;;  %s2199_s4 = inlined_call_operand.vmem [shape: bf16[32,64], index: 4, kind: output, shape index: {}]  }
   0x1   :  { %v1770_v0 = vld [vmem:[%s2196_s1 + $0x78] sm:$0xff]   ;;  %1769 = vset.pattern.permute.xlu1 %v1872_v2  ;;  %1768 = vset.pattern.permute.xlu0 %v1872_v2  ;;  %v1774_v5 = vld [vmem:[%s2196_s1 + $0x70] sm:$0xff]   ;;  %v1778_v9 = vld [vmem:[%s2196_s1 + $0x68] sm:$0xff]  }
   0x2   :  { %v1771_v1 = vld [vmem:[%s2196_s1 + $0xf8] sm:$0xff]   ;;  %1625 = vmatprep.subr.bf16.mxu0 %v1770_v0  ;;  %v1775_v6 = vld [vmem:[%s2196_s1 + $0xf0] sm:$0xff]   ;;  %v1779_v10 = vld [vmem:[%s2196_s1 + $0xe8] sm:$0xff]  }
   0x3   :  { %v1772_v3 = vld [vmem:[%s2196_s1 + $0x38] sm:$0xff]   ;;  %1653 = vmatprep.subr.bf16.mxu1 %v1771_v1  ;;  %v1776_v7 = vld [vmem:[%s2196_s1 + $0x30] sm:$0xff]   ;;  %v1780_v11 = vld [vmem:[%s2196_s1 + $0x28] sm:$0xff]  }
   0x4   :  { %v1773_v4 = vld [vmem:[%s2196_s1 + $0xb8] sm:$0xff]   ;;  %1626 = vmatpush3.bf16.msra.mxu0 %v1772_v3  ;;  %v1777_v8 = vld [vmem:[%s2196_s1 + $0xb0] sm:$0xff]   ;;  %v1781_v12 = vld [vmem:[%s2196_s1 + $0xa8] sm:$0xff]  }
   0x5   :  { %1654 = vmatpush3.bf16.msra.mxu1 %v1773_v4  ;;  %1627 = vmatprep.subr.bf16.mxu0 %v1774_v5  ;;  %v1782_v13 = vld [vmem:[%s2196_s1 + $0x60] sm:$0xff]   ;;  %v1786_v17 = vld [vmem:[%s2196_s1 + $0x58] sm:$0xff]   ;;  %v1790_v21 = vld [vmem:[%s2196_s1 + $0x50] sm:$0xff]  }
   0x6   :  { %1655 = vmatprep.subr.bf16.mxu1 %v1775_v6  ;;  %v1783_v14 = vld [vmem:[%s2196_s1 + $0xe0] sm:$0xff]   ;;  %v1787_v18 = vld [vmem:[%s2196_s1 + $0xd8] sm:$0xff]   ;;  %v1791_v22 = vld [vmem:[%s2196_s1 + $0xd0] sm:$0xff]  }
   0x7   :  { %v1784_v15 = vld [vmem:[%s2196_s1 + $0x20] sm:$0xff]   ;;  %v1788_v19 = vld [vmem:[%s2196_s1 + $0x18] sm:$0xff]   ;;  %v1792_v23 = vld [vmem:[%s2196_s1 + $0x10] sm:$0xff]  }
   0x8   :  { %1628 = vmatpush3.bf16.msra.mxu0 %v1776_v7  ;;  %v1785_v16 = vld [vmem:[%s2196_s1 + $0xa0] sm:$0xff]   ;;  %v1789_v20 = vld [vmem:[%s2196_s1 + $0x98] sm:$0xff]   ;;  %v1793_v24 = vld [vmem:[%s2196_s1 + $0x90] sm:$0xff]  }
   0x9   :  { %1656 = vmatpush3.bf16.msra.mxu1 %v1777_v8  ;;  %1629 = vmatprep.subr.bf16.mxu0 %v1778_v9  ;;  %v1794_v25 = vld [vmem:[%s2196_s1 + $0x48] sm:$0xff]   ;;  %v1798_v29 = vld [vmem:[%s2196_s1 + $0x40] sm:$0xff]   ;;  %v1808_v37 = vld [vmem:[%s2198_s3 + $0x30] sm:$0xff]  }
   0xa   :  { %1657 = vmatprep.subr.bf16.mxu1 %v1779_v10  ;;  %v1795_v26 = vld [vmem:[%s2196_s1 + $0xc8] sm:$0xff]   ;;  %v1799_v30 = vld [vmem:[%s2196_s1 + $0xc0] sm:$0xff]   ;;  %v1809_v38 = vld [vmem:[%s2196_s1 + $0x178] sm:$0xff]   ;;  %1552 = vst [vmem:[#allocation2 + $0x30] sm:$0xff] %v1808_v37  }
   0xb   :  { %v1796_v27 = vld [vmem:[%s2196_s1 + $0x8] sm:$0xff]   ;;  %v1800_v31 = vld [vmem:[%s2196_s1] sm:$0xff]   ;;  %v1811_v39 = vld [vmem:[%s2196_s1 + $0x1f8] sm:$0xff]  }
   0xc   :  { %1630 = vmatpush3.bf16.msra.mxu0 %v1780_v11  ;;  %v1797_v28 = vld [vmem:[%s2196_s1 + $0x88] sm:$0xff]   ;;  %v1801_v32 = vld [vmem:[%s2196_s1 + $0x80] sm:$0xff]   ;;  %v1810_v40 = vld [vmem:[%s2196_s1 + $0x138] sm:$0xff]  }
   0xd   :  { %1658 = vmatpush3.bf16.msra.mxu1 %v1781_v12  ;;  %1631 = vmatprep.subr.bf16.mxu0 %v1782_v13  ;;  %v17_v33 = vld [vmem:[%s2198_s3] sm:$0xff]   ;;  %v1803_v35 = vld [vmem:[%s2198_s3 + $0x28] sm:$0xff]   ;;  %v1813_v43 = vld [vmem:[%s2196_s1 + $0x170] sm:$0xff]  }
   0xe   :  { %1659 = vmatprep.subr.bf16.mxu1 %v1783_v14  ;;  %23 = vst [vmem:[#allocation2] sm:$0xff] %v17_v33   ;;  %v1802_v34 = vld [vmem:[%s2198_s3 + $0x20] sm:$0xff]   ;;  %v1807_v36 = vld [vmem:[%s2198_s3 + $0x8] sm:$0xff]   ;;  %1547 = vst [vmem:[#allocation2 + $0x28] sm:$0xff] %v1803_v35  }
   0xf   :  { %1542 = vst [vmem:[#allocation2 + $0x20] sm:$0xff] %v1802_v34   ;;  %v1812_v45 = vld [vmem:[%s2196_s1 + $0x1b8] sm:$0xff]   ;;  %v1814_v48 = vld [vmem:[%s2196_s1 + $0x130] sm:$0xff]   ;;  %v1817_v50 = vld [vmem:[%s2196_s1 + $0x168] sm:$0xff]  }
  0x10   :  { %1632 = vmatpush3.bf16.msra.mxu0 %v1784_v15  ;;  %v1815_v49 = vld [vmem:[%s2196_s1 + $0x1f0] sm:$0xff]   ;;  %v1818_v52 = vld [vmem:[%s2196_s1 + $0x128] sm:$0xff]   ;;  %v1821_v55 = vld [vmem:[%s2196_s1 + $0x160] sm:$0xff]  }
  0x11   :  { %1660 = vmatpush3.bf16.msra.mxu1 %v1785_v16  ;;  %1633 = vmatprep.subr.bf16.mxu0 %v1786_v17  ;;  %v1816_v51 = vld [vmem:[%s2196_s1 + $0x1b0] sm:$0xff]   ;;  %v1819_v53 = vld [vmem:[%s2196_s1 + $0x1e8] sm:$0xff]   ;;  %v1822_v56 = vld [vmem:[%s2196_s1 + $0x120] sm:$0xff]  }
  0x12   :  { %1661 = vmatprep.subr.bf16.mxu1 %v1787_v18  ;;  %v1820_v54 = vld [vmem:[%s2196_s1 + $0x1a8] sm:$0xff]   ;;  %v1823_v57 = vld [vmem:[%s2196_s1 + $0x1e0] sm:$0xff]   ;;  %v1825_v58 = vld [vmem:[%s2196_s1 + $0x158] sm:$0xff]  }
  0x13   :  { %v1824_v59 = vld [vmem:[%s2196_s1 + $0x1a0] sm:$0xff]   ;;  %v1827_v60 = vld [vmem:[%s2198_s3 + $0x48] sm:$0xff]   ;;  %v1826_v61 = vld [vmem:[%s2196_s1 + $0x118] sm:$0xff]  }
  0x14   :  { %1634 = vmatpush3.bf16.msra.mxu0 %v1788_v19  ;;  %v1828_v62 = vld [vmem:[%s2198_s3 + $0x68] sm:$0xff]   ;;  %v1829_v63 = vld [vmem:[%s2198_s3 + $0x70] sm:$0xff]   ;;  %v1831_v1 = vld [vmem:[%s2198_s3 + $0x78] sm:$0xff]  }
  0x15   :  { %1662 = vmatpush3.bf16.msra.mxu1 %v1789_v20  ;;  %1635 = vmatprep.subr.bf16.mxu0 %v1790_v21  ;;  %v1806_v42 = vld [vmem:[#allocation2 + $0x4] ss:$36 sps:$4 sm:$0xff]   ;;  %v346_v44 = vld [vmem:[#allocation2 + $0x2c] sm:$0xff]  ;;  %1587 = vst [vmem:[#allocation2 + $0x68] sm:$0xff] %v1828_v62   ;;  %1592 = vst [vmem:[#allocation2 + $0x70] sm:$0xff] %v1829_v63  }
  0x16   :  { %1663 = vmatprep.subr.bf16.mxu1 %v1791_v22  ;;  %v1804_v41 = vld [vmem:[#allocation2] ss:$36 sps:$4 sm:$0xff]   ;;  %1060 = vmatprep.mubr.bf16.mxu0 %v1806_v42  ;;  %v1426_v46 = vcombine.low %v1807_v36, %v346_v44  ;;  %v1427_v47 = vcombine.high %v1807_v36, %v346_v44  ;;  %v1830_v0 = vld [vmem:[%s2198_s3 + $0x50] sm:$0xff]   ;;  %v1832_v2 = vld [vmem:[%s2196_s1 + $0x1d8] sm:$0xff]   ;;  %1597 = vst [vmem:[#allocation2 + $0x78] sm:$0xff] %v1831_v1  }
  0x17   :  { %v1833_v3 = vld [vmem:[%s2196_s1 + $0x198] sm:$0xff]   ;;  %v1834_v4 = vld [vmem:[%s2196_s1 + $0x150] sm:$0xff]   ;;  %v1838_v11 = vld [vmem:[%s2196_s1 + $0x148] sm:$0xff]  }
  0x18   :  { %1636 = vmatpush3.bf16.msra.mxu0 %v1792_v23  ;;  %1109 = vmatprep.mubr.bf16.mxu1 %v1427_v47  ;;  %v1835_v5 = vld [vmem:[%s2196_s1 + $0x110] sm:$0xff]   ;;  %v1839_v13 = vld [vmem:[%s2196_s1 + $0x108] sm:$0xff]   ;;  %v1842_v18 = vld [vmem:[%s2196_s1 + $0x140] sm:$0xff]  }
  0x19   :  { %1664 = vmatpush3.bf16.msra.mxu1 %v1793_v24  ;;  %1637 = vmatprep.subr.bf16.mxu0 %v1794_v25  ;;  %v1836_v6 = vld [vmem:[%s2196_s1 + $0x1d0] sm:$0xff]   ;;  %v1840_v16 = vld [vmem:[%s2196_s1 + $0x1c8] sm:$0xff]   ;;  %v1843_v19 = vld [vmem:[%s2196_s1 + $0x100] sm:$0xff]  }
  0x1a   :  { %1665 = vmatprep.subr.bf16.mxu1 %v1795_v26  ;;  %v1837_v7 = vld [vmem:[%s2196_s1 + $0x190] sm:$0xff]   ;;  %v1841_v17 = vld [vmem:[%s2196_s1 + $0x188] sm:$0xff]   ;;  %v1844_v20 = vld [vmem:[%s2196_s1 + $0x1c0] sm:$0xff]  }
  0x1b   :  { %v1845_v21 = vld [vmem:[%s2198_s3 + $0x10] sm:$0xff]   ;;  %v1846_v22 = vld [vmem:[%s2198_s3 + $0x38] sm:$0xff]   ;;  %v1847_v23 = vld [vmem:[%s2196_s1 + $0x180] sm:$0xff]  }
  0x1c   :  { %1638 = vmatpush3.bf16.msra.mxu0 %v1796_v27  ;;  %v355_v8 = vld [vmem:[#allocation2 + $0x6c] sm:$0xff]  ;;  %1557 = vst [vmem:[#allocation2 + $0x38] sm:$0xff] %v1846_v22   ;;  %v1848_v24 = vld [vmem:[%s2196_s1 + $0x238] sm:$0xff]   ;;  %v1850_v26 = vld [vmem:[%s2198_s3 + $0x40] sm:$0xff]  }
  0x1d   :  { %1666 = vmatpush3.bf16.msra.mxu1 %v1797_v28  ;;  %1639 = vmatprep.subr.bf16.mxu0 %v1798_v29  ;;  %v1434_v9 = vcombine.high %v1827_v60, %v355_v8  ;;  %v1433_v10 = vcombine.low %v1827_v60, %v355_v8  ;;  %v356_v12 = vld [vmem:[#allocation2 + $0x74] sm:$0xff]  ;;  %1562 = vst [vmem:[#allocation2 + $0x40] sm:$0xff] %v1850_v26   ;;  %v1853_v28 = vld [vmem:[%s2198_s3 + $0x80] sm:$0xff]   ;;  %v1856_v33 = vld [vmem:[%s2198_s3 + $0x88] sm:$0xff]  }
  0x1e   :  { %1667 = vmatprep.subr.bf16.mxu1 %v1799_v30  ;;  %v1436_v14 = vcombine.high %v1830_v0, %v356_v12  ;;  %v1435_v15 = vcombine.low %v1830_v0, %v356_v12  ;;  %v1849_v25 = vld [vmem:[%s2198_s3 + $0x18] sm:$0xff]   ;;  %1602 = vst [vmem:[#allocation2 + $0x80] sm:$0xff] %v1853_v28   ;;  %v1855_v30 = vld [vmem:[%s2198_s3 + $0x60] sm:$0xff]   ;;  %v1851_v34 = vld [vmem:[%s2196_s1 + $0x230] sm:$0xff]  }
  0x1f   :  { %v1852_v27 = vld [vmem:[%s2198_s3 + $0x58] sm:$0xff]   ;;  %1607 = vst [vmem:[#allocation2 + $0x88] sm:$0xff] %v1856_v33   ;;  %v1857_v42 = vld [vmem:[%s2196_s1 + $0x220] sm:$0xff]   ;;  %v1859_v60 = vld [vmem:[%s2196_s1 + $0x210] sm:$0xff]  }
  0x20   :  { %1640 = vmatpush3.bf16.msra.mxu0 %v1800_v31  ;;  %v1273_v44 = vld [vmem:[%s2195_s0] sm:$0xff] }
  0x21   :  { %1668 = vmatpush3.bf16.msra.mxu1 %v1801_v32  ;;  %1681 = vmatprep.subr.bf16.mxu0 %v1809_v38  ;;  %v1854_v38 = vld [vmem:[%s2196_s1 + $0x228] sm:$0xff]   ;;  %v1861_v1 = vld [vmem:[%s2196_s1 + $0x200] sm:$0xff]  }
  0x22   :  { %1709 = vmatprep.subr.bf16.mxu1 %v1811_v39 }
  0x23   :  { %1061 = vmatmul.mubr.bf16.vlgmr.msra.gmra.mxu0 %v1804_v41  ;;  %v347_v29 = vld [vmem:[#allocation2 + $0x34] sm:$0xff] }
  0x24   :  { %1682 = vmatpush3.bf16.msra.mxu0 %v1810_v40  ;;  %1110 = vmatmul.mubr.bf16.vlgmr.msra.gmra.mxu1 %v1426_v46  ;;  %v1428_v31 = vcombine.low %v1845_v21, %v347_v29  ;;  %v1429_v32 = vcombine.high %v1845_v21, %v347_v29  ;;  %v348_v35 = vld [vmem:[#allocation2 + $0x3c] sm:$0xff] }
  0x25   :  { %1683 = vmatprep.subr.bf16.mxu0 %v1813_v43  ;;  %1710 = vmatpush3.bf16.msra.mxu1 %v1812_v45  ;;  %v1430_v36 = vcombine.low %v1849_v25, %v348_v35  ;;  %v1431_v37 = vcombine.high %v1849_v25, %v348_v35  ;;  %v357_v39 = vld [vmem:[#allocation2 + $0x7c] sm:$0xff]  ;;  %v1274_v43 = vld [vmem:[%s2195_s0 + $0x8] sm:$0xff]  ;;  %v1275_v45 = vld [vmem:[%s2195_s0 + $0x10] sm:$0xff] }
  0x26   :  { %1711 = vmatprep.subr.bf16.mxu1 %v1815_v49  ;;  %1068 = vmatprep.mubr.bf16.mxu0 %v1434_v9  ;;  %v1438_v40 = vcombine.high %v1852_v27, %v357_v39  ;;  %v1437_v41 = vcombine.low %v1852_v27, %v357_v39  ;;  %v358_v46 = vld [vmem:[#allocation2 + $0x84] sm:$0xff]  ;;  %v1279_v62 = vmax.f32 %v1275_v45, 0.0 }
  0x27   :  { %1117 = vmatprep.mubr.bf16.mxu1 %v1436_v14  ;;  %v1862_v47 = vld [vmem:[#allocation2 + $0x20] ss:$36 sps:$4 sm:$0xff]   ;;  %v1440_v49 = vcombine.high %v1855_v30, %v358_v46 }
  0x28   :  { %1684 = vmatpush3.bf16.msra.mxu0 %v1814_v48  ;;  %v1278_v48 = vmax.f32 %v1274_v43, 0.0 }
  0x29   :  { %1685 = vmatprep.subr.bf16.mxu0 %v1817_v50  ;;  %1712 = vmatpush3.bf16.msra.mxu1 %v1816_v51  ;;  %v1286_v50 = vadd.f32 1e-08, %v1274_v43  ;;  %v1277_v51 = vmax.f32 %v1273_v44, 0.0 }
  0x2a   :  { %1713 = vmatprep.subr.bf16.mxu1 %v1819_v53  ;;  %v1439_v53 = vcombine.low %v1855_v30, %v358_v46 }
  0x2b   :  { %1069 = vmatmul.mubr.bf16.gmra.mxu0 %v1433_v10  ;;  %1864 = vrcp.f32 %v1286_v50 }
  0x2c   :  { %1686 = vmatpush3.bf16.msra.mxu0 %v1818_v52  ;;  %1118 = vmatmul.mubr.bf16.gmra.mxu1 %v1435_v15  ;;  %v1276_v52 = vld [vmem:[%s2195_s0 + $0x18] sm:$0xff] }
  0x2d   :  { %1687 = vmatprep.subr.bf16.mxu0 %v1821_v55  ;;  %1714 = vmatpush3.bf16.msra.mxu1 %v1820_v54  ;;  %v1282_v54 = vmin.f32 %v1278_v48, 1.0  ;;  %v1285_v55 = vadd.f32 1e-08, %v1273_v44  ;;  %v1280_v63 = vmax.f32 %v1276_v52, 0.0 }
  0x2e   :  { %1715 = vmatprep.subr.bf16.mxu1 %v1823_v57  ;;  %1158 = vmatprep.mubr.bf16.mxu0 %v1429_v32  ;;  %v1281_v57 = vmin.f32 %v1277_v51, 1.0 }
  0x2f   :  { %1207 = vmatprep.mubr.bf16.mxu1 %v1431_v37  ;;  %1866 = vrcp.f32 %v1285_v55  ;;  %1343 = vperm.xlu1 %1769, %v1282_v54   ;;  %v1284_v9 = vmin.f32 %v1280_v63, 1.0 }
  0x30   :  { %1688 = vmatpush3.bf16.msra.mxu0 %v1822_v56  ;;  %v1287_v56 = vadd.f32 1e-08, %v1275_v45  ;;  %1338 = vperm.xlu0 %1768, %v1281_v57  }
  0x31   :  { %1689 = vmatprep.subr.bf16.mxu0 %v1825_v58  ;;  %1716 = vmatpush3.bf16.msra.mxu1 %v1824_v59  ;;  %v1288_v58 = vadd.f32 1e-08, %v1276_v52  ;;  %v1858_v59 = vld [vmem:[%s2196_s1 + $0x218] sm:$0xff]  }
  0x32   :  { %1717 = vmatprep.subr.bf16.mxu1 %v1832_v2  ;;  %1868 = vrcp.f32 %v1287_v56 }
  0x33   :  { %1870 = vrcp.f32 %v1288_v58 }
  0x34   :  { %1690 = vmatpush3.bf16.msra.mxu0 %v1826_v61  ;;  %v1860_v61 = vld [vmem:[%s2196_s1 + $0x208] sm:$0xff]  }
  0x35   :  { %1691 = vmatprep.subr.bf16.mxu0 %v1834_v4  ;;  %1718 = vmatpush3.bf16.msra.mxu1 %v1833_v3  ;;  %v1283_v3 = vmin.f32 %v1279_v62, 1.0 }
  0x36   :  { %1719 = vmatprep.subr.bf16.mxu1 %v1836_v6 }
  0x38   :  { %1692 = vmatpush3.bf16.msra.mxu0 %v1835_v5  ;;  %v1865_v0 = vpop.eup %1864 }
  0x39   :  { %1720 = vmatpush3.bf16.msra.mxu1 %v1837_v7  ;;  %1693 = vmatprep.subr.bf16.mxu0 %v1838_v11  ;;  %v1294_v5 = vmul.f32 1152.0, %v1865_v0 }
  0x3a   :  { %1721 = vmatprep.subr.bf16.mxu1 %v1840_v16 }
  0x3b   :  { %v1298_v14 = vmul.f32 %v1294_v5, %v1282_v54 }
  0x3c   :  { %1694 = vmatpush3.bf16.msra.mxu0 %v1839_v13  ;;  %v1867_v2 = vpop.eup %1866  ;;  %v1863_v13 = vld [vmem:[#allocation2 + $0x68] ss:$36 sps:$4 sm:$0xff]  }
  0x3d   :  { %1722 = vmatpush3.bf16.msra.mxu1 %v1841_v17  ;;  %1695 = vmatprep.subr.bf16.mxu0 %v1842_v18  ;;  %v1293_v6 = vmul.f32 1152.0, %v1867_v2 }
  0x3e   :  { %1723 = vmatprep.subr.bf16.mxu1 %v1844_v20 }
  0x3f   :  { %v1869_v4 = vpop.eup %1868  ;;  %v1297_v10 = vmul.f32 %v1293_v6, %v1281_v57 }
  0x40   :  { %1696 = vmatpush3.bf16.msra.mxu0 %v1843_v19  ;;  %v1871_v7 = vpop.eup %1870  ;;  %v1295_v8 = vmul.f32 1152.0, %v1869_v4 }
  0x41   :  { %1724 = vmatpush3.bf16.msra.mxu1 %v1847_v23  ;;  %1747 = vmatprep.subr.bf16.mxu0 %v1848_v24  ;;  %v1296_v11 = vmul.f32 1152.0, %v1871_v7 }
  0x42   :  { %v1299_v12 = vmul.f32 %v1295_v8, %v1283_v3  ;;  %1303 = vperm.xlu0 %1768, %v1297_v10  }
  0x43   :  { %1159 = vmatmul.mubr.bf16.vlgmr.msra.gmra.mxu0 %v1428_v31  ;;  %v1300_v15 = vmul.f32 %v1296_v11, %v1284_v9 }
  0x44   :  { %1748 = vmatpush3.bf16.msra.mxu0 %v1848_v24  ;;  %1208 = vmatmul.mubr.bf16.vlgmr.msra.gmra.mxu1 %v1430_v36 }
  0x45   :  { %1749 = vmatprep.subr.bf16.mxu0 %v1851_v34  ;;  %1166 = vmatprep.mubr.bf16.mxu0 %v1438_v40 }
  0x46   :  { %1215 = vmatprep.mubr.bf16.mxu1 %v1440_v49  ;;  %1313 = vperm.xlu1 %1769, %v1299_v12  }
  0x47   :  { %1308 = vperm.xlu0 %1768, %v1298_v14  }
  0x48   :  { %1750 = vmatpush3.bf16.msra.mxu0 %v1851_v34 }
  0x49   :  { %1751 = vmatprep.subr.bf16.mxu0 %v1854_v38 }
  0x4a   :  { %1318 = vperm.xlu1 %1769, %v1300_v15  }
  0x4b   :  { %1167 = vmatmul.mubr.bf16.gmra.mxu0 %v1437_v41  ;;  %1348 = vperm.xlu0 %1768, %v1283_v3  }
  0x4c   :  { %1752 = vmatpush3.bf16.msra.mxu0 %v1854_v38  ;;  %1763 = vmatprep.mubr.bf16.mxu0 %v1862_v47 }
  0x4d   :  { %1753 = vmatprep.subr.bf16.mxu0 %v1857_v42  ;;  %1216 = vmatmul.mubr.bf16.gmra.mxu1 %v1439_v53 }
  0x4e   :  { %1353 = vperm.xlu1 %1769, %v1284_v9  }
  0x50   :  { %1754 = vmatpush3.bf16.msra.mxu0 %v1857_v42 }
  0x51   :  { %1755 = vmatprep.subr.bf16.mxu0 %v1858_v59 }
  0x54   :  { %1756 = vmatpush3.bf16.msra.mxu0 %v1858_v59 }
  0x55   :  { %1757 = vmatprep.subr.bf16.mxu0 %v1859_v60 }
  0x58   :  { %1758 = vmatpush3.bf16.msra.mxu0 %v1859_v60 }
  0x59   :  { %1759 = vmatprep.subr.bf16.mxu0 %v1860_v61 }
  0x5c   :  { %1760 = vmatpush3.bf16.msra.mxu0 %v1860_v61 }
  0x5d   :  { %1761 = vmatprep.subr.bf16.mxu0 %v1861_v1 }
  0x60   :  { %1762 = vmatpush3.bf16.msra.mxu0 %v1861_v1 }
  0x63   :  { %1764 = vmatmul.mubr.bf16.vlgmr.msra.gmra.mxu0 %v1863_v13 }
  0xaa   :  { %v1344_v51 = vpop.permute.xlu1 %1343 }
  0xab   :  { %v1339_v43 = vpop.permute.xlu0 %1338 }
  0xbd   :  { %v1304_v60 = vpop.permute.xlu0 %1303 }
  0xc1   :  { %v1314_v6 = vpop.permute.xlu1 %1313 }
  0xc2   :  { %v1309_v11 = vpop.permute.xlu0 %1308 }
  0xe3   :  { %v1641_v16 = vpop.f32.mrf.mxu0 }
  0xe4   :  { %v1669_v17 = vpop.f32.mrf.mxu1 }
  0xe5   :  { %v1642_v18 = vpop.f32.mrf.mxu0 }
  0xe6   :  { %v1670_v19 = vpop.f32.mrf.mxu1  ;;  %v1643_v48 = vadd.f32 %v1642_v18, %v1641_v16 }
  0xe7   :  { %v1644_v20 = vpop.f32.mrf.mxu0  ;;  %v1671_v49 = vadd.f32 %v1670_v19, %v1669_v17  ;;  %v1514_v17 = vld [vmem:[%s2197_s2] ss:$0 sm:$0xff] }
  0xe8   :  { %v1672_v21 = vpop.f32.mrf.mxu1 }
  0xe9   :  { %v1645_v22 = vpop.f32.mrf.mxu0  ;;  %v1112_v58 = vadd.f32 %v1671_v49, %v1643_v48 }
  0xea   :  { %v1673_v24 = vpop.f32.mrf.mxu1  ;;  %v1646_v59 = vadd.f32 %v1645_v22, %v1644_v20  ;;  %v1319_v22 = vpop.permute.xlu1 %1318 }
  0xeb   :  { %v1647_v23 = vpop.f32.mrf.mxu0  ;;  %v1674_v61 = vadd.f32 %v1673_v24, %v1672_v21 }
  0xec   :  { %v1675_v25 = vpop.f32.mrf.mxu1 }
  0xed   :  { %v1648_v26 = vpop.f32.mrf.mxu0  ;;  %v1115_v7 = vadd.f32 %v1674_v61, %v1646_v59 }
  0xee   :  { %v1676_v27 = vpop.f32.mrf.mxu1  ;;  %v1649_v46 = vadd.f32 %v1648_v26, %v1647_v23 }
  0xef   :  { %v1650_v28 = vpop.f32.mrf.mxu0  ;;  %v1677_v47 = vadd.f32 %v1676_v27, %v1675_v25 }
  0xf0   :  { %v1678_v29 = vpop.f32.mrf.mxu1 }
  0xf1   :  { %v1651_v30 = vpop.f32.mrf.mxu0  ;;  %v1120_v54 = vadd.f32 %v1677_v47, %v1649_v46 }
  0xf2   :  { %v1679_v32 = vpop.f32.mrf.mxu1  ;;  %v1652_v55 = vadd.f32 %v1651_v30, %v1650_v28  ;;  %v1349_v28 = vpop.permute.xlu0 %1348 }
  0xf3   :  { %v1680_v56 = vadd.f32 %v1679_v32, %v1678_v29 }
  0xf5   :  { %v1123_v2 = vadd.f32 %v1680_v56, %v1652_v55 }
 0x103   :  { %v1697_v31 = vpop.f32.mrf.mxu0 }
 0x104   :  { %v1725_v34 = vpop.f32.mrf.mxu1 }
 0x105   :  { %v1698_v33 = vpop.f32.mrf.mxu0 }
 0x106   :  { %v1726_v36 = vpop.f32.mrf.mxu1  ;;  %v1699_v57 = vadd.f32 %v1698_v33, %v1697_v31 }
 0x107   :  { %v1700_v35 = vpop.f32.mrf.mxu0  ;;  %v1727_v4 = vadd.f32 %v1726_v36, %v1725_v34 }
 0x108   :  { %v1728_v38 = vpop.f32.mrf.mxu1  ;;  %v1161_v3 = vadd.f32 %v1699_v57, %v1112_v58 }
 0x109   :  { %v1701_v37 = vpop.f32.mrf.mxu0 }
 0x10a   :  { %v1729_v40 = vpop.f32.mrf.mxu1  ;;  %v1702_v5 = vadd.f32 %v1701_v37, %v1700_v35  ;;  %v1210_v16 = vadd.f32 %v1727_v4, %v1161_v3 }
 0x10b   :  { %v1703_v39 = vpop.f32.mrf.mxu0  ;;  %v1730_v14 = vadd.f32 %v1729_v40, %v1728_v38  ;;  %v1354_v38 = vpop.permute.xlu1 %1353 }
 0x10c   :  { %v1164_v13 = vadd.f32 %v1702_v5, %v1115_v7 }
 0x10d   :  { %v1704_v41 = vpop.f32.mrf.mxu0  ;;  %v1731_v42 = vpop.f32.mrf.mxu1 }
 0x10e   :  { %v1705_v50 = vadd.f32 %v1704_v41, %v1703_v39  ;;  %v1213_v27 = vadd.f32 %v1730_v14, %v1164_v13 }
 0x10f   :  { %v1706_v44 = vpop.f32.mrf.mxu0  ;;  %v1732_v45 = vpop.f32.mrf.mxu1 }
 0x110   :  { %v1169_v62 = vadd.f32 %v1705_v50, %v1120_v54  ;;  %v1733_v63 = vadd.f32 %v1732_v45, %v1731_v42 }
 0x111   :  { %v1707_v52 = vpop.f32.mrf.mxu0  ;;  %v1734_v53 = vpop.f32.mrf.mxu1 }
 0x112   :  { %v1708_v0 = vadd.f32 %v1707_v52, %v1706_v44  ;;  %v1218_v10 = vadd.f32 %v1733_v63, %v1169_v62 }
 0x113   :  { %v1735_v1 = vpop.f32.mrf.mxu1 }
 0x114   :  { %v1172_v8 = vadd.f32 %v1708_v0, %v1123_v2  ;;  %v1736_v9 = vadd.f32 %v1735_v1, %v1734_v53 }
 0x116   :  { %v1221_v21 = vadd.f32 %v1736_v9, %v1172_v8 }
 0x123   :  { %v1765_v12 = vpop.f32.mrf.mxu0 }
 0x124   :  { %v1267_v15 = vadd.f32 %v1765_v12, %v1218_v10 }
 0x125   :  { %v1258_v18 = vpop.f32.mrf.mxu0 }
 0x126   :  { %v1323_v19 = vmul.f32 %v1314_v6, %v1267_v15  ;;  %v1259_v20 = vadd.f32 %v1258_v18, %v1210_v16 }
 0x127   :  { %v1766_v23 = vpop.f32.mrf.mxu0 }
 0x128   :  { %v1334_v24 = vadd.f32 %v1514_v17, %v1323_v19  ;;  %v1321_v25 = vmul.f32 %v1304_v60, %v1259_v20  ;;  %v1270_v26 = vadd.f32 %v1766_v23, %v1221_v21 }
 0x129   :  { %v1261_v29 = vpop.f32.mrf.mxu0 }
 0x12a   :  { %v1358_v30 = vmul.f32 %v1349_v28, %v1334_v24  ;;  %v1332_v31 = vadd.f32 %v1514_v17, %v1321_v25  ;;  %v1324_v32 = vmul.f32 %v1319_v22, %v1270_v26  ;;  %v1262_v33 = vadd.f32 %v1261_v29, %v1213_v27 }
 0x12c   :  { %v1362_v34 = vmax.f32 %v1358_v30, 0.0  ;;  %v1356_v35 = vmul.f32 %v1339_v43, %v1332_v31  ;;  %v1335_v36 = vadd.f32 %v1514_v17, %v1324_v32  ;;  %v1322_v37 = vmul.f32 %v1309_v11, %v1262_v33 }
 0x12e   :  { %v1521_v39 = vpack.c.bf16 %v1362_v34, %v1362_v34  ;;  %v1360_v40 = vmax.f32 %v1356_v35, 0.0  ;;  %v1359_v41 = vmul.f32 %v1354_v38, %v1335_v36  ;;  %v1333_v42 = vadd.f32 %v1514_v17, %v1322_v37 }
 0x130   :  { %1383 = vst.msk [vmem:[%s2199_s4 + $0x8] sm:$0xf] %vm1380_vm0, %v1521_v39  ;;  %v1519_v44 = vpack.c.bf16 %v1360_v40, %v1360_v40  ;;  %v1363_v45 = vmax.f32 %v1359_v41, 0.0  ;;  %v1357_v46 = vmul.f32 %v1344_v51, %v1333_v42 }
 0x132   :  { %1381 = vst.msk [vmem:[%s2199_s4] sm:$0xf] %vm1380_vm0, %v1519_v44  ;;  %v1522_v43 = vpack.c.bf16 %v1363_v45, %v1363_v45  ;;  %v1361_v47 = vmax.f32 %v1357_v46, 0.0 }
 0x134   :  { %1384 = vst.msk [vmem:[%s2199_s4 + $0xc] sm:$0xf] %vm1380_vm0, %v1522_v43  ;;  %v1520_v48 = vpack.c.bf16 %v1361_v47, %v1361_v47 }
 0x136   :  { %1382 = vst.msk [vmem:[%s2199_s4 + $0x4] sm:$0xf] %vm1380_vm0, %v1520_v48 }

// kernel: partial_conv_autoencoder.10
= control target key start
LH: loop header
LB: loop body
LE: loop exit
PB: predicated region body
PF: predicated region fallthrough
CT: control target
= control target key end

     0   :  { %v1714_v1 = vmov 0   ;;  %vm554_vm0 = vcmask 523264   ;;  %vm1277_vm1 = vcmask 257024   ;;  %s2362_s2 = inlined_call_operand.vmem [shape: bf16[576,32], index: 2, kind: input, shape index: {}]   ;;  %s2363_s0 = inlined_call_operand.vmem [shape: bf16[128,576], index: 0, kind: input, shape index: {}]   ;;  %s2364_s1 = inlined_call_operand.vmem [shape: f32[128,1], index: 1, kind: input, shape index: {}]   ;;  %s2365_s3 = inlined_call_operand.vmem [shape: f32[1,32], index: 3, kind: input, shape index: {}]   ;;  %s2366_s4 = inlined_call_operand.vmem [shape: bf16[128,32], index: 4, kind: output, shape index: {}]  }
   0x1   :  { %v1590_v0 = vld [vmem:[%s2362_s2 + $0x78] sm:$0xff]   ;;  %1589 = vset.pattern.permute.xlu1 %v1714_v1  ;;  %1588 = vset.pattern.permute.xlu0 %v1714_v1  ;;  %v1594_v5 = vld [vmem:[%s2362_s2 + $0x70] sm:$0xff]   ;;  %v1598_v9 = vld [vmem:[%s2362_s2 + $0x68] sm:$0xff]  }
   0x2   :  { %v1591_v2 = vld [vmem:[%s2362_s2 + $0xf8] sm:$0xff]   ;;  %1415 = vmatprep.subr.bf16.mxu0 %v1590_v0  ;;  %v1595_v6 = vld [vmem:[%s2362_s2 + $0xf0] sm:$0xff]   ;;  %v1599_v10 = vld [vmem:[%s2362_s2 + $0xe8] sm:$0xff]  }
   0x3   :  { %v1592_v3 = vld [vmem:[%s2362_s2 + $0x38] sm:$0xff]   ;;  %1479 = vmatprep.subr.bf16.mxu1 %v1591_v2  ;;  %v1596_v7 = vld [vmem:[%s2362_s2 + $0x30] sm:$0xff]   ;;  %v1600_v11 = vld [vmem:[%s2362_s2 + $0x28] sm:$0xff]  }
   0x4   :  { %v1593_v4 = vld [vmem:[%s2362_s2 + $0xb8] sm:$0xff]   ;;  %1416 = vmatpush3.bf16.msra.mxu0 %v1592_v3  ;;  %v1597_v8 = vld [vmem:[%s2362_s2 + $0xb0] sm:$0xff]   ;;  %v1601_v12 = vld [vmem:[%s2362_s2 + $0xa8] sm:$0xff]  }
   0x5   :  { %1480 = vmatpush3.bf16.msra.mxu1 %v1593_v4  ;;  %1417 = vmatprep.subr.bf16.mxu0 %v1594_v5  ;;  %v1602_v13 = vld [vmem:[%s2362_s2 + $0x60] sm:$0xff]   ;;  %v1606_v17 = vld [vmem:[%s2362_s2 + $0x58] sm:$0xff]   ;;  %v1610_v21 = vld [vmem:[%s2362_s2 + $0x50] sm:$0xff]  }
   0x6   :  { %1481 = vmatprep.subr.bf16.mxu1 %v1595_v6  ;;  %v1603_v14 = vld [vmem:[%s2362_s2 + $0xe0] sm:$0xff]   ;;  %v1607_v18 = vld [vmem:[%s2362_s2 + $0xd8] sm:$0xff]   ;;  %v1611_v22 = vld [vmem:[%s2362_s2 + $0xd0] sm:$0xff]  }
   0x7   :  { %v1604_v15 = vld [vmem:[%s2362_s2 + $0x20] sm:$0xff]   ;;  %v1608_v19 = vld [vmem:[%s2362_s2 + $0x18] sm:$0xff]   ;;  %v1612_v23 = vld [vmem:[%s2362_s2 + $0x10] sm:$0xff]  }
   0x8   :  { %1418 = vmatpush3.bf16.msra.mxu0 %v1596_v7  ;;  %v1605_v16 = vld [vmem:[%s2362_s2 + $0xa0] sm:$0xff]   ;;  %v1609_v20 = vld [vmem:[%s2362_s2 + $0x98] sm:$0xff]   ;;  %v1613_v24 = vld [vmem:[%s2362_s2 + $0x90] sm:$0xff]  }
   0x9   :  { %1482 = vmatpush3.bf16.msra.mxu1 %v1597_v8  ;;  %1419 = vmatprep.subr.bf16.mxu0 %v1598_v9  ;;  %v1614_v25 = vld [vmem:[%s2362_s2 + $0x48] sm:$0xff]   ;;  %v1618_v29 = vld [vmem:[%s2362_s2 + $0x40] sm:$0xff]   ;;  %v1628_v37 = vld [vmem:[%s2362_s2 + $0x118] sm:$0xff]  }
   0xa   :  { %1483 = vmatprep.subr.bf16.mxu1 %v1599_v10  ;;  %v1615_v26 = vld [vmem:[%s2362_s2 + $0xc8] sm:$0xff]   ;;  %v1619_v30 = vld [vmem:[%s2362_s2 + $0xc0] sm:$0xff]   ;;  %v1641_v43 = vld [vmem:[%s2362_s2 + $0x110] sm:$0xff]  }
   0xb   :  { %v1616_v27 = vld [vmem:[%s2362_s2 + $0x8] sm:$0xff]   ;;  %v1620_v31 = vld [vmem:[%s2362_s2] sm:$0xff]   ;;  %v1637_v44 = vld [vmem:[%s2363_s0 + $0x5c] ss:$20 sps:$4 sm:$0xff]  }
   0xc   :  { %1420 = vmatpush3.bf16.msra.mxu0 %v1600_v11  ;;  %v1617_v28 = vld [vmem:[%s2362_s2 + $0x88] sm:$0xff]   ;;  %v1621_v32 = vld [vmem:[%s2362_s2 + $0x80] sm:$0xff]   ;;  %v1642_v47 = vld [vmem:[%s2363_s0 + $0x7c] ss:$20 sps:$4 sm:$0xff]  }
   0xd   :  { %1484 = vmatpush3.bf16.msra.mxu1 %v1601_v12  ;;  %1421 = vmatprep.subr.bf16.mxu0 %v1602_v13  ;;  %v1622_v33 = vld [vmem:[%s2363_s0] ss:$20 sps:$4 sm:$0xff]   ;;  %v1624_v34 = vld [vmem:[%s2363_s0 + $0x4] ss:$20 sps:$4 sm:$0xff]   ;;  %v1625_v35 = vld [vmem:[%s2363_s0 + $0x8] ss:$20 sps:$4 sm:$0xff]  }
   0xe   :  { %1485 = vmatprep.subr.bf16.mxu1 %v1603_v14  ;;  %v1627_v36 = vld [vmem:[%s2363_s0 + $0xc] ss:$20 sps:$4 sm:$0xff]   ;;  %611 = vmatprep.mubr.bf16.mxu0 %v1624_v34  ;;  %v1631_v39 = vld [vmem:[%s2363_s0 + $0x34] ss:$20 sps:$4 sm:$0xff]   ;;  %v1634_v41 = vld [vmem:[%s2363_s0 + $0x30] ss:$20 sps:$4 sm:$0xff]  }
   0xf   :  { %708 = vmatprep.mubr.bf16.mxu1 %v1627_v36  ;;  %v1629_v38 = vld [vmem:[%s2363_s0 + $0x2c] ss:$20 sps:$4 sm:$0xff]   ;;  %v1633_v40 = vld [vmem:[%s2363_s0 + $0x28] ss:$20 sps:$4 sm:$0xff]   ;;  %v1639_v45 = vld [vmem:[%s2363_s0 + $0x50] ss:$20 sps:$4 sm:$0xff]  }
  0x10   :  { %1422 = vmatpush3.bf16.msra.mxu0 %v1604_v15  ;;  %v1635_v42 = vld [vmem:[%s2363_s0 + $0x54] ss:$20 sps:$4 sm:$0xff]   ;;  %v1640_v46 = vld [vmem:[%s2363_s0 + $0x58] ss:$20 sps:$4 sm:$0xff]   ;;  %v870_v50 = vld [vmem:[%s2364_s1] sm:$0xff] }
  0x11   :  { %1486 = vmatpush3.bf16.msra.mxu1 %v1605_v16  ;;  %1423 = vmatprep.subr.bf16.mxu0 %v1606_v17  ;;  %v1654_v48 = vld [vmem:[%s2362_s2 + $0x108] sm:$0xff]   ;;  %v872_v49 = vld [vmem:[%s2364_s1 + $0x10] sm:$0xff]  ;;  %v1644_v51 = vld [vmem:[%s2363_s0 + $0x84] ss:$20 sps:$4 sm:$0xff]   ;;  %v918_v53 = vadd.f32 1e-08, %v870_v50 }
  0x12   :  { %1487 = vmatprep.subr.bf16.mxu1 %v1607_v18  ;;  %v920_v52 = vadd.f32 1e-08, %v872_v49  ;;  %v873_v54 = vld [vmem:[%s2364_s1 + $0x18] sm:$0xff]  ;;  %v1899_v55 = vld [vmem:[%s2364_s1 + $0x8] sm:$0xff]  ;;  %v1910_v59 = vld [vmem:[%s2364_s1 + $0x20] sm:$0xff]  ;;  %v888_v6 = vmax.f32 %v872_v49, 0.0 }
  0x13   :  { %v921_v56 = vadd.f32 1e-08, %v873_v54  ;;  %v919_v57 = vadd.f32 1e-08, %v1899_v55  ;;  %v1905_v58 = vld [vmem:[%s2364_s1 + $0x28] sm:$0xff]  ;;  %v1919_v62 = vld [vmem:[%s2364_s1 + $0x38] sm:$0xff] }
  0x14   :  { %1424 = vmatpush3.bf16.msra.mxu0 %v1608_v19  ;;  %1682 = vrcp.f32 %v920_v52  ;;  %v1646_v60 = vld [vmem:[%s2363_s0 + $0x78] ss:$20 sps:$4 sm:$0xff]   ;;  %v923_v61 = vadd.f32 1e-08, %v1905_v58  ;;  %v1924_v63 = vld [vmem:[%s2364_s1 + $0x30] sm:$0xff]  ;;  %v886_v7 = vmax.f32 %v870_v50, 0.0 }
  0x15   :  { %1488 = vmatpush3.bf16.msra.mxu1 %v1609_v20  ;;  %1425 = vmatprep.subr.bf16.mxu0 %v1610_v21  ;;  %1684 = vrcp.f32 %v918_v53  ;;  %v1647_v0 = vld [vmem:[%s2363_s0 + $0x80] ss:$20 sps:$4 sm:$0xff]   ;;  %v922_v1 = vadd.f32 1e-08, %v1910_v59  ;;  %v925_v2 = vadd.f32 1e-08, %v1919_v62 }
  0x16   :  { %1489 = vmatprep.subr.bf16.mxu1 %v1611_v22  ;;  %1686 = vrcp.f32 %v921_v56  ;;  %v1648_v3 = vld [vmem:[%s2363_s0 + $0xa4] ss:$20 sps:$4 sm:$0xff]   ;;  %v924_v4 = vadd.f32 1e-08, %v1924_v63  ;;  %v1650_v5 = vld [vmem:[%s2363_s0 + $0xac] ss:$20 sps:$4 sm:$0xff]  }
  0x17   :  { %1688 = vrcp.f32 %v919_v57  ;;  %v889_v8 = vmax.f32 %v873_v54, 0.0  ;;  %v1667_v9 = vld [vmem:[%s2362_s2 + $0x100] sm:$0xff]   ;;  %v1944_v10 = vld [vmem:[%s2364_s1 + $0x48] sm:$0xff]  ;;  %v1954_v12 = vld [vmem:[%s2364_s1 + $0x58] sm:$0xff]  ;;  %v887_v14 = vmax.f32 %v1899_v55, 0.0  ;;  %v1962_v17 = vmin.f32 %v888_v6, 1.0 }
  0x18   :  { %1426 = vmatpush3.bf16.msra.mxu0 %v1612_v23  ;;  %1690 = vrcp.f32 %v923_v61  ;;  %v1949_v11 = vld [vmem:[%s2364_s1 + $0x40] sm:$0xff]  ;;  %v927_v15 = vadd.f32 1e-08, %v1944_v10  ;;  %v929_v18 = vadd.f32 1e-08, %v1954_v12  ;;  %v1968_v19 = vld [vmem:[%s2364_s1 + $0x50] sm:$0xff] }
  0x19   :  { %1490 = vmatpush3.bf16.msra.mxu1 %v1613_v24  ;;  %1427 = vmatprep.subr.bf16.mxu0 %v1614_v25  ;;  %1692 = vrcp.f32 %v922_v1  ;;  %v1652_v13 = vld [vmem:[%s2363_s0 + $0xa0] ss:$20 sps:$4 sm:$0xff]   ;;  %v926_v16 = vadd.f32 1e-08, %v1949_v11  ;;  %v1653_v21 = vld [vmem:[%s2363_s0 + $0xa8] ss:$20 sps:$4 sm:$0xff]  }
  0x1a   :  { %1491 = vmatprep.subr.bf16.mxu1 %v1615_v26  ;;  %1694 = vrcp.f32 %v925_v2  ;;  %v1973_v22 = vmin.f32 %v886_v7, 1.0  ;;  %v1975_v23 = vmin.f32 %v889_v8, 1.0  ;;  %v891_v26 = vmax.f32 %v1905_v58, 0.0  ;;  %v1659_v54 = vld [vmem:[%s2363_s0 + $0xc8] ss:$20 sps:$4 sm:$0xff]  }
  0x1b   :  { %1696 = vrcp.f32 %v924_v4  ;;  %v893_v36 = vmax.f32 %v1919_v62, 0.0  ;;  %v1660_v55 = vld [vmem:[%s2363_s0 + $0xd0] ss:$20 sps:$4 sm:$0xff]   ;;  %v1661_v1 = vld [vmem:[%s2363_s0 + $0xf4] ss:$20 sps:$4 sm:$0xff]   ;;  %v895_v2 = vmax.f32 %v1944_v10, 0.0 }
  0x1c   :  { %1428 = vmatpush3.bf16.msra.mxu0 %v1616_v27  ;;  %1698 = vrcp.f32 %v927_v15  ;;  %v928_v27 = vadd.f32 1e-08, %v1968_v19  ;;  %v1663_v6 = vld [vmem:[%s2363_s0 + $0xfc] ss:$20 sps:$4 sm:$0xff]   ;;  %v897_v10 = vmax.f32 %v1954_v12, 0.0 }
  0x1d   :  { %1492 = vmatpush3.bf16.msra.mxu1 %v1617_v28  ;;  %1429 = vmatprep.subr.bf16.mxu0 %v1618_v29  ;;  %1700 = vrcp.f32 %v926_v16  ;;  %v1982_v28 = vld [vmem:[%s2364_s1 + $0x68] sm:$0xff]  ;;  %v2027_v57 = vmin.f32 %v893_v36, 1.0  ;;  %v896_v16 = vmax.f32 %v1968_v19, 0.0 }
  0x1e   :  { %1493 = vmatprep.subr.bf16.mxu1 %v1619_v30  ;;  %v1984_v30 = vmin.f32 %v887_v14, 1.0  ;;  %1702 = vrcp.f32 %v929_v18  ;;  %v1666_v12 = vld [vmem:[%s2363_s0 + $0xf8] ss:$20 sps:$4 sm:$0xff]   ;;  %v899_v19 = vmax.f32 %v1982_v28, 0.0 }
  0x1f   :  { %1704 = vrcp.f32 %v928_v27 }
  0x20   :  { %1430 = vmatpush3.bf16.msra.mxu0 %v1620_v31  ;;  %v1655_v31 = vld [vmem:[%s2363_s0 + $0xcc] ss:$20 sps:$4 sm:$0xff]  }
  0x21   :  { %1494 = vmatpush3.bf16.msra.mxu1 %v1621_v32  ;;  %1555 = vmatprep.subr.bf16.mxu0 %v1628_v37  ;;  %v1683_v20 = vpop.eup %1682  ;;  %v890_v32 = vmax.f32 %v1910_v59, 0.0 }
  0x22   :  { %1579 = vmatprep.subr.bf16.mxu1 %v1628_v37  ;;  %v1685_v24 = vpop.eup %1684  ;;  %v952_v25 = vmul.f32 576.0, %v1683_v20 }
  0x23   :  { %612 = vmatmul.mubr.bf16.vlgmr.msra.gmra.mxu0 %v1622_v33  ;;  %v950_v29 = vmul.f32 576.0, %v1685_v24  ;;  %v1687_v33 = vpop.eup %1686  ;;  %v2017_v50 = vmin.f32 %v890_v32, 1.0  ;;  %v1665_v24 = vld [vmem:[%s2363_s0 + $0xf0] ss:$20 sps:$4 sm:$0xff]   ;;  %v2061_v32 = vmin.f32 %v896_v16, 1.0 }
  0x24   :  { %709 = vmatmul.mubr.bf16.vlgmr.msra.gmra.mxu1 %v1625_v35  ;;  %1556 = vmatpush3.bf16.msra.mxu0 %v1628_v37  ;;  %v968_v34 = vmul.f32 %v952_v25, %v1962_v17  ;;  %v1657_v35 = vld [vmem:[%s2363_s0 + $0xd4] ss:$20 sps:$4 sm:$0xff]  }
  0x25   :  { %1583 = vmatpush3.bf16.msra.mxu1 %v1628_v37  ;;  %619 = vmatprep.mubr.bf16.mxu0 %v1629_v38  ;;  %v931_v37 = vadd.f32 1e-08, %v1982_v28  ;;  %v1999_v38 = vld [vmem:[%s2364_s1 + $0x60] sm:$0xff] }
  0x26   :  { %716 = vmatprep.mubr.bf16.mxu1 %v1631_v39  ;;  %1557 = vmatprep.subr.bf16.mxu0 %v1641_v43  ;;  %v1689_v39 = vpop.eup %1688 }
  0x27   :  { %1580 = vmatprep.subr.bf16.mxu1 %v1641_v43  ;;  %994 = vperm.xlu1 %1589, %v968_v34   ;;  %1706 = vrcp.f32 %v931_v37  ;;  %v1668_v34 = vld [vmem:[%s2363_s0 + $0x11c] ss:$20 sps:$4 sm:$0xff]   ;;  %v1670_v37 = vld [vmem:[%s2363_s0 + $0x124] ss:$20 sps:$4 sm:$0xff]  }
  0x28   :  { %1558 = vmatpush3.bf16.msra.mxu0 %v1641_v43 }
  0x29   :  { %1584 = vmatpush3.bf16.msra.mxu1 %v1641_v43  ;;  %1559 = vmatprep.subr.bf16.mxu0 %v1654_v48  ;;  %v930_v43 = vadd.f32 1e-08, %v1999_v38 }
  0x2a   :  { %1581 = vmatprep.subr.bf16.mxu1 %v1654_v48 }
  0x2b   :  { %620 = vmatmul.mubr.bf16.gmra.mxu0 %v1633_v40  ;;  %v966_v40 = vmul.f32 %v950_v29, %v1973_v22  ;;  %1708 = vrcp.f32 %v930_v43 }
  0x2c   :  { %717 = vmatmul.mubr.bf16.gmra.mxu1 %v1634_v41  ;;  %627 = vmatprep.mubr.bf16.mxu0 %v1635_v42  ;;  %v953_v41 = vmul.f32 576.0, %v1687_v33  ;;  %v892_v42 = vmax.f32 %v1924_v63, 0.0 }
  0x2d   :  { %724 = vmatprep.mubr.bf16.mxu1 %v1637_v44  ;;  %1560 = vmatpush3.bf16.msra.mxu0 %v1654_v48  ;;  %v2007_v44 = vld [vmem:[%s2364_s1 + $0x78] sm:$0xff] }
  0x2e   :  { %1585 = vmatpush3.bf16.msra.mxu1 %v1654_v48  ;;  %1561 = vmatprep.subr.bf16.mxu0 %v1667_v9  ;;  %v1691_v48 = vpop.eup %1690  ;;  %v969_v49 = vmul.f32 %v953_v41, %v1975_v23  ;;  %v901_v41 = vmax.f32 %v2007_v44, 0.0 }
  0x2f   :  { %1582 = vmatprep.subr.bf16.mxu1 %v1667_v9  ;;  %984 = vperm.xlu0 %1588, %v966_v40   ;;  %v1693_v52 = vpop.eup %1692  ;;  %v955_v56 = vmul.f32 576.0, %v1691_v48 }
  0x30   :  { %v1695_v58 = vpop.eup %1694  ;;  %v954_v59 = vmul.f32 576.0, %v1693_v52  ;;  %999 = vperm.xlu1 %1589, %v969_v49  }
  0x31   :  { %1562 = vmatpush3.bf16.msra.mxu0 %v1667_v9  ;;  %v1697_v62 = vpop.eup %1696 }
  0x32   :  { %1586 = vmatpush3.bf16.msra.mxu1 %v1667_v9  ;;  %v956_v4 = vmul.f32 576.0, %v1697_v62  ;;  %v1699_v7 = vpop.eup %1698  ;;  %v2043_v9 = vmin.f32 %v895_v2, 1.0  ;;  %v1679_v2 = vld [vmem:[%s2363_s0 + $0x100] ss:$20 sps:$4 sm:$0xff]  }
  0x33   :  { %628 = vmatmul.mubr.bf16.gmra.mxu0 %v1639_v45  ;;  %v951_v45 = vmul.f32 576.0, %v1689_v39  ;;  %v915_v39 = vmin.f32 %v899_v19, 1.0 }
  0x34   :  { %725 = vmatmul.mubr.bf16.gmra.mxu1 %v1640_v46  ;;  %635 = vmatprep.mubr.bf16.mxu0 %v1642_v47  ;;  %v2009_v46 = vmin.f32 %v891_v26, 1.0  ;;  %v2014_v47 = vld [vmem:[%s2364_s1 + $0x70] sm:$0xff]  ;;  %v2057_v26 = vmin.f32 %v897_v10, 1.0 }
  0x35   :  { %732 = vmatprep.mubr.bf16.mxu1 %v1644_v51  ;;  %v933_v51 = vadd.f32 1e-08, %v2007_v44  ;;  %v967_v53 = vmul.f32 %v951_v45, %v1984_v30  ;;  %v932_v61 = vadd.f32 1e-08, %v2014_v47  ;;  %v900_v48 = vmax.f32 %v2014_v47, 0.0 }
  0x36   :  { %v971_v63 = vmul.f32 %v955_v56, %v2009_v46  ;;  %v1673_v44 = vld [vmem:[%s2363_s0 + $0x120] ss:$20 sps:$4 sm:$0xff]   ;;  %v1674_v47 = vld [vmem:[%s2363_s0 + $0x10] ss:$20 sps:$4 sm:$0xff]  }
  0x37   :  { %1710 = vrcp.f32 %v933_v51  ;;  %989 = vperm.xlu0 %1588, %v967_v53   ;;  %v1672_v51 = vld [vmem:[%s2363_s0 + $0x118] ss:$20 sps:$4 sm:$0xff]   ;;  %v917_v53 = vmin.f32 %v901_v41, 1.0  ;;  %v916_v56 = vmin.f32 %v900_v48, 1.0 }
  0x38   :  { %1712 = vrcp.f32 %v932_v61  ;;  %1009 = vperm.xlu1 %1589, %v971_v63   ;;  %v1676_v63 = vld [vmem:[%s2363_s0 + $0x38] ss:$20 sps:$4 sm:$0xff]  }
  0x3b   :  { %636 = vmatmul.mubr.bf16.gmra.mxu0 %v1646_v60  ;;  %v2029_v60 = vmin.f32 %v892_v42, 1.0 }
  0x3c   :  { %733 = vmatmul.mubr.bf16.gmra.mxu1 %v1647_v0  ;;  %643 = vmatprep.mubr.bf16.mxu0 %v1648_v3  ;;  %v957_v0 = vmul.f32 576.0, %v1695_v58  ;;  %v970_v3 = vmul.f32 %v954_v59, %v2017_v50  ;;  %v1675_v59 = vld [vmem:[%s2363_s0 + $0xb0] ss:$20 sps:$4 sm:$0xff]  }
  0x3d   :  { %740 = vmatprep.mubr.bf16.mxu1 %v1650_v5  ;;  %v894_v5 = vmax.f32 %v1949_v11, 0.0  ;;  %v972_v14 = vmul.f32 %v956_v4, %v2029_v60  ;;  %v959_v11 = vmul.f32 576.0, %v1699_v7  ;;  %v1681_v4 = vld [vmem:[%s2363_s0 + $0x128] ss:$20 sps:$4 sm:$0xff]  }
  0x3e   :  { %v973_v8 = vmul.f32 %v957_v0, %v2027_v57  ;;  %1004 = vperm.xlu0 %1588, %v970_v3   ;;  %v1677_v0 = vld [vmem:[%s2363_s0 + $0xd8] ss:$20 sps:$4 sm:$0xff]   ;;  %v1680_v3 = vld [vmem:[%s2363_s0 + $0x88] ss:$20 sps:$4 sm:$0xff]  }
  0x3f   :  { %v2047_v15 = vmin.f32 %v894_v5, 1.0  ;;  %v975_v25 = vmul.f32 %v959_v11, %v2043_v9 }
  0x40   :  { %1019 = vperm.xlu1 %1589, %v973_v8  }
  0x42   :  { %1014 = vperm.xlu0 %1588, %v972_v14  }
  0x43   :  { %644 = vmatmul.mubr.bf16.gmra.mxu0 %v1652_v13  ;;  %v1701_v13 = vpop.eup %1700 }
  0x44   :  { %741 = vmatmul.mubr.bf16.gmra.mxu1 %v1653_v21  ;;  %651 = vmatprep.mubr.bf16.mxu0 %v1655_v31  ;;  %v1703_v18 = vpop.eup %1702  ;;  %v958_v20 = vmul.f32 576.0, %v1701_v13 }
  0x45   :  { %748 = vmatprep.mubr.bf16.mxu1 %v1657_v35  ;;  %v1705_v21 = vpop.eup %1704  ;;  %v961_v27 = vmul.f32 576.0, %v1703_v18  ;;  %v898_v35 = vmax.f32 %v1999_v38, 0.0  ;;  %1029 = vperm.xlu1 %1589, %v975_v25  }
  0x46   :  { %v1707_v29 = vpop.eup %1706  ;;  %v974_v31 = vmul.f32 %v958_v20, %v2047_v15  ;;  %v960_v33 = vmul.f32 576.0, %v1705_v21 }
  0x47   :  { %v1709_v36 = vpop.eup %1708  ;;  %v977_v28 = vmul.f32 %v961_v27, %v2057_v26  ;;  %v963_v40 = vmul.f32 576.0, %v1707_v29  ;;  %v914_v38 = vmin.f32 %v898_v35, 1.0 }
  0x48   :  { %v1711_v42 = vpop.eup %1710  ;;  %1024 = vperm.xlu0 %1588, %v974_v31   ;;  %v976_v43 = vmul.f32 %v960_v33, %v2061_v32  ;;  %v962_v45 = vmul.f32 576.0, %v1709_v36 }
  0x49   :  { %v1713_v49 = vpop.eup %1712  ;;  %1039 = vperm.xlu1 %1589, %v977_v28   ;;  %v979_v52 = vmul.f32 %v963_v40, %v915_v39 }
  0x4a   :  { %v964_v58 = vmul.f32 576.0, %v1713_v49 }
  0x4b   :  { %652 = vmatmul.mubr.bf16.gmra.mxu0 %v1659_v54  ;;  %v965_v54 = vmul.f32 576.0, %v1711_v42 }
  0x4c   :  { %749 = vmatmul.mubr.bf16.gmra.mxu1 %v1660_v55  ;;  %659 = vmatprep.mubr.bf16.mxu0 %v1661_v1  ;;  %v978_v55 = vmul.f32 %v962_v45, %v914_v38  ;;  %v980_v62 = vmul.f32 %v964_v58, %v916_v56  ;;  %v1678_v1 = vld [vmem:[%s2363_s0 + $0x60] ss:$20 sps:$4 sm:$0xff]  }
  0x4d   :  { %756 = vmatprep.mubr.bf16.mxu1 %v1663_v6  ;;  %1034 = vperm.xlu0 %1588, %v976_v43   ;;  %v981_v61 = vmul.f32 %v965_v54, %v917_v53 }
  0x4e   :  { %1049 = vperm.xlu1 %1589, %v979_v52  }
  0x51   :  { %1044 = vperm.xlu0 %1588, %v978_v55  }
  0x52   :  { %1059 = vperm.xlu1 %1589, %v981_v61  }
  0x53   :  { %660 = vmatmul.mubr.bf16.gmra.mxu0 %v1665_v24 }
  0x54   :  { %757 = vmatmul.mubr.bf16.gmra.mxu1 %v1666_v12  ;;  %667 = vmatprep.mubr.bf16.mxu0 %v1668_v34 }
  0x55   :  { %764 = vmatprep.mubr.bf16.mxu1 %v1670_v37  ;;  %1054 = vperm.xlu0 %1588, %v980_v62  }
  0x56   :  { %1108 = vperm.xlu1 %1589, %v1984_v30  }
  0x59   :  { %1103 = vperm.xlu0 %1588, %v1973_v22  }
  0x5a   :  { %1118 = vperm.xlu1 %1589, %v1975_v23  }
  0x5b   :  { %668 = vmatmul.mubr.bf16.gmra.mxu0 %v1672_v51 }
  0x5c   :  { %765 = vmatmul.mubr.bf16.gmra.mxu1 %v1673_v44  ;;  %1563 = vmatprep.mubr.msk.bf16.mxu0 %vm554_vm0, %v1674_v47 }
  0x5d   :  { %1571 = vmatprep.mubr.msk.bf16.mxu1 %vm554_vm0, %v1675_v59  ;;  %1113 = vperm.xlu0 %1588, %v1962_v17  }
  0x5e   :  { %1128 = vperm.xlu1 %1589, %v2009_v46  }
  0x61   :  { %1123 = vperm.xlu0 %1588, %v2017_v50  }
  0x62   :  { %1138 = vperm.xlu1 %1589, %v2027_v57  }
  0x63   :  { %1564 = vmatmul.mubr.msk.bf16.vlgmr.msra.gmra.mxu0 %vm554_vm0, %v1676_v63 }
  0x64   :  { %1572 = vmatmul.mubr.msk.bf16.vlgmr.msra.gmra.mxu1 %vm554_vm0, %v1677_v0  ;;  %1567 = vmatprep.mubr.msk.bf16.mxu0 %vm554_vm0, %v1678_v1 }
  0x65   :  { %1575 = vmatprep.mubr.msk.bf16.mxu1 %vm554_vm0, %v1679_v2  ;;  %1133 = vperm.xlu0 %1588, %v2029_v60  }
  0x66   :  { %1148 = vperm.xlu1 %1589, %v2043_v9  }
  0x69   :  { %1143 = vperm.xlu0 %1588, %v2047_v15  }
  0x6a   :  { %1158 = vperm.xlu1 %1589, %v2057_v26  }
  0x6b   :  { %1568 = vmatmul.mubr.msk.bf16.gmra.mxu0 %vm554_vm0, %v1680_v3 }
  0x6c   :  { %1576 = vmatmul.mubr.msk.bf16.gmra.mxu1 %vm554_vm0, %v1681_v4 }
  0x6d   :  { %1153 = vperm.xlu0 %1588, %v2061_v32  }
  0x6e   :  { %1168 = vperm.xlu1 %1589, %v915_v39  }
  0x71   :  { %1163 = vperm.xlu0 %1588, %v914_v38  }
  0x72   :  { %1178 = vperm.xlu1 %1589, %v917_v53  }
  0x75   :  { %1173 = vperm.xlu0 %1588, %v916_v56  }
  0xa2   :  { %v2126_v22 = vpop.permute.xlu1 %994 }
  0xa3   :  { %2368 = vst [vmem:[#allocation3_spill] sm:$0xff] %v2126_v22 }
  0xaa   :  { %v2124_v17 = vpop.permute.xlu0 %984 }
  0xab   :  { %2367 = vst [vmem:[#allocation2_spill] sm:$0xff] %v2124_v17  ;;  %v2136_v57 = vpop.permute.xlu1 %999 }
  0xac   :  { %2370 = vst [vmem:[#allocation5_spill] sm:$0xff] %v2136_v57 }
  0xb2   :  { %v2128_v23 = vpop.permute.xlu0 %989 }
  0xb3   :  { %2369 = vst [vmem:[#allocation4_spill] sm:$0xff] %v2128_v23  ;;  %v2152_v13 = vpop.permute.xlu1 %1009 }
  0xb4   :  { %2372 = vst [vmem:[#allocation7_spill] sm:$0xff] %v2152_v13 }
  0xb9   :  { %v2142_v6 = vpop.permute.xlu0 %1004 }
  0xba   :  { %2371 = vst [vmem:[#allocation6_spill] sm:$0xff] %v2142_v6 }
  0xbb   :  { %v2166_v24 = vpop.permute.xlu1 %1019 }
  0xbc   :  { %2374 = vst [vmem:[#allocation9_spill] sm:$0xff] %v2166_v24 }
  0xbd   :  { %v2158_v15 = vpop.permute.xlu0 %1014 }
  0xbe   :  { %2373 = vst [vmem:[#allocation8_spill] sm:$0xff] %v2158_v15 }
  0xc0   :  { %v2172_v32 = vpop.permute.xlu1 %1029 }
  0xc1   :  { %2376 = vst [vmem:[#allocation11_spill] sm:$0xff] %v2172_v32 }
  0xc3   :  { %v2170_v26 = vpop.permute.xlu0 %1024 }
  0xc4   :  { %2375 = vst [vmem:[#allocation10_spill] sm:$0xff] %v2170_v26  ;;  %v2176_v40 = vpop.permute.xlu1 %1039 }
  0xc5   :  { %2378 = vst [vmem:[#allocation13_spill] sm:$0xff] %v2176_v40 }
  0xc8   :  { %v2174_v35 = vpop.permute.xlu0 %1034 }
  0xc9   :  { %2377 = vst [vmem:[#allocation12_spill] sm:$0xff] %v2174_v35  ;;  %v2186_v51 = vpop.permute.xlu1 %1049 }
  0xca   :  { %2381 = vst [vmem:[#allocation16_spill] sm:$0xff] %v2186_v51 }
  0xcc   :  { %v2180_v43 = vpop.permute.xlu0 %1044 }
  0xcd   :  { %2379 = vst [vmem:[#allocation14_spill] sm:$0xff] %v2180_v43  ;;  %v2194_v47 = vpop.permute.xlu1 %1059 }
  0xce   :  { %2385 = vst [vmem:[#allocation20_spill] sm:$0xff] %v2194_v47 }
  0xd0   :  { %v2190_v53 = vpop.permute.xlu0 %1054 }
  0xd1   :  { %2383 = vst [vmem:[#allocation18_spill] sm:$0xff] %v2190_v53  ;;  %v2198_v3 = vpop.permute.xlu1 %1108 }
  0xd2   :  { %2387 = vst [vmem:[#allocation22_spill] sm:$0xff] %v2198_v3 }
  0xd4   :  { %v2196_v62 = vpop.permute.xlu0 %1103 }
  0xd5   :  { %2386 = vst [vmem:[#allocation21_spill] sm:$0xff] %v2196_v62  ;;  %v2202_v15 = vpop.permute.xlu1 %1118 }
  0xd6   :  { %2389 = vst [vmem:[#allocation24_spill] sm:$0xff] %v2202_v15 }
  0xd8   :  { %v2200_v13 = vpop.permute.xlu0 %1113 }
  0xd9   :  { %2388 = vst [vmem:[#allocation23_spill] sm:$0xff] %v2200_v13  ;;  %v2220_v22 = vpop.permute.xlu1 %1128 }
  0xda   :  { %2391 = vst [vmem:[#allocation26_spill] sm:$0xff] %v2220_v22 }
  0xdc   :  { %v2204_v23 = vpop.permute.xlu0 %1123 }
  0xdd   :  { %2390 = vst [vmem:[#allocation25_spill] sm:$0xff] %v2204_v23 }
  0xe3   :  { %v2130_v30 = vpop.f32.mrf.mxu0 }
  0xe4   :  { %v2132_v46 = vpop.f32.mrf.mxu1 }
  0xe5   :  { %v2134_v50 = vpop.f32.mrf.mxu0 }
  0xe6   :  { %v2138_v60 = vpop.f32.mrf.mxu1  ;;  %v1433_v57 = vadd.f32 %v2134_v50, %v2130_v30 }
  0xe7   :  { %v2140_v5 = vpop.f32.mrf.mxu0  ;;  %v1497_v3 = vadd.f32 %v2138_v60, %v2132_v46 }
  0xe8   :  { %v2144_v7 = vpop.f32.mrf.mxu1 }
  0xe9   :  { %v2146_v8 = vpop.f32.mrf.mxu0 }
  0xea   :  { %v2148_v9 = vpop.f32.mrf.mxu1  ;;  %v1436_v13 = vadd.f32 %v2146_v8, %v2140_v5 }
  0xeb   :  { %v2150_v10 = vpop.f32.mrf.mxu0  ;;  %v1500_v26 = vadd.f32 %v2148_v9, %v2144_v7 }
  0xec   :  { %v2154_v14 = vpop.f32.mrf.mxu1 }
  0xed   :  { %v2156_v11 = vpop.f32.mrf.mxu0 }
  0xee   :  { %v2160_v16 = vpop.f32.mrf.mxu1  ;;  %v1439_v15 = vadd.f32 %v2156_v11, %v2150_v10  ;;  %v2223_v10 = vpop.permute.xlu0 %1133 }
  0xef   :  { %v2162_v18 = vpop.f32.mrf.mxu0  ;;  %v1503_v23 = vadd.f32 %v2160_v16, %v2154_v14 }
  0xf0   :  { %v2164_v20 = vpop.f32.mrf.mxu1 }
  0xf1   :  { %v1441_v21 = vpop.f32.mrf.mxu0 }
  0xf2   :  { %v1505_v12 = vpop.f32.mrf.mxu1  ;;  %v1442_v35 = vadd.f32 %v1441_v21, %v2162_v18  ;;  %v719_v21 = vadd.f32 %v1503_v23, %v1439_v15  ;;  %v2235_v23 = vpop.permute.xlu1 %1138 }
  0xf3   :  { %v2168_v25 = vpop.f32.mrf.mxu0  ;;  %v1506_v30 = vadd.f32 %v1505_v12, %v2164_v20  ;;  %v711_v20 = vadd.f32 %v1497_v3, %v1433_v57 }
  0xf4   :  { %v1507_v27 = vpop.f32.mrf.mxu1 }
  0xf5   :  { %v1444_v19 = vpop.f32.mrf.mxu0  ;;  %v722_v12 = vadd.f32 %v1506_v30, %v1442_v35 }
  0xf6   :  { %v1508_v29 = vpop.f32.mrf.mxu1  ;;  %v1445_v46 = vadd.f32 %v1444_v19, %v2168_v25  ;;  %v1149_v30 = vpop.permute.xlu1 %1148 }
  0xf7   :  { %v1446_v31 = vpop.f32.mrf.mxu0  ;;  %v1509_v60 = vadd.f32 %v1508_v29, %v1507_v27 }
  0xf8   :  { %v1510_v33 = vpop.f32.mrf.mxu1 }
  0xf9   :  { %v1447_v34 = vpop.f32.mrf.mxu0  ;;  %v2227_v19 = vadd.f32 %v1509_v60, %v1445_v46  ;;  %v2397_v46 = vld [vmem:[#allocation2_spill] sm:$0xff] }
  0xfa   :  { %v1511_v36 = vpop.f32.mrf.mxu1  ;;  %v1448_v5 = vadd.f32 %v1447_v34, %v1446_v31 }
  0xfb   :  { %v1449_v37 = vpop.f32.mrf.mxu0  ;;  %v1512_v8 = vadd.f32 %v1511_v36, %v1510_v33 }
  0xfc   :  { %v1513_v28 = vpop.f32.mrf.mxu1 }
  0xfd   :  { %v1450_v39 = vpop.f32.mrf.mxu0  ;;  %v2229_v29 = vadd.f32 %v1512_v8, %v1448_v5 }
  0xfe   :  { %v1514_v41 = vpop.f32.mrf.mxu1  ;;  %v1451_v9 = vadd.f32 %v1450_v39, %v1449_v37 }
  0xff   :  { %v2178_v42 = vpop.f32.mrf.mxu0 }
 0x100   :  { %v2182_v38 = vpop.f32.mrf.mxu1 }
 0x101   :  { %v1453_v45 = vpop.f32.mrf.mxu0 }
 0x102   :  { %v1517_v48 = vpop.f32.mrf.mxu1  ;;  %v1454_v22 = vadd.f32 %v1453_v45, %v2178_v42 }
 0x103   :  { %v2184_v49 = vpop.f32.mrf.mxu0  ;;  %v1518_v25 = vadd.f32 %v1517_v48, %v2182_v38 }
 0x104   :  { %2380 = vst [vmem:[#allocation15_spill] sm:$0xff] %v2184_v49  ;;  %v2188_v44 = vpop.f32.mrf.mxu1  ;;  %v714_v49 = vadd.f32 %v1500_v26, %v1436_v13 }
 0x105   :  { %2382 = vst [vmem:[#allocation17_spill] sm:$0xff] %v2188_v44  ;;  %v1456_v52 = vpop.f32.mrf.mxu0 }
 0x106   :  { %v1520_v54 = vpop.f32.mrf.mxu1 }
 0x107   :  { %v1458_v55 = vpop.f32.mrf.mxu0 }
 0x108   :  { %v2192_v56 = vpop.f32.mrf.mxu1 }
 0x109   :  { %2384 = vst [vmem:[#allocation19_spill] sm:$0xff] %v2192_v56  ;;  %v1459_v58 = vpop.f32.mrf.mxu0  ;;  %v1515_v56 = vadd.f32 %v1514_v41, %v1513_v28 }
 0x10a   :  { %v1523_v59 = vpop.f32.mrf.mxu1  ;;  %v1460_v37 = vadd.f32 %v1459_v58, %v1458_v55 }
 0x10b   :  { %v1461_v61 = vpop.f32.mrf.mxu0  ;;  %v2392_v31 = vld [vmem:[#allocation15_spill] sm:$0xff]  ;;  %v2233_v39 = vadd.f32 %v1515_v56, %v1451_v9  ;;  %v2238_v56 = vadd.f32 %v1518_v25, %v1454_v22 }
 0x10c   :  { %v1525_v63 = vpop.f32.mrf.mxu1  ;;  %v1457_v33 = vadd.f32 %v1456_v52, %v2392_v31  ;;  %v2393_v34 = vld [vmem:[#allocation17_spill] sm:$0xff]  ;;  %v1144_v52 = vpop.permute.xlu0 %1143  ;;  %v2399_v25 = vld [vmem:[#allocation23_spill] sm:$0xff] }
 0x10d   :  { %v1462_v0 = vpop.f32.mrf.mxu0  ;;  %v1521_v36 = vadd.f32 %v1520_v54, %v2393_v34 }
 0x10e   :  { %v1526_v1 = vpop.f32.mrf.mxu1  ;;  %v1463_v11 = vadd.f32 %v1462_v0, %v1461_v61 }
 0x10f   :  { %v1464_v2 = vpop.f32.mrf.mxu0  ;;  %v1527_v14 = vadd.f32 %v1526_v1, %v1525_v63 }
 0x110   :  { %v1528_v4 = vpop.f32.mrf.mxu1  ;;  %v2394_v57 = vld [vmem:[#allocation19_spill] sm:$0xff] }
 0x111   :  { %v1465_v51 = vpop.f32.mrf.mxu0  ;;  %v1524_v13 = vadd.f32 %v1523_v59, %v2394_v57  ;;  %v751_v41 = vadd.f32 %v1527_v14, %v1463_v11  ;;  %v2396_v59 = vld [vmem:[#allocation12_spill] sm:$0xff]  ;;  %v2398_v11 = vld [vmem:[#allocation10_spill] sm:$0xff]  ;;  %v2401_v57 = vld [vmem:[#allocation13_spill] sm:$0xff] }
 0x112   :  { %v1529_v24 = vpop.f32.mrf.mxu1  ;;  %v1466_v15 = vadd.f32 %v1465_v51, %v1464_v2 }
 0x113   :  { %v1467_v43 = vpop.f32.mrf.mxu0  ;;  %v1530_v26 = vadd.f32 %v1529_v24, %v1528_v4  ;;  %v2243_v24 = vld [vmem:[%s2365_s3] ss:$0 sm:$0xff] }
 0x114   :  { %v1531_v6 = vpop.f32.mrf.mxu1 }
 0x115   :  { %v1468_v53 = vpop.f32.mrf.mxu0 }
 0x116   :  { %v1532_v47 = vpop.f32.mrf.mxu1  ;;  %v1469_v42 = vadd.f32 %v1468_v53, %v1467_v43  ;;  %v754_v53 = vadd.f32 %v1530_v26, %v1466_v15 }
 0x117   :  { %v1470_v32 = vpop.f32.mrf.mxu0  ;;  %v1533_v38 = vadd.f32 %v1532_v47, %v1531_v6  ;;  %v746_v47 = vadd.f32 %v1524_v13, %v1460_v37 }
 0x118   :  { %v1534_v62 = vpop.f32.mrf.mxu1 }
 0x119   :  { %v1471_v40 = vpop.f32.mrf.mxu0  ;;  %v2247_v3 = vadd.f32 %v1533_v38, %v1469_v42 }
 0x11a   :  { %v1535_v17 = vpop.f32.mrf.mxu1  ;;  %v1472_v45 = vadd.f32 %v1471_v40, %v1470_v32  ;;  %v743_v32 = vadd.f32 %v1521_v36, %v1457_v33  ;;  %v2400_v33 = vld [vmem:[#allocation5_spill] sm:$0xff] }
 0x11b   :  { %v1473_v50 = vpop.f32.mrf.mxu0  ;;  %v1536_v48 = vadd.f32 %v1535_v17, %v1534_v62  ;;  %v2395_v17 = vld [vmem:[#allocation3_spill] sm:$0xff] }
 0x11c   :  { %v1537_v7 = vpop.f32.mrf.mxu1 }
 0x11d   :  { %v1474_v44 = vpop.f32.mrf.mxu0  ;;  %v2249_v4 = vadd.f32 %v1536_v48, %v1472_v45  ;;  %v2403_v45 = vld [vmem:[#allocation4_spill] sm:$0xff] }
 0x11e   :  { %v1538_v16 = vpop.f32.mrf.mxu1  ;;  %v1475_v63 = vadd.f32 %v1474_v44, %v1473_v50 }
 0x11f   :  { %v1476_v18 = vpop.f32.mrf.mxu0  ;;  %v1539_v54 = vadd.f32 %v1538_v16, %v1537_v7 }
 0x120   :  { %v1540_v27 = vpop.f32.mrf.mxu1 }
 0x121   :  { %v1477_v28 = vpop.f32.mrf.mxu0  ;;  %v767_v7 = vadd.f32 %v1539_v54, %v1475_v63 }
 0x122   :  { %v1541_v35 = vpop.f32.mrf.mxu1  ;;  %v1478_v0 = vadd.f32 %v1477_v28, %v1476_v18 }
 0x123   :  { %v1565_v61 = vpop.f32.mrf.mxu0  ;;  %v1542_v1 = vadd.f32 %v1541_v35, %v1540_v27 }
 0x124   :  { %v816_v55 = vadd.f32 %v1565_v61, %v719_v21  ;;  %v1573_v58 = vpop.f32.mrf.mxu1 }
 0x125   :  { %v848_v43 = vadd.f32 %v1573_v58, %v751_v41  ;;  %v807_v6 = vpop.f32.mrf.mxu0  ;;  %v2255_v21 = vadd.f32 %v1542_v1, %v1478_v0  ;;  %v2402_v41 = vld [vmem:[#allocation21_spill] sm:$0xff]  ;;  %v1159_v1 = vpop.permute.xlu1 %1158 }
 0x126   :  { %v1064_v40 = vmul.f32 %v2395_v17, %v816_v55  ;;  %v808_v51 = vadd.f32 %v807_v6, %v711_v20  ;;  %v839_v44 = vpop.f32.mrf.mxu1  ;;  %v1154_v20 = vpop.permute.xlu0 %1153  ;;  %v2404_v55 = vld [vmem:[#allocation11_spill] sm:$0xff] }
 0x127   :  { %v1072_v22 = vmul.f32 %v2396_v59, %v848_v43  ;;  %v840_v62 = vadd.f32 %v839_v44, %v743_v32  ;;  %v1566_v2 = vpop.f32.mrf.mxu0  ;;  %v2405_v32 = vld [vmem:[#allocation24_spill] sm:$0xff] }
 0x128   :  { %v1087_v50 = vadd.f32 %v2243_v24, %v1064_v40  ;;  %v1062_v60 = vmul.f32 %v2397_v46, %v808_v51  ;;  %v819_v5 = vadd.f32 %v1566_v2, %v722_v12  ;;  %v1574_v8 = vpop.f32.mrf.mxu1 }
 0x129   :  { %v1095_v9 = vadd.f32 %v2243_v24, %v1072_v22  ;;  %v1070_v14 = vmul.f32 %v2398_v11, %v840_v62  ;;  %v851_v16 = vadd.f32 %v1574_v8, %v754_v53  ;;  %v810_v18 = vpop.f32.mrf.mxu0 }
 0x12a   :  { %v1183_v27 = vmul.f32 %v2399_v25, %v1087_v50  ;;  %v1085_v31 = vadd.f32 %v2243_v24, %v1062_v60  ;;  %v1065_v34 = vmul.f32 %v2400_v33, %v819_v5  ;;  %v811_v36 = vadd.f32 %v810_v18, %v714_v49  ;;  %v842_v37 = vpop.f32.mrf.mxu1  ;;  %v2406_v50 = vld [vmem:[#allocation22_spill] sm:$0xff] }
 0x12b   :  { %v1191_v12 = vmul.f32 %v1154_v20, %v1095_v9  ;;  %v1093_v28 = vadd.f32 %v2243_v24, %v1070_v14  ;;  %v1073_v13 = vmul.f32 %v2401_v57, %v851_v16  ;;  %v843_v15 = vadd.f32 %v842_v37, %v746_v47  ;;  %v1569_v26 = vpop.f32.mrf.mxu0  ;;  %v2407_v20 = vld [vmem:[#allocation8_spill] sm:$0xff] }
 0x12c   :  { %v1199_v35 = vmax.f32 %v1183_v27, 0.0  ;;  %v1181_v42 = vmul.f32 %v2402_v41, %v1085_v31  ;;  %v1088_v38 = vadd.f32 %v2243_v24, %v1065_v34  ;;  %v1063_v48 = vmul.f32 %v2403_v45, %v811_v36  ;;  %v1577_v61 = vpop.f32.mrf.mxu1  ;;  %v1169_v36 = vpop.permute.xlu1 %1168  ;;  %v2411_v45 = vld [vmem:[#allocation9_spill] sm:$0xff] }
 0x12d   :  { %v1207_v63 = vmax.f32 %v1191_v12, 0.0  ;;  %v1189_v54 = vmul.f32 %v1144_v52, %v1093_v28  ;;  %v1096_v49 = vadd.f32 %v2243_v24, %v1073_v13  ;;  %v1071_v58 = vmul.f32 %v2404_v55, %v843_v15  ;;  %v823_v0 = vpop.f32.mrf.mxu0  ;;  %v1164_v52 = vpop.permute.xlu0 %1163  ;;  %v2409_v12 = vld [vmem:[#allocation6_spill] sm:$0xff] }
 0x12e   :  { %v1401_v43 = vpack.c.bf16 %v1199_v35, %v1199_v35  ;;  %v1197_v6 = vmax.f32 %v1181_v42, 0.0  ;;  %v1184_v17 = vmul.f32 %v2405_v32, %v1088_v38  ;;  %v1086_v40 = vadd.f32 %v2243_v24, %v1063_v48  ;;  %v855_v51 = vpop.f32.mrf.mxu1 }
 0x12f   :  { %v1409_v44 = vpack.c.bf16 %v1207_v63, %v1207_v63  ;;  %v1205_v53 = vmax.f32 %v1189_v54, 0.0  ;;  %v1192_v47 = vmul.f32 %v1159_v1, %v1096_v49  ;;  %v1094_v59 = vadd.f32 %v2243_v24, %v1071_v58  ;;  %v1570_v22 = vpop.f32.mrf.mxu0  ;;  %v2412_v54 = vld [vmem:[#allocation20_spill] sm:$0xff] }
 0x130   :  { %1280 = vst.msk [vmem:[%s2366_s4 + $0x8] sm:$0xf] %vm1277_vm1, %v1401_v43  ;;  %v1399_v62 = vpack.c.bf16 %v1197_v6, %v1197_v6  ;;  %v1200_v2 = vmax.f32 %v1184_v17, 0.0  ;;  %v1182_v46 = vmul.f32 %v2406_v50, %v1086_v40  ;;  %v832_v60 = vadd.f32 %v1569_v26, %v2233_v39  ;;  %v1578_v5 = vpop.f32.mrf.mxu1  ;;  %v2410_v26 = vld [vmem:[#allocation14_spill] sm:$0xff]  ;;  %v2414_v43 = vld [vmem:[#allocation7_spill] sm:$0xff]  ;;  %v2415_v40 = vld [vmem:[#allocation16_spill] sm:$0xff] }
 0x131   :  { %1288 = vst.msk [vmem:[%s2366_s4 + $0x28] sm:$0xf] %vm1277_vm1, %v1409_v44  ;;  %v1407_v8 = vpack.c.bf16 %v1205_v53, %v1205_v53  ;;  %v1208_v9 = vmax.f32 %v1192_v47, 0.0  ;;  %v1190_v11 = vmul.f32 %v1149_v30, %v1094_v59  ;;  %v864_v14 = vadd.f32 %v1577_v61, %v767_v7  ;;  %v2408_v30 = vld [vmem:[#allocation18_spill] sm:$0xff]  ;;  %v826_v34 = vpop.f32.mrf.mxu0  ;;  %v1174_v42 = vpop.permute.xlu0 %1173 }
 0x132   :  { %1278 = vst.msk [vmem:[%s2366_s4] sm:$0xf] %vm1277_vm1, %v1399_v62  ;;  %v1402_v16 = vpack.c.bf16 %v1200_v2, %v1200_v2  ;;  %v1198_v18 = vmax.f32 %v1182_v46, 0.0  ;;  %v1068_v25 = vmul.f32 %v2407_v20, %v832_v60  ;;  %v824_v39 = vadd.f32 %v823_v0, %v2227_v19  ;;  %v858_v13 = vpop.f32.mrf.mxu1  ;;  %v1179_v44 = vpop.permute.xlu1 %1178  ;;  %v2416_v60 = vld [vmem:[#allocation26_spill] sm:$0xff] }
 0x133   :  { %1286 = vst.msk [vmem:[%s2366_s4 + $0x20] sm:$0xf] %vm1277_vm1, %v1407_v8  ;;  %v1410_v27 = vpack.c.bf16 %v1208_v9, %v1208_v9  ;;  %v1206_v31 = vmax.f32 %v1190_v11, 0.0  ;;  %v1076_v7 = vmul.f32 %v2408_v30, %v864_v14  ;;  %v856_v33 = vadd.f32 %v855_v51, %v2247_v3 }
 0x134   :  { %1281 = vst.msk [vmem:[%s2366_s4 + $0xc] sm:$0xf] %vm1277_vm1, %v1402_v16  ;;  %v1400_v37 = vpack.c.bf16 %v1198_v18, %v1198_v18  ;;  %v1091_v19 = vadd.f32 %v2243_v24, %v1068_v25  ;;  %v1066_v28 = vmul.f32 %v2409_v12, %v824_v39  ;;  %v835_v57 = vadd.f32 %v1570_v22, %v2238_v56 }
 0x135   :  { %1289 = vst.msk [vmem:[%s2366_s4 + $0x2c] sm:$0xf] %vm1277_vm1, %v1410_v27  ;;  %v1408_v3 = vpack.c.bf16 %v1206_v31, %v1206_v31  ;;  %v1099_v15 = vadd.f32 %v2243_v24, %v1076_v7  ;;  %v1074_v35 = vmul.f32 %v2410_v26, %v856_v33  ;;  %v867_v41 = vadd.f32 %v1578_v5, %v2255_v21 }
 0x136   :  { %1279 = vst.msk [vmem:[%s2366_s4 + $0x4] sm:$0xf] %vm1277_vm1, %v1400_v37  ;;  %v1187_v56 = vmul.f32 %v2223_v10, %v1091_v19  ;;  %v1089_v38 = vadd.f32 %v2243_v24, %v1066_v28  ;;  %v1069_v48 = vmul.f32 %v2411_v45, %v835_v57  ;;  %v827_v61 = vadd.f32 %v826_v34, %v2229_v29  ;;  %v2413_v10 = vld [vmem:[#allocation25_spill] sm:$0xff] }
 0x137   :  { %1287 = vst.msk [vmem:[%s2366_s4 + $0x24] sm:$0xf] %vm1277_vm1, %v1408_v3  ;;  %v1195_v21 = vmul.f32 %v1174_v42, %v1099_v15  ;;  %v1097_v63 = vadd.f32 %v2243_v24, %v1074_v35  ;;  %v1077_v49 = vmul.f32 %v2412_v54, %v867_v41  ;;  %v859_v55 = vadd.f32 %v858_v13, %v2249_v4 }
 0x138   :  { %v1203_v58 = vmax.f32 %v1187_v56, 0.0  ;;  %v1185_v0 = vmul.f32 %v2413_v10, %v1089_v38  ;;  %v1092_v1 = vadd.f32 %v2243_v24, %v1069_v48  ;;  %v1067_v6 = vmul.f32 %v2414_v43, %v827_v61 }
 0x139   :  { %v1211_v29 = vmax.f32 %v1195_v21, 0.0  ;;  %v1193_v32 = vmul.f32 %v1164_v52, %v1097_v63  ;;  %v1100_v17 = vadd.f32 %v2243_v24, %v1077_v49  ;;  %v1075_v51 = vmul.f32 %v2415_v40, %v859_v55 }
 0x13a   :  { %v1405_v53 = vpack.c.bf16 %v1203_v58, %v1203_v58  ;;  %v1201_v47 = vmax.f32 %v1185_v0, 0.0  ;;  %v1188_v59 = vmul.f32 %v2235_v23, %v1092_v1  ;;  %v1090_v4 = vadd.f32 %v2243_v24, %v1067_v6 }
 0x13b   :  { %v1413_v22 = vpack.c.bf16 %v1211_v29, %v1211_v29  ;;  %v1209_v62 = vmax.f32 %v1193_v32, 0.0  ;;  %v1196_v2 = vmul.f32 %v1179_v44, %v1100_v17  ;;  %v1098_v50 = vadd.f32 %v2243_v24, %v1075_v51 }
 0x13c   :  { %1284 = vst.msk [vmem:[%s2366_s4 + $0x18] sm:$0xf] %vm1277_vm1, %v1405_v53  ;;  %v1403_v52 = vpack.c.bf16 %v1201_v47, %v1201_v47  ;;  %v1204_v46 = vmax.f32 %v1188_v59, 0.0  ;;  %v1186_v5 = vmul.f32 %v2416_v60, %v1090_v4 }
 0x13d   :  { %1292 = vst.msk [vmem:[%s2366_s4 + $0x38] sm:$0xf] %vm1277_vm1, %v1413_v22  ;;  %v1411_v23 = vpack.c.bf16 %v1209_v62, %v1209_v62  ;;  %v1212_v8 = vmax.f32 %v1196_v2, 0.0  ;;  %v1194_v9 = vmul.f32 %v1169_v36, %v1098_v50 }
 0x13e   :  { %1282 = vst.msk [vmem:[%s2366_s4 + $0x10] sm:$0xf] %vm1277_vm1, %v1403_v52  ;;  %v1406_v24 = vpack.c.bf16 %v1204_v46, %v1204_v46  ;;  %v1202_v11 = vmax.f32 %v1186_v5, 0.0 }
 0x13f   :  { %1290 = vst.msk [vmem:[%s2366_s4 + $0x30] sm:$0xf] %vm1277_vm1, %v1411_v23  ;;  %v1414_v14 = vpack.c.bf16 %v1212_v8, %v1212_v8  ;;  %v1210_v16 = vmax.f32 %v1194_v9, 0.0 }
 0x140   :  { %1285 = vst.msk [vmem:[%s2366_s4 + $0x1c] sm:$0xf] %vm1277_vm1, %v1406_v24  ;;  %v1404_v18 = vpack.c.bf16 %v1202_v11, %v1202_v11 }
 0x141   :  { %1293 = vst.msk [vmem:[%s2366_s4 + $0x3c] sm:$0xf] %vm1277_vm1, %v1414_v14  ;;  %v1412_v20 = vpack.c.bf16 %v1210_v16, %v1210_v16 }
 0x142   :  { %1283 = vst.msk [vmem:[%s2366_s4 + $0x14] sm:$0xf] %vm1277_vm1, %v1404_v18 }
 0x143   :  { %1291 = vst.msk [vmem:[%s2366_s4 + $0x34] sm:$0xf] %vm1277_vm1, %v1412_v20 }

// kernel: partial_conv_autoencoder.11
= control target key start
LH: loop header
LB: loop body
LE: loop exit
PB: predicated region body
PF: predicated region fallthrough
CT: control target
= control target key end

     0   :  { %s1044_s15 = smov 0   ;;  %s1046_s16 = smov 0   ;;  %s1233_s0 = inlined_call_operand.vmem [shape: bf16[288,512], index: 0, kind: input, shape index: {}]   ;;  %s1234_s1 = inlined_call_operand.vmem [shape: f32[1,512], index: 1, kind: input, shape index: {}]   ;;  %s1235_s2 = inlined_call_operand.vmem [shape: bf16[3,288], index: 2, kind: input, shape index: {}]   ;;  %s1236_s3 = inlined_call_operand.vmem [shape: f32[3,1], index: 3, kind: input, shape index: {}]   ;;  %s1237_s4 = inlined_call_operand.vmem [shape: f32[3,512], index: 4, kind: output, shape index: {}]  }
   0x1   :  { %s1048_s17 = smov 0  }
   0x2 LB: > { %s847_s18 = sadd.s32 4294967295, %s1015_s17   ;;  %s1061_s19 = sadd.s32 1, %s1015_s17   ;;  %s1015_s17 = sphi %s1048_s17, %s1240_s17   ;;  %s1011_s16 = sphi %s1046_s16, %s1239_s16   ;;  %s1007_s15 = sphi %s1044_s15, %s1238_s15  }
   0x3   : > { %s18_s20 = ssub.s32 %s1015_s17, %s1061_s19  ;;  %s21_s21 = sadd.s32 1, %s1011_s16 }
   0x4   : > { %p19_p0 = scmp.eq.s32.totalorder %s18_s20, 0  ;;  %p28_p1 = scmp.ne.s32.totalorder %s1011_s16, %s1007_s15 }
   0x5   : > { %p29_p2 = scmp.eq.s32.totalorder %s1015_s17, 0  ;;  %p850_p4 = scmp.ge.s32.totalorder %s1015_s17, 2 }
   0x6   : > { %s1070_s22 = scalar_select %p19_p0, %s1011_s16, %s21_s21  }
   0x7   : > { %p30_p3 = por %p29_p2, %p28_p1  ;;  %154 = sbr.rel (%p850_p4) target bundleno = 34 (0x22), region = 24 }
   0xc   : > { %157 = sbr.rel (!%p30_p3) target bundleno = 34 (0x22), region = 28  ;;  %s159_s23 = sand.u32 (%p30_p3), 1, %s1011_s16  }
   0xd   : > { %s898_s24 = sshll.u32 (%p30_p3), %s1015_s17, 3  ;;  %s899_s25 = smul.u32 (%p30_p3), 288, %s159_s23 }
   0xe   : > { %s1078_s28 = scalar_lea.vmem (%p30_p3), %s1233_s0, %s898_s24 }
   0xf   : > { %v263_v0 = vld [vmem:[%s1078_s28] sm:$0xff] (%p30_p3)  ;;  %v265_v1 = vld [vmem:[%s1078_s28 + $0x10] sm:$0xff] (%p30_p3)  ;;  %s1086_s29 = scalar_lea.vmem (%p30_p3), [#allocation2], %s899_s25 }
  0x10   : > { %v267_v2 = vld [vmem:[%s1078_s28 + $0x20] sm:$0xff] (%p30_p3)  ;;  %v269_v3 = vld [vmem:[%s1078_s28 + $0x30] sm:$0xff] (%p30_p3)  ;;  %264 = vst [vmem:[%s1086_s29] sm:$0xff] (%p30_p3), %v263_v0  ;;  %266 = vst [vmem:[%s1086_s29 + $0x8] sm:$0xff] (%p30_p3), %v265_v1 }
  0x11   : > { %v271_v4 = vld [vmem:[%s1078_s28 + $0x40] sm:$0xff]  ;;  %v273_v5 = vld [vmem:[%s1078_s28 + $0x50] sm:$0xff]  ;;  %268 = vst [vmem:[%s1086_s29 + $0x10] sm:$0xff] %v267_v2  ;;  %270 = vst [vmem:[%s1086_s29 + $0x18] sm:$0xff] %v269_v3 }
  0x12   : > { %272 = vst [vmem:[%s1086_s29 + $0x20] sm:$0xff] %v271_v4  ;;  %274 = vst [vmem:[%s1086_s29 + $0x28] sm:$0xff] %v273_v5  ;;  %v275_v6 = vld [vmem:[%s1078_s28 + $0x60] sm:$0xff]  ;;  %v277_v7 = vld [vmem:[%s1078_s28 + $0x70] sm:$0xff] }
  0x13   : > { %v279_v8 = vld [vmem:[%s1078_s28 + $0x80] sm:$0xff]  ;;  %276 = vst [vmem:[%s1086_s29 + $0x30] sm:$0xff] %v275_v6  ;;  %278 = vst [vmem:[%s1086_s29 + $0x38] sm:$0xff] %v277_v7  ;;  %v281_v9 = vld [vmem:[%s1078_s28 + $0x90] sm:$0xff] }
  0x14   : > { %280 = vst [vmem:[%s1086_s29 + $0x40] sm:$0xff] %v279_v8  ;;  %v283_v10 = vld [vmem:[%s1078_s28 + $0xa0] sm:$0xff]  ;;  %v285_v11 = vld [vmem:[%s1078_s28 + $0xb0] sm:$0xff]  ;;  %282 = vst [vmem:[%s1086_s29 + $0x48] sm:$0xff] %v281_v9 }
  0x15   : > { %284 = vst [vmem:[%s1086_s29 + $0x50] sm:$0xff] %v283_v10  ;;  %286 = vst [vmem:[%s1086_s29 + $0x58] sm:$0xff] %v285_v11  ;;  %v287_v12 = vld [vmem:[%s1078_s28 + $0xc0] sm:$0xff]  ;;  %v289_v13 = vld [vmem:[%s1078_s28 + $0xd0] sm:$0xff] }
  0x16   : > { %v291_v14 = vld [vmem:[%s1078_s28 + $0xe0] sm:$0xff]  ;;  %288 = vst [vmem:[%s1086_s29 + $0x60] sm:$0xff] %v287_v12  ;;  %290 = vst [vmem:[%s1086_s29 + $0x68] sm:$0xff] %v289_v13  ;;  %v293_v15 = vld [vmem:[%s1078_s28 + $0xf0] sm:$0xff] }
  0x17   : > { %292 = vst [vmem:[%s1086_s29 + $0x70] sm:$0xff] %v291_v14  ;;  %v295_v16 = vld [vmem:[%s1078_s28 + $0x100] sm:$0xff]  ;;  %v297_v17 = vld [vmem:[%s1078_s28 + $0x110] sm:$0xff]  ;;  %294 = vst [vmem:[%s1086_s29 + $0x78] sm:$0xff] %v293_v15 }
  0x18   : > { %296 = vst [vmem:[%s1086_s29 + $0x80] sm:$0xff] %v295_v16  ;;  %298 = vst [vmem:[%s1086_s29 + $0x88] sm:$0xff] %v297_v17  ;;  %v299_v18 = vld [vmem:[%s1078_s28 + $0x120] sm:$0xff]  ;;  %v301_v19 = vld [vmem:[%s1078_s28 + $0x130] sm:$0xff] }
  0x19   : > { %v303_v20 = vld [vmem:[%s1078_s28 + $0x140] sm:$0xff]  ;;  %300 = vst [vmem:[%s1086_s29 + $0x90] sm:$0xff] %v299_v18  ;;  %302 = vst [vmem:[%s1086_s29 + $0x98] sm:$0xff] %v301_v19  ;;  %v305_v21 = vld [vmem:[%s1078_s28 + $0x150] sm:$0xff] }
  0x1a   : > { %304 = vst [vmem:[%s1086_s29 + $0xa0] sm:$0xff] %v303_v20  ;;  %v307_v22 = vld [vmem:[%s1078_s28 + $0x160] sm:$0xff]  ;;  %v309_v23 = vld [vmem:[%s1078_s28 + $0x170] sm:$0xff]  ;;  %306 = vst [vmem:[%s1086_s29 + $0xa8] sm:$0xff] %v305_v21 }
  0x1b   : > { %308 = vst [vmem:[%s1086_s29 + $0xb0] sm:$0xff] %v307_v22  ;;  %310 = vst [vmem:[%s1086_s29 + $0xb8] sm:$0xff] %v309_v23  ;;  %v311_v24 = vld [vmem:[%s1078_s28 + $0x180] sm:$0xff]  ;;  %v313_v25 = vld [vmem:[%s1078_s28 + $0x190] sm:$0xff] }
  0x1c   : > { %v315_v26 = vld [vmem:[%s1078_s28 + $0x1a0] sm:$0xff]  ;;  %312 = vst [vmem:[%s1086_s29 + $0xc0] sm:$0xff] %v311_v24  ;;  %314 = vst [vmem:[%s1086_s29 + $0xc8] sm:$0xff] %v313_v25  ;;  %v317_v27 = vld [vmem:[%s1078_s28 + $0x1b0] sm:$0xff] }
  0x1d   : > { %316 = vst [vmem:[%s1086_s29 + $0xd0] sm:$0xff] %v315_v26  ;;  %v319_v28 = vld [vmem:[%s1078_s28 + $0x1c0] sm:$0xff]  ;;  %v321_v29 = vld [vmem:[%s1078_s28 + $0x1d0] sm:$0xff]  ;;  %318 = vst [vmem:[%s1086_s29 + $0xd8] sm:$0xff] %v317_v27 }
  0x1e   : > { %320 = vst [vmem:[%s1086_s29 + $0xe0] sm:$0xff] %v319_v28  ;;  %322 = vst [vmem:[%s1086_s29 + $0xe8] sm:$0xff] %v321_v29  ;;  %v323_v30 = vld [vmem:[%s1078_s28 + $0x1e0] sm:$0xff]  ;;  %v325_v31 = vld [vmem:[%s1078_s28 + $0x1f0] sm:$0xff] }
  0x1f   : > { %v327_v32 = vld [vmem:[%s1078_s28 + $0x200] sm:$0xff]  ;;  %324 = vst [vmem:[%s1086_s29 + $0xf0] sm:$0xff] %v323_v30  ;;  %326 = vst [vmem:[%s1086_s29 + $0xf8] sm:$0xff] %v325_v31  ;;  %v329_v33 = vld [vmem:[%s1078_s28 + $0x210] sm:$0xff] }
  0x20   : > { %328 = vst [vmem:[%s1086_s29 + $0x100] sm:$0xff] %v327_v32  ;;  %v331_v34 = vld [vmem:[%s1078_s28 + $0x220] sm:$0xff]  ;;  %v333_v35 = vld [vmem:[%s1078_s28 + $0x230] sm:$0xff]  ;;  %330 = vst [vmem:[%s1086_s29 + $0x108] sm:$0xff] %v329_v33 }
  0x21   : > { %332 = vst [vmem:[%s1086_s29 + $0x110] sm:$0xff] %v331_v34  ;;  %334 = vst [vmem:[%s1086_s29 + $0x118] sm:$0xff] %v333_v35 }
  0x22 PF: > { %p853_p5 = scmp.ge.s32.totalorder %s1015_s17, 1  ;;  %p347_p6 = scmp.lt.s32.totalorder %s1015_s17, 3 }
  0x24   : > { %p348_p7 = pnand %p853_p5, %p347_p6 }
  0x25   : > { %s354_s30 = sand.u32 (!%p348_p7), 1, %s1007_s15   ;;  %s854_s11 = sshll.u32 (!%p348_p7), %s847_s18, 1 }
  0x26   : > { %351 = sbr.rel (%p348_p7) target bundleno = 347 (0x15b), region = 70  ;;  %p385_p8 = scmp.lt.s32.totalorder (!%p348_p7), %s854_s11, 3 }
  0x27   : > { %s900_s5 = smul.u32 (!%p348_p7), 288, %s354_s30 }
  0x29   : > { %s1162_s8 = scalar_lea.vmem (!%p348_p7), [#allocation2], %s900_s5 }
  0x2b   : > { %v438_v36 = vlaneseq  ;;  %v1017_v37 = vmov 0   ;;  %v1018_v38 = vmov 1983009808   ;;  %v738_v40 = vld [vmem:[%s1236_s3] sm:$0x7]  ;;  %vm632_vm0 = vcmask 261120  }
  0x2c   : > { %709 = vmatprep.mubr.bf16.mxu1 %v1017_v37  ;;  %v436_v39 = vunpack.c.l.s4 %v1018_v38  ;;  %927 = vset.pattern.permute.xlu0 %v1017_v37  ;;  %v928_v43 = vld [vmem:[%s1162_s8 + $0x74] ss:$8 sps:$4 sm:$0xff]   ;;  %v930_v44 = vld [vmem:[%s1162_s8 + $0x70] ss:$8 sps:$4 sm:$0xff]   ;;  %v931_v46 = vld [vmem:[%s1162_s8 + $0x64] ss:$8 sps:$4 sm:$0xff]  }
  0x2d   : > { %v1160_v41 = vshrl.u32 %v438_v36, 7  ;;  %741 = vperm.xlu0 %927, %v738_v40   ;;  %636 = vmatprep.subr.bf16.mxu0 %v928_v43  ;;  %v396_v47 = vld [vmem:[%s1235_s2] sm:$0x3f]  ;;  %v934_v50 = vld [vmem:[%s1162_s8 + $0x54] ss:$8 sps:$4 sm:$0xff]   ;;  %s1242_s11 = smov (!%p385_p8, %s854_s11), 3 }
  0x2e   : > { %v437_v42 = vunpack.c.0.s8 %v436_v39  ;;  %637 = vmatpush1.bf16.msra.mxu0 %v930_v44  ;;  %v933_v48 = vld [vmem:[%s1162_s8 + $0x60] ss:$8 sps:$4 sm:$0xff]   ;;  %v936_v52 = vld [vmem:[%s1162_s8 + $0x50] ss:$8 sps:$4 sm:$0xff]   ;;  %v937_v53 = vld [vmem:[%s1162_s8 + $0x44] ss:$8 sps:$4 sm:$0xff]   ;;  %v434_v63 = vcombine.high %v396_v47, %v396_v47  ;;  %s387_s14 = scalar_lea.vmem %s1234_s1, %s1242_s11 }
  0x2f   : > { %638 = vmatprep.subr.bf16.mxu0 %v931_v46  ;;  %v939_v54 = vld [vmem:[%s1162_s8 + $0x40] ss:$8 sps:$4 sm:$0xff]   ;;  %v940_v55 = vld [vmem:[%s1162_s8 + $0x34] ss:$8 sps:$4 sm:$0xff]   ;;  %v942_v56 = vld [vmem:[%s1162_s8 + $0x30] ss:$8 sps:$4 sm:$0xff]  }
  0x30   : > { %v440_v45 = vsub.s32 %v437_v42, %v1160_v41  ;;  %v943_v57 = vld [vmem:[%s1162_s8 + $0x24] ss:$8 sps:$4 sm:$0xff]   ;;  %v967_v58 = vld [vmem:[%s1162_s8 + $0x114] ss:$8 sps:$4 sm:$0xff]   ;;  %v969_v59 = vld [vmem:[%s1162_s8 + $0x110] ss:$8 sps:$4 sm:$0xff]  }
  0x31   : > { %v945_v60 = vld [vmem:[%s1162_s8 + $0x20] ss:$8 sps:$4 sm:$0xff]   ;;  %v946_v61 = vld [vmem:[%s1162_s8 + $0x14] ss:$8 sps:$4 sm:$0xff]   ;;  %689 = vmatprep.subr.bf16.mxu1 %v967_v58  ;;  %v973_v62 = vld [vmem:[%s1162_s8 + $0x104] ss:$8 sps:$4 sm:$0xff]  }
  0x32   : > { %v1172_v49 = vrot.slane %v396_v47, %v440_v45  ;;  %639 = vmatpush1.bf16.msra.mxu0 %v933_v48  ;;  %690 = vmatpush1.bf16.msra.mxu1 %v969_v59  ;;  %v975_v0 = vld [vmem:[%s1162_s8 + $0x100] ss:$8 sps:$4 sm:$0xff]   ;;  %v948_v1 = vld [vmem:[%s1162_s8 + $0x10] ss:$8 sps:$4 sm:$0xff]   ;;  %v949_v2 = vld [vmem:[%s1162_s8 + $0x4] ss:$8 sps:$4 sm:$0xff]   ;;  %v448_v3 = vrot.slane %v434_v63, %v440_v45 }
  0x33   : > { %640 = vmatprep.subr.bf16.mxu0 %v934_v50  ;;  %691 = vmatprep.subr.bf16.mxu1 %v973_v62  ;;  %v951_v4 = vld [vmem:[%s1162_s8] ss:$8 sps:$4 sm:$0xff]   ;;  %v952_v5 = vld [vmem:[%s1162_s8 + $0xf4] ss:$8 sps:$4 sm:$0xff]   ;;  %v954_v6 = vld [vmem:[%s1162_s8 + $0xf0] ss:$8 sps:$4 sm:$0xff]  }
  0x34   : > { %v449_v51 = vcombine.high %v1172_v49, %v1172_v49  ;;  %v955_v7 = vld [vmem:[%s1162_s8 + $0xe4] ss:$8 sps:$4 sm:$0xff]   ;;  %v957_v8 = vld [vmem:[%s1162_s8 + $0xe0] ss:$8 sps:$4 sm:$0xff]   ;;  %v958_v9 = vld [vmem:[%s1162_s8 + $0xd4] ss:$8 sps:$4 sm:$0xff]  }
  0x35   : > { %v960_v10 = vld [vmem:[%s1162_s8 + $0xd0] ss:$8 sps:$4 sm:$0xff]   ;;  %v961_v11 = vld [vmem:[%s1162_s8 + $0xc4] ss:$8 sps:$4 sm:$0xff]   ;;  %v963_v12 = vld [vmem:[%s1162_s8 + $0xc0] ss:$8 sps:$4 sm:$0xff]  }
  0x36   : > { %668 = vmatprep.mubr.bf16.mxu0 %v449_v51  ;;  %641 = vmatpush1.bf16.msra.mxu0 %v936_v52  ;;  %v964_v13 = vld [vmem:[%s1162_s8 + $0xb4] ss:$8 sps:$4 sm:$0xff]   ;;  %v966_v14 = vld [vmem:[%s1162_s8 + $0xb0] ss:$8 sps:$4 sm:$0xff]   ;;  %v970_v15 = vld [vmem:[%s1162_s8 + $0xa4] ss:$8 sps:$4 sm:$0xff]  }
  0x37   : > { %642 = vmatprep.subr.bf16.mxu0 %v937_v53  ;;  %692 = vmatpush1.bf16.msra.mxu1 %v975_v0  ;;  %v972_v16 = vld [vmem:[%s1162_s8 + $0xa0] ss:$8 sps:$4 sm:$0xff]   ;;  %v976_v17 = vld [vmem:[%s1162_s8 + $0x94] ss:$8 sps:$4 sm:$0xff]   ;;  %v978_v18 = vld [vmem:[%s1162_s8 + $0x90] ss:$8 sps:$4 sm:$0xff]  }
  0x38   : > { %v980_v19 = vld [vmem:[%s1162_s8 + $0x84] ss:$8 sps:$4 sm:$0xff]   ;;  %v982_v20 = vld [vmem:[%s1162_s8 + $0x80] ss:$8 sps:$4 sm:$0xff]   ;;  %v728_v32 = vsub.s32 0, %v1160_v41  ;;  %v732_v33 = vsub.s32 1, %v1160_v41 }
  0x39   : > { %v718_v25 = vld [vmem:[%s387_s14] sm:$0x3]  ;;  %s856_s15 = sshll.u32 %s1242_s11, 2 }
  0x3a   : > { %643 = vmatpush1.bf16.msra.mxu0 %v939_v54  ;;  %893 = vmatmul.mubr.msk.bf16.vlgmr.msra.gmra.mxu1 %vm632_vm0, %v448_v3  ;;  %v721_v26 = vadd.f32 1e-08, %v718_v25  ;;  %v719_v27 = vmax.f32 %v718_v25, 0.0  ;;  %s393_s20 = scalar_lea.vmem %s1237_s4, %s856_s15 }
  0x3b   : > { %644 = vmatprep.subr.bf16.mxu0 %v940_v55 }
  0x3c   : > { %983 = vrcp.f32 %v721_v26  ;;  %v720_v29 = vmin.f32 %v719_v27, 1.0 }
  0x3e   : > { %645 = vmatpush1.bf16.msra.mxu0 %v942_v56  ;;  %v750_v43 = vrot.slane %v720_v29, %v728_v32  ;;  %v754_v47 = vrot.slane %v720_v29, %v732_v33 }
  0x3f   : > { %646 = vmatprep.subr.bf16.mxu0 %v943_v57 }
  0x42   : > { %647 = vmatpush1.bf16.msra.mxu0 %v945_v60 }
  0x43   : > { %648 = vmatprep.subr.bf16.mxu0 %v946_v61 }
  0x46   : > { %649 = vmatpush1.bf16.msra.mxu0 %v948_v1 }
  0x47   : > { %650 = vmatprep.subr.bf16.mxu0 %v949_v2 }
  0x49   : > { %v984_v28 = vpop.eup %983 }
  0x4a   : > { %651 = vmatpush1.bf16.msra.mxu0 %v951_v4  ;;  %v723_v30 = vmul.f32 288.0, %v984_v28 }
  0x4b   : > { %652 = vmatprep.subr.bf16.mxu0 %v952_v5 }
  0x4c   : > { %v724_v31 = vmul.f32 %v723_v30, %v720_v29 }
  0x4e   : > { %653 = vmatpush2.bf16.msra.mxu0 %v954_v6  ;;  %v729_v34 = vrot.slane %v724_v31, %v728_v32  ;;  %v733_v37 = vrot.slane %v724_v31, %v732_v33 }
  0x4f   : > { %654 = vmatprep.subr.bf16.mxu0 %v955_v7 }
  0x52   : > { %655 = vmatpush2.bf16.msra.mxu0 %v957_v8 }
  0x53   : > { %656 = vmatprep.subr.bf16.mxu0 %v958_v9 }
  0x56   : > { %657 = vmatpush2.bf16.msra.mxu0 %v960_v10 }
  0x57   : > { %658 = vmatprep.subr.bf16.mxu0 %v961_v11 }
  0x5a   : > { %659 = vmatpush2.bf16.msra.mxu0 %v963_v12 }
  0x5b   : > { %660 = vmatprep.subr.bf16.mxu0 %v964_v13 }
  0x5e   : > { %661 = vmatpush2.bf16.msra.mxu0 %v966_v14 }
  0x5f   : > { %662 = vmatprep.subr.bf16.mxu0 %v970_v15 }
  0x62   : > { %663 = vmatpush2.bf16.msra.mxu0 %v972_v16 }
  0x63   : > { %664 = vmatprep.subr.bf16.mxu0 %v976_v17 }
  0x66   : > { %665 = vmatpush2.bf16.msra.mxu0 %v978_v18 }
  0x67   : > { %666 = vmatprep.subr.bf16.mxu0 %v980_v19 }
  0x6a   : > { %667 = vmatpush2.bf16.msra.mxu0 %v982_v20 }
  0x6d   : > { %669 = vmatmul.mubr.bf16.vlgmr.msra.gmra.mxu0 %v1172_v49 }
  0xa8   : > { %v742_v39 = vpop.permute.xlu0 %741 }
  0xfa   : > { %v711_v21 = vpop.f32.mrf.mxu1 }
  0xfc   : > { %v713_v22 = vpop.f32.mrf.mxu1 }
  0xfe   : > { %v715_v23 = vpop.f32.mrf.mxu1 }
 0x100   : > { %v716_v24 = vpop.f32.mrf.mxu1 }
 0x12d   : > { %v670_v35 = vpop.f32.mrf.mxu0 }
 0x12e   : > { %v712_v36 = vadd.f32 %v711_v21, %v670_v35 }
 0x12f   : > { %v672_v38 = vpop.f32.mrf.mxu0 }
 0x130   : > { %v714_v40 = vadd.f32 %v713_v22, %v672_v38  ;;  %v736_v42 = vmul.f32 %v729_v34, %v712_v36 }
 0x131   : > { %v674_v44 = vpop.f32.mrf.mxu0 }
 0x132   : > { %v737_v45 = vmul.f32 %v733_v37, %v714_v40  ;;  %v744_v46 = vadd.f32 %v742_v39, %v736_v42 }
 0x133   : > { %v675_v48 = vpop.f32.mrf.mxu0 }
 0x134   : > { %v745_v49 = vadd.f32 %v742_v39, %v737_v45  ;;  %v757_v50 = vmul.f32 %v750_v43, %v744_v46 }
 0x136   : > { %v758_v51 = vmul.f32 %v754_v47, %v745_v49  ;;  %v894_v52 = vmul.f32 -1.442695, %v757_v50 }
 0x138   : > { %985 = vpow2.f32 %v894_v52  ;;  %v895_v41 = vmul.f32 -1.442695, %v758_v51 }
 0x13a   : > { %987 = vpow2.f32 %v895_v41 }
 0x145   : > { %v986_v53 = vpop.eup %985 }
 0x146   : > { %v765_v54 = vadd.f32 1.0, %v986_v53 }
 0x147   : > { %v988_v55 = vpop.eup %987 }
 0x148   : > { %v766_v56 = vadd.f32 1.0, %v988_v55  ;;  %989 = vrcp.f32 %v765_v54 }
 0x14a   : > { %991 = vrcp.f32 %v766_v56 }
 0x155   : > { %v990_v57 = vpop.eup %989 }
 0x157   : > { %v992_v58 = vpop.eup %991 }
 0x158   : > { %v773_v59 = vcombine.low %v990_v57, %v992_v58 }
 0x15a   : > { %775 = vst [vmem:[%s393_s20] sm:$0x77] %v773_v59 }
 0x15b PF: > { %p11_p9 = scmp.ge.s32.totalorder %s1061_s19, 4   ;;  %s1238_s15 = smov %s1011_s16 }
 0x15c   : > { %s1239_s16 = smov %s1070_s22  ;;  %s1240_s17 = smov %s1061_s19 }
 0x15d   :  { %13 = sbr.rel (!%p11_p9) target bundleno = 2 (0x2), region = 112 }

</bundles_post_ra>
